<compile_context>
chip_gen: v6e
topology: v6e:2x2x1
jax: 0.10.0
libtpu: 0.0.40
codegen_flags: <defaults>
</compile_context>

<pallas_src>
import jax
import jax.numpy as jnp
from jax import lax
from jax.experimental import pallas as pl
from jax.experimental.pallas import tpu as pltpu

EPS = 1e-5


# ------------------------------ fused kernel ----------------------------------

def _dsconv_stage(pad_ref, dw, s1, b1, pw, s2, b2, c_in, c_out, H2, W2):
    """Depthwise 3x3 (+BN1+ReLU) then pointwise 1x1 (+BN2+ReLU), vectorized over channels.

    pad_ref : VMEM (c_in, H2+2, W2+2) zero-haloed input tile (ref; sliced per tap)
    dw      : (9, c_in, 1, 1)   depthwise taps, tap index = dy*3+dx
    s1/b1   : (c_in, 1, 1)      folded BN1 scale/bias (depthwise bias included)
    pw      : (c_in, c_out, 1, 1) pointwise weights (pw[c, o] = torch weight[o, c])
    s2/b2   : (c_out, 1, 1)     folded BN2 scale/bias (pointwise bias included)
    returns : (c_out, H2, W2) f32
    """
    f32 = jnp.float32

    # -- depthwise 3x3 ("same" via the zero halo): 9 shifted FMAs over the whole block --
    acc = None
    for dy in range(3):
        for dx in range(3):
            tap = pad_ref[:, dy:dy + H2, dx:dx + W2]          # (c_in, H2, W2), ref slice
            contrib = tap * dw[dy * 3 + dx]                   # (c_in,1,1) broadcast weight
            acc = contrib if acc is None else acc + contrib
    y1 = jnp.maximum(acc * s1 + b1, 0.0)                      # folded BN1 + ReLU

    # -- pointwise 1x1 --
    if c_in >= 32:
        # Production path: contract channels on the MXU, f32 accumulate.
        # TODO(synk): cast inputs to bf16 on v6e/v7x for full MXU rate.
        pw2 = pw.reshape(c_in, c_out)
        y2 = lax.dot_general(pw2, y1.reshape(c_in, H2 * W2),
                             (((0,), (0,)), ((), ())),
                             preferred_element_type=f32).reshape(c_out, H2, W2)
    else:
        # Small-channel path: c_in broadcast-FMAs on the VPU (MXU tile degenerate here).
        y2 = jnp.zeros((c_out, H2, W2), f32)
        for c in range(c_in):
            y2 = y2 + pw[c] * y1[c]                           # (c_out,1,1) * (H2,W2)

    return jnp.maximum(y2 * s2 + b2, 0.0)                     # folded BN2 + ReLU


def _down_dsc_kernel(x_ref,
                     dw1_ref, s1_ref, b1_ref, pw1_ref, s2_ref, b2_ref,
                     dw2_ref, s3_ref, b3_ref, pw2_ref, s4_ref, b4_ref,
                     o_ref, pad1_ref, pad2_ref):
    f32 = jnp.float32
    _, c_in, H, W = x_ref.shape
    H2, W2 = H // 2, W // 2
    c_mid = pad2_ref.shape[0]
    c_out = o_ref.shape[1]

    # ---- zero ONLY the halo rows / columns of the padded scratch tiles ----
    # (interiors are fully overwritten below; re-zeroed each step so the 'parallel'
    #  megacore split stays correct without relying on program_id == 0).
    for pad_ref, C in ((pad1_ref, c_in), (pad2_ref, c_mid)):
        zrow = jnp.zeros((C, 1, W2 + 2), f32)
        pad_ref[:, 0:1, :] = zrow
        pad_ref[:, H2 + 1:H2 + 2, :] = zrow
        zcol = jnp.zeros((C, H2, 1), f32)
        pad_ref[:, 1:H2 + 1, 0:1] = zcol
        pad_ref[:, 1:H2 + 1, W2 + 1:W2 + 2] = zcol

    # ---- stage 1: 2x2 max-pool (NCHW), vectorized over channels ----
    # Pairwise maxes over reshaped column / row pairs (no masked broadcast, no concat).
    x = x_ref[0].astype(f32)                                   # (c_in, H, W)
    x4 = x.reshape(c_in, H, W2, 2)
    cp = jnp.maximum(x4[:, :, :, 0], x4[:, :, :, 1])           # column pairs -> (c_in, H, W2)
    cp4 = cp.reshape(c_in, H2, 2, W2)
    pooled = jnp.maximum(cp4[:, :, 0, :], cp4[:, :, 1, :])     # row pairs -> (c_in, H2, W2)
    pad1_ref[:, 1:H2 + 1, 1:W2 + 1] = pooled

    # ---- stage 2: dsconv(c_in -> c_mid), into pad2 interior ----
    y_mid = _dsconv_stage(pad1_ref, dw1_ref[...], s1_ref[...], b1_ref[...],
                          pw1_ref[...], s2_ref[...], b2_ref[...],
                          c_in, c_mid, H2, W2)
    pad2_ref[:, 1:H2 + 1, 1:W2 + 1] = y_mid

    # ---- stage 3: dsconv(c_mid -> c_out), single lane-dense NCHW output store ----
    y_out = _dsconv_stage(pad2_ref, dw2_ref[...], s3_ref[...], b3_ref[...],
                          pw2_ref[...], s4_ref[...], b4_ref[...],
                          c_mid, c_out, H2, W2)
    o_ref[0] = y_out.astype(o_ref.dtype)


# ------------------------------ wrapper ----------------------------------------

@jax.jit
def down_dsc_forward(x_nchw, p1, p2):
    N, Cin, H, W = x_nchw.shape
    # PyTorch MaxPool2d(2) truncates odd sizes; require even here (matches test shapes).
    assert H % 2 == 0 and W % 2 == 0, "down_dsc kernel expects even H and W"
    Cmid = p1["scale2"].shape[0]
    Cout = p2["scale2"].shape[0]
    H2, W2 = H // 2, W // 2

    vmem_const = pl.BlockSpec(memory_space=pltpu.MemorySpace.VMEM)   # whole array, once
    return pl.pallas_call(
        _down_dsc_kernel,
        out_shape=jax.ShapeDtypeStruct((N, Cout, H2, W2), x_nchw.dtype),
        grid=(N,),
        in_specs=[pl.BlockSpec((1, Cin, H, W), lambda n: (n, 0, 0, 0))] + [vmem_const] * 12,
        out_specs=pl.BlockSpec((1, Cout, H2, W2), lambda n: (n, 0, 0, 0)),
        scratch_shapes=[
            pltpu.VMEM((Cin, H2 + 2, W2 + 2), jnp.float32),   # pooled + halo (dsconv1 in)
            pltpu.VMEM((Cmid, H2 + 2, W2 + 2), jnp.float32),  # dsconv1 out + halo
        ],
        compiler_params=pltpu.CompilerParams(dimension_semantics=("parallel",)),
    )(x_nchw,
      p1["dw_taps"], p1["scale1"], p1["bias1"], p1["pw_b"], p1["scale2"], p1["bias2"],
      p2["dw_taps"], p2["scale1"], p2["bias1"], p2["pw_b"], p2["scale2"], p2["bias2"])


# ------------------------- parameters (eval-mode BN folded) --------------------

def make_dsconv_params(key, in_ch, out_ch):
    ks = jax.random.split(key, 12)
    p = {}
    # depthwise conv: PyTorch weight (in_ch, 1, 3, 3) stored here as (in_ch, 3, 3)
    p["dw"] = 0.3 * jax.random.normal(ks[0], (in_ch, 3, 3), jnp.float32)
    p["b_dw"] = 0.1 * jax.random.normal(ks[1], (in_ch,), jnp.float32)
    # pointwise conv: PyTorch weight (out_ch, in_ch, 1, 1) stored as (out_ch, in_ch)
    p["pw"] = 0.3 * jax.random.normal(ks[2], (out_ch, in_ch), jnp.float32)
    p["b_pw"] = 0.1 * jax.random.normal(ks[3], (out_ch,), jnp.float32)
    # BN1 (over in_ch) and BN2 (over out_ch): eval-mode params / running stats
    p["g1"] = 1.0 + 0.1 * jax.random.normal(ks[4], (in_ch,), jnp.float32)
    p["beta1"] = 0.1 * jax.random.normal(ks[5], (in_ch,), jnp.float32)
    p["m1"] = 0.1 * jax.random.normal(ks[6], (in_ch,), jnp.float32)
    p["v1"] = jnp.abs(1.0 + 0.1 * jax.random.normal(ks[7], (in_ch,), jnp.float32))
    p["g2"] = 1.0 + 0.1 * jax.random.normal(ks[8], (out_ch,), jnp.float32)
    p["beta2"] = 0.1 * jax.random.normal(ks[9], (out_ch,), jnp.float32)
    p["m2"] = 0.1 * jax.random.normal(ks[10], (out_ch,), jnp.float32)
    p["v2"] = jnp.abs(1.0 + 0.1 * jax.random.normal(ks[11], (out_ch,), jnp.float32))

    # Fold conv bias + eval-mode BN into per-channel scale/bias, in broadcast-ready
    # (C, 1, 1) layouts; depthwise taps as (9, C, 1, 1); pointwise as (Cin, Cout, 1, 1).
    s1 = p["g1"] / jnp.sqrt(p["v1"] + EPS)
    b1 = p["beta1"] + (p["b_dw"] - p["m1"]) * s1
    s2 = p["g2"] / jnp.sqrt(p["v2"] + EPS)
    b2 = p["beta2"] + (p["b_pw"] - p["m2"]) * s2
    p["scale1"], p["bias1"] = s1.reshape(in_ch, 1, 1), b1.reshape(in_ch, 1, 1)
    p["scale2"], p["bias2"] = s2.reshape(out_ch, 1, 1), b2.reshape(out_ch, 1, 1)
    p["dw_taps"] = jnp.transpose(p["dw"], (1, 2, 0)).reshape(9, in_ch, 1, 1)
    p["pw_b"] = jnp.transpose(p["pw"]).reshape(in_ch, out_ch, 1, 1)
    return p


# ------------------------------- plain-JAX reference ---------------------------

def _bn_nchw(y, g, beta, m, v):
    inv = 1.0 / jnp.sqrt(v + EPS)
    return (y - m[None, :, None, None]) * (g * inv)[None, :, None, None] \
        + beta[None, :, None, None]


def _ref_dsconv(x, p):
    c = p["dw"].shape[0]
    w_dw = p["dw"].reshape(c, 1, 3, 3)                         # OIHW, groups = c
    y = lax.conv_general_dilated(
        x, w_dw, window_strides=(1, 1), padding="SAME",
        dimension_numbers=("NCHW", "OIHW", "NCHW"),
        feature_group_count=c, precision=lax.Precision.HIGHEST)
    y = y + p["b_dw"][None, :, None, None]
    y = jnp.maximum(_bn_nchw(y, p["g1"], p["beta1"], p["m1"], p["v1"]), 0.0)
    y = jnp.einsum("nchw,oc->nohw", y, p["pw"],
                   precision=lax.Precision.HIGHEST) + p["b_pw"][None, :, None, None]
    y = jnp.maximum(_bn_nchw(y, p["g2"], p["beta2"], p["m2"], p["v2"]), 0.0)
    return y


def _ref_forward(x_nchw, p1, p2):
    N, C, H, W = x_nchw.shape
    xp = x_nchw.reshape(N, C, H // 2, 2, W // 2, 2).max(axis=(3, 5))
    return _ref_dsconv(_ref_dsconv(xp, p1), p2)


# ----------------------------------- main ---------------------------------------

if __name__ == "__main__":
    N, Cin, H, W = 2, 4, 16, 16     # PyTorch NCHW input convention
    Cout = 8

    key = jax.random.PRNGKey(0)
    k_x, k_p1, k_p2 = jax.random.split(key, 3)

    x_nchw = jax.random.normal(k_x, (N, Cin, H, W), jnp.float32)
    p1 = make_dsconv_params(k_p1, Cin, Cout)    # dsconv(in_ch, out_ch)
    p2 = make_dsconv_params(k_p2, Cout, Cout)   # dsconv(out_ch, out_ch)

    out = down_dsc_forward(x_nchw, p1, p2)
    out = jax.block_until_ready(out)
    assert out.shape == (N, Cout, H // 2, W // 2), out.shape

    ref = _ref_forward(x_nchw, p1, p2)
    if not jnp.allclose(out, ref, atol=1e-4, rtol=1e-4):
        max_err = float(jnp.max(jnp.abs(out - ref)))
        raise AssertionError(
            f"Pallas output does not match JAX reference (max abs err {max_err})")

    print("KERNEL_OK")
</pallas_src>

<mosaic_0001>
module attributes {stable_mosaic.version = 11 : i64} {
  func.func @_down_dsc_kernel(%arg0: i32, %arg1: memref<1x4x16x16xf32, #tpu.memory_space<vmem>>, %arg2: memref<9x4x1x1xf32, #tpu.memory_space<vmem>>, %arg3: memref<4x1x1xf32, #tpu.memory_space<vmem>>, %arg4: memref<4x1x1xf32, #tpu.memory_space<vmem>>, %arg5: memref<4x8x1x1xf32, #tpu.memory_space<vmem>>, %arg6: memref<8x1x1xf32, #tpu.memory_space<vmem>>, %arg7: memref<8x1x1xf32, #tpu.memory_space<vmem>>, %arg8: memref<9x8x1x1xf32, #tpu.memory_space<vmem>>, %arg9: memref<8x1x1xf32, #tpu.memory_space<vmem>>, %arg10: memref<8x1x1xf32, #tpu.memory_space<vmem>>, %arg11: memref<8x8x1x1xf32, #tpu.memory_space<vmem>>, %arg12: memref<8x1x1xf32, #tpu.memory_space<vmem>>, %arg13: memref<8x1x1xf32, #tpu.memory_space<vmem>>, %arg14: memref<1x8x8x8xf32, #tpu.memory_space<vmem>>, %arg15: memref<4x10x10xf32, #tpu.memory_space<vmem>>, %arg16: memref<8x10x10xf32, #tpu.memory_space<vmem>>) attributes {dimension_semantics = [#tpu.dimension_semantics<parallel>], iteration_bounds = array<i64: 2>, scalar_prefetch = 0 : i64, scratch_operands = 2 : i64, tpu.core_type = #tpu.core_type<tc>, window_params = [{transform_indices = @transform_0, window_bounds = array<i64: 1, 4, 16, 16>}, {pipeline_mode = #tpu.pipeline_mode<synchronous>, transform_indices = @transform_1, window_bounds = array<i64: 9, 4, 1, 1>}, {pipeline_mode = #tpu.pipeline_mode<synchronous>, transform_indices = @transform_2, window_bounds = array<i64: 4, 1, 1>}, {pipeline_mode = #tpu.pipeline_mode<synchronous>, transform_indices = @transform_3, window_bounds = array<i64: 4, 1, 1>}, {pipeline_mode = #tpu.pipeline_mode<synchronous>, transform_indices = @transform_4, window_bounds = array<i64: 4, 8, 1, 1>}, {pipeline_mode = #tpu.pipeline_mode<synchronous>, transform_indices = @transform_5, window_bounds = array<i64: 8, 1, 1>}, {pipeline_mode = #tpu.pipeline_mode<synchronous>, transform_indices = @transform_6, window_bounds = array<i64: 8, 1, 1>}, {pipeline_mode = #tpu.pipeline_mode<synchronous>, transform_indices = @transform_7, window_bounds = array<i64: 9, 8, 1, 1>}, {pipeline_mode = #tpu.pipeline_mode<synchronous>, transform_indices = @transform_8, window_bounds = array<i64: 8, 1, 1>}, {pipeline_mode = #tpu.pipeline_mode<synchronous>, transform_indices = @transform_9, window_bounds = array<i64: 8, 1, 1>}, {pipeline_mode = #tpu.pipeline_mode<synchronous>, transform_indices = @transform_10, window_bounds = array<i64: 8, 8, 1, 1>}, {pipeline_mode = #tpu.pipeline_mode<synchronous>, transform_indices = @transform_11, window_bounds = array<i64: 8, 1, 1>}, {pipeline_mode = #tpu.pipeline_mode<synchronous>, transform_indices = @transform_12, window_bounds = array<i64: 8, 1, 1>}, {transform_indices = @transform_13, window_bounds = array<i64: 1, 8, 8, 8>}]} {
    %cst = arith.constant 0.000000e+00 : f32
    %0 = vector.broadcast %cst : f32 to vector<4x1x10xf32>
    %c0 = arith.constant 0 : index
    %c0_0 = arith.constant 0 : index
    %c0_1 = arith.constant 0 : index
    %1 = vector.load %arg15[%c0, %c0_0, %c0_1] : memref<4x10x10xf32, #tpu.memory_space<vmem>>, vector<4x1x10xf32>
    tpu.vector_store %arg15[%c0, %c0_0, %c0_1], %0 {strides = array<i32>} : memref<4x10x10xf32, #tpu.memory_space<vmem>>, vector<4x1x10xf32>,
    %c0_2 = arith.constant 0 : index
    %c9 = arith.constant 9 : index
    %c0_3 = arith.constant 0 : index
    %2 = vector.load %arg15[%c0_2, %c9, %c0_3] : memref<4x10x10xf32, #tpu.memory_space<vmem>>, vector<4x1x10xf32>
    tpu.vector_store %arg15[%c0_2, %c9, %c0_3], %0 {strides = array<i32>} : memref<4x10x10xf32, #tpu.memory_space<vmem>>, vector<4x1x10xf32>,
    %cst_4 = arith.constant 0.000000e+00 : f32
    %3 = vector.broadcast %cst_4 : f32 to vector<4x8x1xf32>
    %c0_5 = arith.constant 0 : index
    %c1 = arith.constant 1 : index
    %c0_6 = arith.constant 0 : index
    %4 = vector.load %arg15[%c0_5, %c1, %c0_6] : memref<4x10x10xf32, #tpu.memory_space<vmem>>, vector<4x8x1xf32>
    tpu.vector_store %arg15[%c0_5, %c1, %c0_6], %3 {strides = array<i32>} : memref<4x10x10xf32, #tpu.memory_space<vmem>>, vector<4x8x1xf32>,
    %c0_7 = arith.constant 0 : index
    %c1_8 = arith.constant 1 : index
    %c9_9 = arith.constant 9 : index
    %5 = vector.load %arg15[%c0_7, %c1_8, %c9_9] : memref<4x10x10xf32, #tpu.memory_space<vmem>>, vector<4x8x1xf32>
    tpu.vector_store %arg15[%c0_7, %c1_8, %c9_9], %3 {strides = array<i32>} : memref<4x10x10xf32, #tpu.memory_space<vmem>>, vector<4x8x1xf32>,
    %cst_10 = arith.constant 0.000000e+00 : f32
    %6 = vector.broadcast %cst_10 : f32 to vector<8x1x10xf32>
    %c0_11 = arith.constant 0 : index
    %c0_12 = arith.constant 0 : index
    %c0_13 = arith.constant 0 : index
    %7 = vector.load %arg16[%c0_11, %c0_12, %c0_13] : memref<8x10x10xf32, #tpu.memory_space<vmem>>, vector<8x1x10xf32>
    tpu.vector_store %arg16[%c0_11, %c0_12, %c0_13], %6 {strides = array<i32>} : memref<8x10x10xf32, #tpu.memory_space<vmem>>, vector<8x1x10xf32>,
    %c0_14 = arith.constant 0 : index
    %c9_15 = arith.constant 9 : index
    %c0_16 = arith.constant 0 : index
    %8 = vector.load %arg16[%c0_14, %c9_15, %c0_16] : memref<8x10x10xf32, #tpu.memory_space<vmem>>, vector<8x1x10xf32>
    tpu.vector_store %arg16[%c0_14, %c9_15, %c0_16], %6 {strides = array<i32>} : memref<8x10x10xf32, #tpu.memory_space<vmem>>, vector<8x1x10xf32>,
    %cst_17 = arith.constant 0.000000e+00 : f32
    %9 = vector.broadcast %cst_17 : f32 to vector<8x8x1xf32>
    %c0_18 = arith.constant 0 : index
    %c1_19 = arith.constant 1 : index
    %c0_20 = arith.constant 0 : index
    %10 = vector.load %arg16[%c0_18, %c1_19, %c0_20] : memref<8x10x10xf32, #tpu.memory_space<vmem>>, vector<8x8x1xf32>
    tpu.vector_store %arg16[%c0_18, %c1_19, %c0_20], %9 {strides = array<i32>} : memref<8x10x10xf32, #tpu.memory_space<vmem>>, vector<8x8x1xf32>,
    %c0_21 = arith.constant 0 : index
    %c1_22 = arith.constant 1 : index
    %c9_23 = arith.constant 9 : index
    %11 = vector.load %arg16[%c0_21, %c1_22, %c9_23] : memref<8x10x10xf32, #tpu.memory_space<vmem>>, vector<8x8x1xf32>
    tpu.vector_store %arg16[%c0_21, %c1_22, %c9_23], %9 {strides = array<i32>} : memref<8x10x10xf32, #tpu.memory_space<vmem>>, vector<8x8x1xf32>,
    %c0_24 = arith.constant 0 : index
    %c0_25 = arith.constant 0 : index
    %c0_26 = arith.constant 0 : index
    %c0_27 = arith.constant 0 : index
    %12 = vector.load %arg1[%c0_24, %c0_25, %c0_26, %c0_27] : memref<1x4x16x16xf32, #tpu.memory_space<vmem>>, vector<1x4x16x16xf32>
    %13 = vector.shape_cast %12 : vector<1x4x16x16xf32> to vector<4x16x16xf32>
    %14 = vector.shape_cast %13 : vector<4x16x16xf32> to vector<4x16x8x2xf32>
    %15 = vector.extract_strided_slice %14 {offsets = [0, 0, 0, 0], sizes = [4, 16, 8, 1], strides = [1, 1, 1, 1]} : vector<4x16x8x2xf32> to vector<4x16x8x1xf32>
    %16 = vector.shape_cast %15 : vector<4x16x8x1xf32> to vector<4x16x8xf32>
    %17 = vector.extract_strided_slice %14 {offsets = [0, 0, 0, 1], sizes = [4, 16, 8, 1], strides = [1, 1, 1, 1]} : vector<4x16x8x2xf32> to vector<4x16x8x1xf32>
    %18 = vector.shape_cast %17 : vector<4x16x8x1xf32> to vector<4x16x8xf32>
    %19 = arith.maximumf %16, %18 : vector<4x16x8xf32>
    %20 = vector.shape_cast %19 : vector<4x16x8xf32> to vector<4x8x2x8xf32>
    %21 = vector.extract_strided_slice %20 {offsets = [0, 0, 0, 0], sizes = [4, 8, 1, 8], strides = [1, 1, 1, 1]} : vector<4x8x2x8xf32> to vector<4x8x1x8xf32>
    %22 = vector.shape_cast %21 : vector<4x8x1x8xf32> to vector<4x8x8xf32>
    %23 = vector.extract_strided_slice %20 {offsets = [0, 0, 1, 0], sizes = [4, 8, 1, 8], strides = [1, 1, 1, 1]} : vector<4x8x2x8xf32> to vector<4x8x1x8xf32>
    %24 = vector.shape_cast %23 : vector<4x8x1x8xf32> to vector<4x8x8xf32>
    %25 = arith.maximumf %22, %24 : vector<4x8x8xf32>
    %c0_28 = arith.constant 0 : index
    %c1_29 = arith.constant 1 : index
    %c1_30 = arith.constant 1 : index
    %26 = vector.load %arg15[%c0_28, %c1_29, %c1_30] : memref<4x10x10xf32, #tpu.memory_space<vmem>>, vector<4x8x8xf32>
    tpu.vector_store %arg15[%c0_28, %c1_29, %c1_30], %25 {strides = array<i32>} : memref<4x10x10xf32, #tpu.memory_space<vmem>>, vector<4x8x8xf32>,
    %c0_31 = arith.constant 0 : index
    %c0_32 = arith.constant 0 : index
    %c0_33 = arith.constant 0 : index
    %c0_34 = arith.constant 0 : index
    %27 = vector.load %arg2[%c0_31, %c0_32, %c0_33, %c0_34] : memref<9x4x1x1xf32, #tpu.memory_space<vmem>>, vector<9x4x1x1xf32>
    %c0_35 = arith.constant 0 : index
    %c0_36 = arith.constant 0 : index
    %c0_37 = arith.constant 0 : index
    %28 = vector.load %arg3[%c0_35, %c0_36, %c0_37] : memref<4x1x1xf32, #tpu.memory_space<vmem>>, vector<4x1x1xf32>
    %c0_38 = arith.constant 0 : index
    %c0_39 = arith.constant 0 : index
    %c0_40 = arith.constant 0 : index
    %29 = vector.load %arg4[%c0_38, %c0_39, %c0_40] : memref<4x1x1xf32, #tpu.memory_space<vmem>>, vector<4x1x1xf32>
    %c0_41 = arith.constant 0 : index
    %c0_42 = arith.constant 0 : index
    %c0_43 = arith.constant 0 : index
    %c0_44 = arith.constant 0 : index
    %30 = vector.load %arg5[%c0_41, %c0_42, %c0_43, %c0_44] : memref<4x8x1x1xf32, #tpu.memory_space<vmem>>, vector<4x8x1x1xf32>
    %c0_45 = arith.constant 0 : index
    %c0_46 = arith.constant 0 : index
    %c0_47 = arith.constant 0 : index
    %31 = vector.load %arg6[%c0_45, %c0_46, %c0_47] : memref<8x1x1xf32, #tpu.memory_space<vmem>>, vector<8x1x1xf32>
    %c0_48 = arith.constant 0 : index
    %c0_49 = arith.constant 0 : index
    %c0_50 = arith.constant 0 : index
    %32 = vector.load %arg7[%c0_48, %c0_49, %c0_50] : memref<8x1x1xf32, #tpu.memory_space<vmem>>, vector<8x1x1xf32>
    %c0_51 = arith.constant 0 : index
    %c0_52 = arith.constant 0 : index
    %c0_53 = arith.constant 0 : index
    %33 = vector.load %arg15[%c0_51, %c0_52, %c0_53] : memref<4x10x10xf32, #tpu.memory_space<vmem>>, vector<4x8x8xf32>
    %34 = vector.extract_strided_slice %27 {offsets = [0, 0, 0, 0], sizes = [1, 4, 1, 1], strides = [1, 1, 1, 1]} : vector<9x4x1x1xf32> to vector<1x4x1x1xf32>
    %35 = vector.shape_cast %34 : vector<1x4x1x1xf32> to vector<4x1x1xf32>
    %36 = vector.broadcast %35 : vector<4x1x1xf32> to vector<4x8x8xf32>
    %37 = arith.mulf %33, %36 : vector<4x8x8xf32>
    %c0_54 = arith.constant 0 : index
    %c0_55 = arith.constant 0 : index
    %c1_56 = arith.constant 1 : index
    %38 = vector.load %arg15[%c0_54, %c0_55, %c1_56] : memref<4x10x10xf32, #tpu.memory_space<vmem>>, vector<4x8x8xf32>
    %39 = vector.extract_strided_slice %27 {offsets = [1, 0, 0, 0], sizes = [1, 4, 1, 1], strides = [1, 1, 1, 1]} : vector<9x4x1x1xf32> to vector<1x4x1x1xf32>
    %40 = vector.shape_cast %39 : vector<1x4x1x1xf32> to vector<4x1x1xf32>
    %41 = vector.broadcast %40 : vector<4x1x1xf32> to vector<4x8x8xf32>
    %42 = arith.mulf %38, %41 : vector<4x8x8xf32>
    %43 = arith.addf %37, %42 : vector<4x8x8xf32>
    %c0_57 = arith.constant 0 : index
    %c0_58 = arith.constant 0 : index
    %c2 = arith.constant 2 : index
    %44 = vector.load %arg15[%c0_57, %c0_58, %c2] : memref<4x10x10xf32, #tpu.memory_space<vmem>>, vector<4x8x8xf32>
    %45 = vector.extract_strided_slice %27 {offsets = [2, 0, 0, 0], sizes = [1, 4, 1, 1], strides = [1, 1, 1, 1]} : vector<9x4x1x1xf32> to vector<1x4x1x1xf32>
    %46 = vector.shape_cast %45 : vector<1x4x1x1xf32> to vector<4x1x1xf32>
    %47 = vector.broadcast %46 : vector<4x1x1xf32> to vector<4x8x8xf32>
    %48 = arith.mulf %44, %47 : vector<4x8x8xf32>
    %49 = arith.addf %43, %48 : vector<4x8x8xf32>
    %c0_59 = arith.constant 0 : index
    %c1_60 = arith.constant 1 : index
    %c0_61 = arith.constant 0 : index
    %50 = vector.load %arg15[%c0_59, %c1_60, %c0_61] : memref<4x10x10xf32, #tpu.memory_space<vmem>>, vector<4x8x8xf32>
    %51 = vector.extract_strided_slice %27 {offsets = [3, 0, 0, 0], sizes = [1, 4, 1, 1], strides = [1, 1, 1, 1]} : vector<9x4x1x1xf32> to vector<1x4x1x1xf32>
    %52 = vector.shape_cast %51 : vector<1x4x1x1xf32> to vector<4x1x1xf32>
    %53 = vector.broadcast %52 : vector<4x1x1xf32> to vector<4x8x8xf32>
    %54 = arith.mulf %50, %53 : vector<4x8x8xf32>
    %55 = arith.addf %49, %54 : vector<4x8x8xf32>
    %c0_62 = arith.constant 0 : index
    %c1_63 = arith.constant 1 : index
    %c1_64 = arith.constant 1 : index
    %56 = vector.load %arg15[%c0_62, %c1_63, %c1_64] : memref<4x10x10xf32, #tpu.memory_space<vmem>>, vector<4x8x8xf32>
    %57 = vector.extract_strided_slice %27 {offsets = [4, 0, 0, 0], sizes = [1, 4, 1, 1], strides = [1, 1, 1, 1]} : vector<9x4x1x1xf32> to vector<1x4x1x1xf32>
    %58 = vector.shape_cast %57 : vector<1x4x1x1xf32> to vector<4x1x1xf32>
    %59 = vector.broadcast %58 : vector<4x1x1xf32> to vector<4x8x8xf32>
    %60 = arith.mulf %56, %59 : vector<4x8x8xf32>
    %61 = arith.addf %55, %60 : vector<4x8x8xf32>
    %c0_65 = arith.constant 0 : index
    %c1_66 = arith.constant 1 : index
    %c2_67 = arith.constant 2 : index
    %62 = vector.load %arg15[%c0_65, %c1_66, %c2_67] : memref<4x10x10xf32, #tpu.memory_space<vmem>>, vector<4x8x8xf32>
    %63 = vector.extract_strided_slice %27 {offsets = [5, 0, 0, 0], sizes = [1, 4, 1, 1], strides = [1, 1, 1, 1]} : vector<9x4x1x1xf32> to vector<1x4x1x1xf32>
    %64 = vector.shape_cast %63 : vector<1x4x1x1xf32> to vector<4x1x1xf32>
    %65 = vector.broadcast %64 : vector<4x1x1xf32> to vector<4x8x8xf32>
    %66 = arith.mulf %62, %65 : vector<4x8x8xf32>
    %67 = arith.addf %61, %66 : vector<4x8x8xf32>
    %c0_68 = arith.constant 0 : index
    %c2_69 = arith.constant 2 : index
    %c0_70 = arith.constant 0 : index
    %68 = vector.load %arg15[%c0_68, %c2_69, %c0_70] : memref<4x10x10xf32, #tpu.memory_space<vmem>>, vector<4x8x8xf32>
    %69 = vector.extract_strided_slice %27 {offsets = [6, 0, 0, 0], sizes = [1, 4, 1, 1], strides = [1, 1, 1, 1]} : vector<9x4x1x1xf32> to vector<1x4x1x1xf32>
    %70 = vector.shape_cast %69 : vector<1x4x1x1xf32> to vector<4x1x1xf32>
    %71 = vector.broadcast %70 : vector<4x1x1xf32> to vector<4x8x8xf32>
    %72 = arith.mulf %68, %71 : vector<4x8x8xf32>
    %73 = arith.addf %67, %72 : vector<4x8x8xf32>
    %c0_71 = arith.constant 0 : index
    %c2_72 = arith.constant 2 : index
    %c1_73 = arith.constant 1 : index
    %74 = vector.load %arg15[%c0_71, %c2_72, %c1_73] : memref<4x10x10xf32, #tpu.memory_space<vmem>>, vector<4x8x8xf32>
    %75 = vector.extract_strided_slice %27 {offsets = [7, 0, 0, 0], sizes = [1, 4, 1, 1], strides = [1, 1, 1, 1]} : vector<9x4x1x1xf32> to vector<1x4x1x1xf32>
    %76 = vector.shape_cast %75 : vector<1x4x1x1xf32> to vector<4x1x1xf32>
    %77 = vector.broadcast %76 : vector<4x1x1xf32> to vector<4x8x8xf32>
    %78 = arith.mulf %74, %77 : vector<4x8x8xf32>
    %79 = arith.addf %73, %78 : vector<4x8x8xf32>
    %c0_74 = arith.constant 0 : index
    %c2_75 = arith.constant 2 : index
    %c2_76 = arith.constant 2 : index
    %80 = vector.load %arg15[%c0_74, %c2_75, %c2_76] : memref<4x10x10xf32, #tpu.memory_space<vmem>>, vector<4x8x8xf32>
    %81 = vector.extract_strided_slice %27 {offsets = [8, 0, 0, 0], sizes = [1, 4, 1, 1], strides = [1, 1, 1, 1]} : vector<9x4x1x1xf32> to vector<1x4x1x1xf32>
    %82 = vector.shape_cast %81 : vector<1x4x1x1xf32> to vector<4x1x1xf32>
    %83 = vector.broadcast %82 : vector<4x1x1xf32> to vector<4x8x8xf32>
    %84 = arith.mulf %80, %83 : vector<4x8x8xf32>
    %85 = arith.addf %79, %84 : vector<4x8x8xf32>
    %86 = vector.broadcast %28 : vector<4x1x1xf32> to vector<4x8x8xf32>
    %87 = arith.mulf %85, %86 : vector<4x8x8xf32>
    %88 = vector.broadcast %29 : vector<4x1x1xf32> to vector<4x8x8xf32>
    %89 = arith.addf %87, %88 : vector<4x8x8xf32>
    %cst_77 = arith.constant 0.000000e+00 : f32
    %90 = vector.broadcast %cst_77 : f32 to vector<4x8x8xf32>
    %91 = arith.maximumf %89, %90 : vector<4x8x8xf32>
    %cst_78 = arith.constant 0.000000e+00 : f32
    %92 = vector.broadcast %cst_78 : f32 to vector<8x8x8xf32>
    %93 = vector.extract_strided_slice %30 {offsets = [0, 0, 0, 0], sizes = [1, 8, 1, 1], strides = [1, 1, 1, 1]} : vector<4x8x1x1xf32> to vector<1x8x1x1xf32>
    %94 = vector.shape_cast %93 : vector<1x8x1x1xf32> to vector<8x1x1xf32>
    %95 = vector.extract_strided_slice %91 {offsets = [0, 0, 0], sizes = [1, 8, 8], strides = [1, 1, 1]} : vector<4x8x8xf32> to vector<1x8x8xf32>
    %96 = vector.shape_cast %95 : vector<1x8x8xf32> to vector<8x8xf32>
    %97 = vector.shape_cast %96 : vector<8x8xf32> to vector<1x8x8xf32>
    %98 = vector.broadcast %94 : vector<8x1x1xf32> to vector<8x8x8xf32>
    %99 = vector.broadcast %97 : vector<1x8x8xf32> to vector<8x8x8xf32>
    %100 = arith.mulf %98, %99 : vector<8x8x8xf32>
    %101 = arith.addf %92, %100 : vector<8x8x8xf32>
    %102 = vector.extract_strided_slice %30 {offsets = [1, 0, 0, 0], sizes = [1, 8, 1, 1], strides = [1, 1, 1, 1]} : vector<4x8x1x1xf32> to vector<1x8x1x1xf32>
    %103 = vector.shape_cast %102 : vector<1x8x1x1xf32> to vector<8x1x1xf32>
    %104 = vector.extract_strided_slice %91 {offsets = [1, 0, 0], sizes = [1, 8, 8], strides = [1, 1, 1]} : vector<4x8x8xf32> to vector<1x8x8xf32>
    %105 = vector.shape_cast %104 : vector<1x8x8xf32> to vector<8x8xf32>
    %106 = vector.shape_cast %105 : vector<8x8xf32> to vector<1x8x8xf32>
    %107 = vector.broadcast %103 : vector<8x1x1xf32> to vector<8x8x8xf32>
    %108 = vector.broadcast %106 : vector<1x8x8xf32> to vector<8x8x8xf32>
    %109 = arith.mulf %107, %108 : vector<8x8x8xf32>
    %110 = arith.addf %101, %109 : vector<8x8x8xf32>
    %111 = vector.extract_strided_slice %30 {offsets = [2, 0, 0, 0], sizes = [1, 8, 1, 1], strides = [1, 1, 1, 1]} : vector<4x8x1x1xf32> to vector<1x8x1x1xf32>
    %112 = vector.shape_cast %111 : vector<1x8x1x1xf32> to vector<8x1x1xf32>
    %113 = vector.extract_strided_slice %91 {offsets = [2, 0, 0], sizes = [1, 8, 8], strides = [1, 1, 1]} : vector<4x8x8xf32> to vector<1x8x8xf32>
    %114 = vector.shape_cast %113 : vector<1x8x8xf32> to vector<8x8xf32>
    %115 = vector.shape_cast %114 : vector<8x8xf32> to vector<1x8x8xf32>
    %116 = vector.broadcast %112 : vector<8x1x1xf32> to vector<8x8x8xf32>
    %117 = vector.broadcast %115 : vector<1x8x8xf32> to vector<8x8x8xf32>
    %118 = arith.mulf %116, %117 : vector<8x8x8xf32>
    %119 = arith.addf %110, %118 : vector<8x8x8xf32>
    %120 = vector.extract_strided_slice %30 {offsets = [3, 0, 0, 0], sizes = [1, 8, 1, 1], strides = [1, 1, 1, 1]} : vector<4x8x1x1xf32> to vector<1x8x1x1xf32>
    %121 = vector.shape_cast %120 : vector<1x8x1x1xf32> to vector<8x1x1xf32>
    %122 = vector.extract_strided_slice %91 {offsets = [3, 0, 0], sizes = [1, 8, 8], strides = [1, 1, 1]} : vector<4x8x8xf32> to vector<1x8x8xf32>
    %123 = vector.shape_cast %122 : vector<1x8x8xf32> to vector<8x8xf32>
    %124 = vector.shape_cast %123 : vector<8x8xf32> to vector<1x8x8xf32>
    %125 = vector.broadcast %121 : vector<8x1x1xf32> to vector<8x8x8xf32>
    %126 = vector.broadcast %124 : vector<1x8x8xf32> to vector<8x8x8xf32>
    %127 = arith.mulf %125, %126 : vector<8x8x8xf32>
    %128 = arith.addf %119, %127 : vector<8x8x8xf32>
    %129 = vector.broadcast %31 : vector<8x1x1xf32> to vector<8x8x8xf32>
    %130 = arith.mulf %128, %129 : vector<8x8x8xf32>
    %131 = vector.broadcast %32 : vector<8x1x1xf32> to vector<8x8x8xf32>
    %132 = arith.addf %130, %131 : vector<8x8x8xf32>
    %cst_79 = arith.constant 0.000000e+00 : f32
    %133 = vector.broadcast %cst_79 : f32 to vector<8x8x8xf32>
    %134 = arith.maximumf %132, %133 : vector<8x8x8xf32>
    %c0_80 = arith.constant 0 : index
    %c1_81 = arith.constant 1 : index
    %c1_82 = arith.constant 1 : index
    %135 = vector.load %arg16[%c0_80, %c1_81, %c1_82] : memref<8x10x10xf32, #tpu.memory_space<vmem>>, vector<8x8x8xf32>
    tpu.vector_store %arg16[%c0_80, %c1_81, %c1_82], %134 {strides = array<i32>} : memref<8x10x10xf32, #tpu.memory_space<vmem>>, vector<8x8x8xf32>,
    %c0_83 = arith.constant 0 : index
    %c0_84 = arith.constant 0 : index
    %c0_85 = arith.constant 0 : index
    %c0_86 = arith.constant 0 : index
    %136 = vector.load %arg8[%c0_83, %c0_84, %c0_85, %c0_86] : memref<9x8x1x1xf32, #tpu.memory_space<vmem>>, vector<9x8x1x1xf32>
    %c0_87 = arith.constant 0 : index
    %c0_88 = arith.constant 0 : index
    %c0_89 = arith.constant 0 : index
    %137 = vector.load %arg9[%c0_87, %c0_88, %c0_89] : memref<8x1x1xf32, #tpu.memory_space<vmem>>, vector<8x1x1xf32>
    %c0_90 = arith.constant 0 : index
    %c0_91 = arith.constant 0 : index
    %c0_92 = arith.constant 0 : index
    %138 = vector.load %arg10[%c0_90, %c0_91, %c0_92] : memref<8x1x1xf32, #tpu.memory_space<vmem>>, vector<8x1x1xf32>
    %c0_93 = arith.constant 0 : index
    %c0_94 = arith.constant 0 : index
    %c0_95 = arith.constant 0 : index
    %c0_96 = arith.constant 0 : index
    %139 = vector.load %arg11[%c0_93, %c0_94, %c0_95, %c0_96] : memref<8x8x1x1xf32, #tpu.memory_space<vmem>>, vector<8x8x1x1xf32>
    %c0_97 = arith.constant 0 : index
    %c0_98 = arith.constant 0 : index
    %c0_99 = arith.constant 0 : index
    %140 = vector.load %arg12[%c0_97, %c0_98, %c0_99] : memref<8x1x1xf32, #tpu.memory_space<vmem>>, vector<8x1x1xf32>
    %c0_100 = arith.constant 0 : index
    %c0_101 = arith.constant 0 : index
    %c0_102 = arith.constant 0 : index
    %141 = vector.load %arg13[%c0_100, %c0_101, %c0_102] : memref<8x1x1xf32, #tpu.memory_space<vmem>>, vector<8x1x1xf32>
    %c0_103 = arith.constant 0 : index
    %c0_104 = arith.constant 0 : index
    %c0_105 = arith.constant 0 : index
    %142 = vector.load %arg16[%c0_103, %c0_104, %c0_105] : memref<8x10x10xf32, #tpu.memory_space<vmem>>, vector<8x8x8xf32>
    %143 = vector.extract_strided_slice %136 {offsets = [0, 0, 0, 0], sizes = [1, 8, 1, 1], strides = [1, 1, 1, 1]} : vector<9x8x1x1xf32> to vector<1x8x1x1xf32>
    %144 = vector.shape_cast %143 : vector<1x8x1x1xf32> to vector<8x1x1xf32>
    %145 = vector.broadcast %144 : vector<8x1x1xf32> to vector<8x8x8xf32>
    %146 = arith.mulf %142, %145 : vector<8x8x8xf32>
    %c0_106 = arith.constant 0 : index
    %c0_107 = arith.constant 0 : index
    %c1_108 = arith.constant 1 : index
    %147 = vector.load %arg16[%c0_106, %c0_107, %c1_108] : memref<8x10x10xf32, #tpu.memory_space<vmem>>, vector<8x8x8xf32>
    %148 = vector.extract_strided_slice %136 {offsets = [1, 0, 0, 0], sizes = [1, 8, 1, 1], strides = [1, 1, 1, 1]} : vector<9x8x1x1xf32> to vector<1x8x1x1xf32>
    %149 = vector.shape_cast %148 : vector<1x8x1x1xf32> to vector<8x1x1xf32>
    %150 = vector.broadcast %149 : vector<8x1x1xf32> to vector<8x8x8xf32>
    %151 = arith.mulf %147, %150 : vector<8x8x8xf32>
    %152 = arith.addf %146, %151 : vector<8x8x8xf32>
    %c0_109 = arith.constant 0 : index
    %c0_110 = arith.constant 0 : index
    %c2_111 = arith.constant 2 : index
    %153 = vector.load %arg16[%c0_109, %c0_110, %c2_111] : memref<8x10x10xf32, #tpu.memory_space<vmem>>, vector<8x8x8xf32>
    %154 = vector.extract_strided_slice %136 {offsets = [2, 0, 0, 0], sizes = [1, 8, 1, 1], strides = [1, 1, 1, 1]} : vector<9x8x1x1xf32> to vector<1x8x1x1xf32>
    %155 = vector.shape_cast %154 : vector<1x8x1x1xf32> to vector<8x1x1xf32>
    %156 = vector.broadcast %155 : vector<8x1x1xf32> to vector<8x8x8xf32>
    %157 = arith.mulf %153, %156 : vector<8x8x8xf32>
    %158 = arith.addf %152, %157 : vector<8x8x8xf32>
    %c0_112 = arith.constant 0 : index
    %c1_113 = arith.constant 1 : index
    %c0_114 = arith.constant 0 : index
    %159 = vector.load %arg16[%c0_112, %c1_113, %c0_114] : memref<8x10x10xf32, #tpu.memory_space<vmem>>, vector<8x8x8xf32>
    %160 = vector.extract_strided_slice %136 {offsets = [3, 0, 0, 0], sizes = [1, 8, 1, 1], strides = [1, 1, 1, 1]} : vector<9x8x1x1xf32> to vector<1x8x1x1xf32>
    %161 = vector.shape_cast %160 : vector<1x8x1x1xf32> to vector<8x1x1xf32>
    %162 = vector.broadcast %161 : vector<8x1x1xf32> to vector<8x8x8xf32>
    %163 = arith.mulf %159, %162 : vector<8x8x8xf32>
    %164 = arith.addf %158, %163 : vector<8x8x8xf32>
    %c0_115 = arith.constant 0 : index
    %c1_116 = arith.constant 1 : index
    %c1_117 = arith.constant 1 : index
    %165 = vector.load %arg16[%c0_115, %c1_116, %c1_117] : memref<8x10x10xf32, #tpu.memory_space<vmem>>, vector<8x8x8xf32>
    %166 = vector.extract_strided_slice %136 {offsets = [4, 0, 0, 0], sizes = [1, 8, 1, 1], strides = [1, 1, 1, 1]} : vector<9x8x1x1xf32> to vector<1x8x1x1xf32>
    %167 = vector.shape_cast %166 : vector<1x8x1x1xf32> to vector<8x1x1xf32>
    %168 = vector.broadcast %167 : vector<8x1x1xf32> to vector<8x8x8xf32>
    %169 = arith.mulf %165, %168 : vector<8x8x8xf32>
    %170 = arith.addf %164, %169 : vector<8x8x8xf32>
    %c0_118 = arith.constant 0 : index
    %c1_119 = arith.constant 1 : index
    %c2_120 = arith.constant 2 : index
    %171 = vector.load %arg16[%c0_118, %c1_119, %c2_120] : memref<8x10x10xf32, #tpu.memory_space<vmem>>, vector<8x8x8xf32>
    %172 = vector.extract_strided_slice %136 {offsets = [5, 0, 0, 0], sizes = [1, 8, 1, 1], strides = [1, 1, 1, 1]} : vector<9x8x1x1xf32> to vector<1x8x1x1xf32>
    %173 = vector.shape_cast %172 : vector<1x8x1x1xf32> to vector<8x1x1xf32>
    %174 = vector.broadcast %173 : vector<8x1x1xf32> to vector<8x8x8xf32>
    %175 = arith.mulf %171, %174 : vector<8x8x8xf32>
    %176 = arith.addf %170, %175 : vector<8x8x8xf32>
    %c0_121 = arith.constant 0 : index
    %c2_122 = arith.constant 2 : index
    %c0_123 = arith.constant 0 : index
    %177 = vector.load %arg16[%c0_121, %c2_122, %c0_123] : memref<8x10x10xf32, #tpu.memory_space<vmem>>, vector<8x8x8xf32>
    %178 = vector.extract_strided_slice %136 {offsets = [6, 0, 0, 0], sizes = [1, 8, 1, 1], strides = [1, 1, 1, 1]} : vector<9x8x1x1xf32> to vector<1x8x1x1xf32>
    %179 = vector.shape_cast %178 : vector<1x8x1x1xf32> to vector<8x1x1xf32>
    %180 = vector.broadcast %179 : vector<8x1x1xf32> to vector<8x8x8xf32>
    %181 = arith.mulf %177, %180 : vector<8x8x8xf32>
    %182 = arith.addf %176, %181 : vector<8x8x8xf32>
    %c0_124 = arith.constant 0 : index
    %c2_125 = arith.constant 2 : index
    %c1_126 = arith.constant 1 : index
    %183 = vector.load %arg16[%c0_124, %c2_125, %c1_126] : memref<8x10x10xf32, #tpu.memory_space<vmem>>, vector<8x8x8xf32>
    %184 = vector.extract_strided_slice %136 {offsets = [7, 0, 0, 0], sizes = [1, 8, 1, 1], strides = [1, 1, 1, 1]} : vector<9x8x1x1xf32> to vector<1x8x1x1xf32>
    %185 = vector.shape_cast %184 : vector<1x8x1x1xf32> to vector<8x1x1xf32>
    %186 = vector.broadcast %185 : vector<8x1x1xf32> to vector<8x8x8xf32>
    %187 = arith.mulf %183, %186 : vector<8x8x8xf32>
    %188 = arith.addf %182, %187 : vector<8x8x8xf32>
    %c0_127 = arith.constant 0 : index
    %c2_128 = arith.constant 2 : index
    %c2_129 = arith.constant 2 : index
    %189 = vector.load %arg16[%c0_127, %c2_128, %c2_129] : memref<8x10x10xf32, #tpu.memory_space<vmem>>, vector<8x8x8xf32>
    %190 = vector.extract_strided_slice %136 {offsets = [8, 0, 0, 0], sizes = [1, 8, 1, 1], strides = [1, 1, 1, 1]} : vector<9x8x1x1xf32> to vector<1x8x1x1xf32>
    %191 = vector.shape_cast %190 : vector<1x8x1x1xf32> to vector<8x1x1xf32>
    %192 = vector.broadcast %191 : vector<8x1x1xf32> to vector<8x8x8xf32>
    %193 = arith.mulf %189, %192 : vector<8x8x8xf32>
    %194 = arith.addf %188, %193 : vector<8x8x8xf32>
    %195 = vector.broadcast %137 : vector<8x1x1xf32> to vector<8x8x8xf32>
    %196 = arith.mulf %194, %195 : vector<8x8x8xf32>
    %197 = vector.broadcast %138 : vector<8x1x1xf32> to vector<8x8x8xf32>
    %198 = arith.addf %196, %197 : vector<8x8x8xf32>
    %cst_130 = arith.constant 0.000000e+00 : f32
    %199 = vector.broadcast %cst_130 : f32 to vector<8x8x8xf32>
    %200 = arith.maximumf %198, %199 : vector<8x8x8xf32>
    %cst_131 = arith.constant 0.000000e+00 : f32
    %201 = vector.broadcast %cst_131 : f32 to vector<8x8x8xf32>
    %202 = vector.extract_strided_slice %139 {offsets = [0, 0, 0, 0], sizes = [1, 8, 1, 1], strides = [1, 1, 1, 1]} : vector<8x8x1x1xf32> to vector<1x8x1x1xf32>
    %203 = vector.shape_cast %202 : vector<1x8x1x1xf32> to vector<8x1x1xf32>
    %204 = vector.extract_strided_slice %200 {offsets = [0, 0, 0], sizes = [1, 8, 8], strides = [1, 1, 1]} : vector<8x8x8xf32> to vector<1x8x8xf32>
    %205 = vector.shape_cast %204 : vector<1x8x8xf32> to vector<8x8xf32>
    %206 = vector.shape_cast %205 : vector<8x8xf32> to vector<1x8x8xf32>
    %207 = vector.broadcast %203 : vector<8x1x1xf32> to vector<8x8x8xf32>
    %208 = vector.broadcast %206 : vector<1x8x8xf32> to vector<8x8x8xf32>
    %209 = arith.mulf %207, %208 : vector<8x8x8xf32>
    %210 = arith.addf %201, %209 : vector<8x8x8xf32>
    %211 = vector.extract_strided_slice %139 {offsets = [1, 0, 0, 0], sizes = [1, 8, 1, 1], strides = [1, 1, 1, 1]} : vector<8x8x1x1xf32> to vector<1x8x1x1xf32>
    %212 = vector.shape_cast %211 : vector<1x8x1x1xf32> to vector<8x1x1xf32>
    %213 = vector.extract_strided_slice %200 {offsets = [1, 0, 0], sizes = [1, 8, 8], strides = [1, 1, 1]} : vector<8x8x8xf32> to vector<1x8x8xf32>
    %214 = vector.shape_cast %213 : vector<1x8x8xf32> to vector<8x8xf32>
    %215 = vector.shape_cast %214 : vector<8x8xf32> to vector<1x8x8xf32>
    %216 = vector.broadcast %212 : vector<8x1x1xf32> to vector<8x8x8xf32>
    %217 = vector.broadcast %215 : vector<1x8x8xf32> to vector<8x8x8xf32>
    %218 = arith.mulf %216, %217 : vector<8x8x8xf32>
    %219 = arith.addf %210, %218 : vector<8x8x8xf32>
    %220 = vector.extract_strided_slice %139 {offsets = [2, 0, 0, 0], sizes = [1, 8, 1, 1], strides = [1, 1, 1, 1]} : vector<8x8x1x1xf32> to vector<1x8x1x1xf32>
    %221 = vector.shape_cast %220 : vector<1x8x1x1xf32> to vector<8x1x1xf32>
    %222 = vector.extract_strided_slice %200 {offsets = [2, 0, 0], sizes = [1, 8, 8], strides = [1, 1, 1]} : vector<8x8x8xf32> to vector<1x8x8xf32>
    %223 = vector.shape_cast %222 : vector<1x8x8xf32> to vector<8x8xf32>
    %224 = vector.shape_cast %223 : vector<8x8xf32> to vector<1x8x8xf32>
    %225 = vector.broadcast %221 : vector<8x1x1xf32> to vector<8x8x8xf32>
    %226 = vector.broadcast %224 : vector<1x8x8xf32> to vector<8x8x8xf32>
    %227 = arith.mulf %225, %226 : vector<8x8x8xf32>
    %228 = arith.addf %219, %227 : vector<8x8x8xf32>
    %229 = vector.extract_strided_slice %139 {offsets = [3, 0, 0, 0], sizes = [1, 8, 1, 1], strides = [1, 1, 1, 1]} : vector<8x8x1x1xf32> to vector<1x8x1x1xf32>
    %230 = vector.shape_cast %229 : vector<1x8x1x1xf32> to vector<8x1x1xf32>
    %231 = vector.extract_strided_slice %200 {offsets = [3, 0, 0], sizes = [1, 8, 8], strides = [1, 1, 1]} : vector<8x8x8xf32> to vector<1x8x8xf32>
    %232 = vector.shape_cast %231 : vector<1x8x8xf32> to vector<8x8xf32>
    %233 = vector.shape_cast %232 : vector<8x8xf32> to vector<1x8x8xf32>
    %234 = vector.broadcast %230 : vector<8x1x1xf32> to vector<8x8x8xf32>
    %235 = vector.broadcast %233 : vector<1x8x8xf32> to vector<8x8x8xf32>
    %236 = arith.mulf %234, %235 : vector<8x8x8xf32>
    %237 = arith.addf %228, %236 : vector<8x8x8xf32>
    %238 = vector.extract_strided_slice %139 {offsets = [4, 0, 0, 0], sizes = [1, 8, 1, 1], strides = [1, 1, 1, 1]} : vector<8x8x1x1xf32> to vector<1x8x1x1xf32>
    %239 = vector.shape_cast %238 : vector<1x8x1x1xf32> to vector<8x1x1xf32>
    %240 = vector.extract_strided_slice %200 {offsets = [4, 0, 0], sizes = [1, 8, 8], strides = [1, 1, 1]} : vector<8x8x8xf32> to vector<1x8x8xf32>
    %241 = vector.shape_cast %240 : vector<1x8x8xf32> to vector<8x8xf32>
    %242 = vector.shape_cast %241 : vector<8x8xf32> to vector<1x8x8xf32>
    %243 = vector.broadcast %239 : vector<8x1x1xf32> to vector<8x8x8xf32>
    %244 = vector.broadcast %242 : vector<1x8x8xf32> to vector<8x8x8xf32>
    %245 = arith.mulf %243, %244 : vector<8x8x8xf32>
    %246 = arith.addf %237, %245 : vector<8x8x8xf32>
    %247 = vector.extract_strided_slice %139 {offsets = [5, 0, 0, 0], sizes = [1, 8, 1, 1], strides = [1, 1, 1, 1]} : vector<8x8x1x1xf32> to vector<1x8x1x1xf32>
    %248 = vector.shape_cast %247 : vector<1x8x1x1xf32> to vector<8x1x1xf32>
    %249 = vector.extract_strided_slice %200 {offsets = [5, 0, 0], sizes = [1, 8, 8], strides = [1, 1, 1]} : vector<8x8x8xf32> to vector<1x8x8xf32>
    %250 = vector.shape_cast %249 : vector<1x8x8xf32> to vector<8x8xf32>
    %251 = vector.shape_cast %250 : vector<8x8xf32> to vector<1x8x8xf32>
    %252 = vector.broadcast %248 : vector<8x1x1xf32> to vector<8x8x8xf32>
    %253 = vector.broadcast %251 : vector<1x8x8xf32> to vector<8x8x8xf32>
    %254 = arith.mulf %252, %253 : vector<8x8x8xf32>
    %255 = arith.addf %246, %254 : vector<8x8x8xf32>
    %256 = vector.extract_strided_slice %139 {offsets = [6, 0, 0, 0], sizes = [1, 8, 1, 1], strides = [1, 1, 1, 1]} : vector<8x8x1x1xf32> to vector<1x8x1x1xf32>
    %257 = vector.shape_cast %256 : vector<1x8x1x1xf32> to vector<8x1x1xf32>
    %258 = vector.extract_strided_slice %200 {offsets = [6, 0, 0], sizes = [1, 8, 8], strides = [1, 1, 1]} : vector<8x8x8xf32> to vector<1x8x8xf32>
    %259 = vector.shape_cast %258 : vector<1x8x8xf32> to vector<8x8xf32>
    %260 = vector.shape_cast %259 : vector<8x8xf32> to vector<1x8x8xf32>
    %261 = vector.broadcast %257 : vector<8x1x1xf32> to vector<8x8x8xf32>
    %262 = vector.broadcast %260 : vector<1x8x8xf32> to vector<8x8x8xf32>
    %263 = arith.mulf %261, %262 : vector<8x8x8xf32>
    %264 = arith.addf %255, %263 : vector<8x8x8xf32>
    %265 = vector.extract_strided_slice %139 {offsets = [7, 0, 0, 0], sizes = [1, 8, 1, 1], strides = [1, 1, 1, 1]} : vector<8x8x1x1xf32> to vector<1x8x1x1xf32>
    %266 = vector.shape_cast %265 : vector<1x8x1x1xf32> to vector<8x1x1xf32>
    %267 = vector.extract_strided_slice %200 {offsets = [7, 0, 0], sizes = [1, 8, 8], strides = [1, 1, 1]} : vector<8x8x8xf32> to vector<1x8x8xf32>
    %268 = vector.shape_cast %267 : vector<1x8x8xf32> to vector<8x8xf32>
    %269 = vector.shape_cast %268 : vector<8x8xf32> to vector<1x8x8xf32>
    %270 = vector.broadcast %266 : vector<8x1x1xf32> to vector<8x8x8xf32>
    %271 = vector.broadcast %269 : vector<1x8x8xf32> to vector<8x8x8xf32>
    %272 = arith.mulf %270, %271 : vector<8x8x8xf32>
    %273 = arith.addf %264, %272 : vector<8x8x8xf32>
    %274 = vector.broadcast %140 : vector<8x1x1xf32> to vector<8x8x8xf32>
    %275 = arith.mulf %273, %274 : vector<8x8x8xf32>
    %276 = vector.broadcast %141 : vector<8x1x1xf32> to vector<8x8x8xf32>
    %277 = arith.addf %275, %276 : vector<8x8x8xf32>
    %cst_132 = arith.constant 0.000000e+00 : f32
    %278 = vector.broadcast %cst_132 : f32 to vector<8x8x8xf32>
    %279 = arith.maximumf %277, %278 : vector<8x8x8xf32>
    %c0_133 = arith.constant 0 : index
    %c0_134 = arith.constant 0 : index
    %c0_135 = arith.constant 0 : index
    %c0_136 = arith.constant 0 : index
    %280 = vector.load %arg14[%c0_133, %c0_134, %c0_135, %c0_136] : memref<1x8x8x8xf32, #tpu.memory_space<vmem>>, vector<1x8x8x8xf32>
    %281 = vector.shape_cast %280 : vector<1x8x8x8xf32> to vector<8x8x8xf32>
    %282 = vector.shape_cast %279 : vector<8x8x8xf32> to vector<1x8x8x8xf32>
    tpu.vector_store %arg14[%c0_133, %c0_134, %c0_135, %c0_136], %282 {strides = array<i32>} : memref<1x8x8x8xf32, #tpu.memory_space<vmem>>, vector<1x8x8x8xf32>,
    return
  }
  func.func @transform_0(%arg0: i32) -> (i32, i32, i32, i32) {
    %c0_i32 = arith.constant 0 : i32
    %c0_i32_0 = arith.constant 0 : i32
    %c0_i32_1 = arith.constant 0 : i32
    %c0_i32_2 = arith.constant 0 : i32
    return %arg0, %c0_i32, %c0_i32_0, %c0_i32_1 : i32, i32, i32, i32
  }
  func.func @transform_1(%arg0: i32) -> (i32, i32, i32, i32) {
    %c0_i32 = arith.constant 0 : i32
    %c0_i32_0 = arith.constant 0 : i32
    %c0_i32_1 = arith.constant 0 : i32
    %c0_i32_2 = arith.constant 0 : i32
    %c0_i32_3 = arith.constant 0 : i32
    return %c0_i32, %c0_i32_0, %c0_i32_1, %c0_i32_2 : i32, i32, i32, i32
  }
  func.func @transform_2(%arg0: i32) -> (i32, i32, i32) {
    %c0_i32 = arith.constant 0 : i32
    %c0_i32_0 = arith.constant 0 : i32
    %c0_i32_1 = arith.constant 0 : i32
    %c0_i32_2 = arith.constant 0 : i32
    return %c0_i32, %c0_i32_0, %c0_i32_1 : i32, i32, i32
  }
  func.func @transform_3(%arg0: i32) -> (i32, i32, i32) {
    %c0_i32 = arith.constant 0 : i32
    %c0_i32_0 = arith.constant 0 : i32
    %c0_i32_1 = arith.constant 0 : i32
    %c0_i32_2 = arith.constant 0 : i32
    return %c0_i32, %c0_i32_0, %c0_i32_1 : i32, i32, i32
  }
  func.func @transform_4(%arg0: i32) -> (i32, i32, i32, i32) {
    %c0_i32 = arith.constant 0 : i32
    %c0_i32_0 = arith.constant 0 : i32
    %c0_i32_1 = arith.constant 0 : i32
    %c0_i32_2 = arith.constant 0 : i32
    %c0_i32_3 = arith.constant 0 : i32
    return %c0_i32, %c0_i32_0, %c0_i32_1, %c0_i32_2 : i32, i32, i32, i32
  }
  func.func @transform_5(%arg0: i32) -> (i32, i32, i32) {
    %c0_i32 = arith.constant 0 : i32
    %c0_i32_0 = arith.constant 0 : i32
    %c0_i32_1 = arith.constant 0 : i32
    %c0_i32_2 = arith.constant 0 : i32
    return %c0_i32, %c0_i32_0, %c0_i32_1 : i32, i32, i32
  }
  func.func @transform_6(%arg0: i32) -> (i32, i32, i32) {
    %c0_i32 = arith.constant 0 : i32
    %c0_i32_0 = arith.constant 0 : i32
    %c0_i32_1 = arith.constant 0 : i32
    %c0_i32_2 = arith.constant 0 : i32
    return %c0_i32, %c0_i32_0, %c0_i32_1 : i32, i32, i32
  }
  func.func @transform_7(%arg0: i32) -> (i32, i32, i32, i32) {
    %c0_i32 = arith.constant 0 : i32
    %c0_i32_0 = arith.constant 0 : i32
    %c0_i32_1 = arith.constant 0 : i32
    %c0_i32_2 = arith.constant 0 : i32
    %c0_i32_3 = arith.constant 0 : i32
    return %c0_i32, %c0_i32_0, %c0_i32_1, %c0_i32_2 : i32, i32, i32, i32
  }
  func.func @transform_8(%arg0: i32) -> (i32, i32, i32) {
    %c0_i32 = arith.constant 0 : i32
    %c0_i32_0 = arith.constant 0 : i32
    %c0_i32_1 = arith.constant 0 : i32
    %c0_i32_2 = arith.constant 0 : i32
    return %c0_i32, %c0_i32_0, %c0_i32_1 : i32, i32, i32
  }
  func.func @transform_9(%arg0: i32) -> (i32, i32, i32) {
    %c0_i32 = arith.constant 0 : i32
    %c0_i32_0 = arith.constant 0 : i32
    %c0_i32_1 = arith.constant 0 : i32
    %c0_i32_2 = arith.constant 0 : i32
    return %c0_i32, %c0_i32_0, %c0_i32_1 : i32, i32, i32
  }
  func.func @transform_10(%arg0: i32) -> (i32, i32, i32, i32) {
    %c0_i32 = arith.constant 0 : i32
    %c0_i32_0 = arith.constant 0 : i32
    %c0_i32_1 = arith.constant 0 : i32
    %c0_i32_2 = arith.constant 0 : i32
    %c0_i32_3 = arith.constant 0 : i32
    return %c0_i32, %c0_i32_0, %c0_i32_1, %c0_i32_2 : i32, i32, i32, i32
  }
  func.func @transform_11(%arg0: i32) -> (i32, i32, i32) {
    %c0_i32 = arith.constant 0 : i32
    %c0_i32_0 = arith.constant 0 : i32
    %c0_i32_1 = arith.constant 0 : i32
    %c0_i32_2 = arith.constant 0 : i32
    return %c0_i32, %c0_i32_0, %c0_i32_1 : i32, i32, i32
  }
  func.func @transform_12(%arg0: i32) -> (i32, i32, i32) {
    %c0_i32 = arith.constant 0 : i32
    %c0_i32_0 = arith.constant 0 : i32
    %c0_i32_1 = arith.constant 0 : i32
    %c0_i32_2 = arith.constant 0 : i32
    return %c0_i32, %c0_i32_0, %c0_i32_1 : i32, i32, i32
  }
  func.func @transform_13(%arg0: i32) -> (i32, i32, i32, i32) {
    %c0_i32 = arith.constant 0 : i32
    %c0_i32_0 = arith.constant 0 : i32
    %c0_i32_1 = arith.constant 0 : i32
    %c0_i32_2 = arith.constant 0 : i32
    return %arg0, %c0_i32, %c0_i32_0, %c0_i32_1 : i32, i32, i32, i32
  }
}

</mosaic_0001>

<bundles_post_ra>
// kernel: down_dsc_forward.1
= control target key start
LH: loop header
LB: loop body
LE: loop exit
PB: predicated region body
PF: predicated region fallthrough
CT: control target
= control target key end

     0   :  { %s8788_s0 = inlined_call_operand.vmem [shape: f32[2,4,16,16], index: 0, kind: input, shape index: {}]   ;;  %s8789_s1 = inlined_call_operand.vmem [shape: f32[9,4,1,1], index: 1, kind: input, shape index: {}]   ;;  %s8790_s2 = inlined_call_operand.vmem [shape: f32[4,1,1], index: 2, kind: input, shape index: {}]   ;;  %s8791_s3 = inlined_call_operand.vmem [shape: f32[4,1,1], index: 3, kind: input, shape index: {}]   ;;  %s8792_s4 = inlined_call_operand.vmem [shape: f32[4,8,1,1], index: 4, kind: input, shape index: {}]   ;;  %s8793_s5 = inlined_call_operand.vmem [shape: f32[8,1,1], index: 5, kind: input, shape index: {}]   ;;  %s8794_s6 = inlined_call_operand.vmem [shape: f32[8,1,1], index: 6, kind: input, shape index: {}]   ;;  %s8795_s7 = inlined_call_operand.vmem [shape: f32[9,8,1,1], index: 7, kind: input, shape index: {}]   ;;  %s8796_s8 = inlined_call_operand.vmem [shape: f32[8,1,1], index: 8, kind: input, shape index: {}]   ;;  %s8797_s9 = inlined_call_operand.vmem [shape: f32[8,1,1], index: 9, kind: input, shape index: {}]   ;;  %s8798_s10 = inlined_call_operand.vmem [shape: f32[8,8,1,1], index: 10, kind: input, shape index: {}]   ;;  %s8799_s11 = inlined_call_operand.vmem [shape: f32[8,1,1], index: 11, kind: input, shape index: {}]   ;;  %s8800_s12 = inlined_call_operand.vmem [shape: f32[8,1,1], index: 12, kind: input, shape index: {}]   ;;  %s8801_s13 = inlined_call_operand.hbm [shape: f32[2,8,8,8], index: 13, kind: output, shape index: {}]  }
   0x1   :  { %8845 = sst [smem:[#allocation43_spill]] %s8788_s0 }
   0x2   :  { %8846 = sst [smem:[#allocation44_spill]] %s8789_s1 }
   0x3   :  { %18 = vsyncpa [#allocation5], 0 }
   0x4   :  { %20 = vsyncpa [#allocation5 + $0x1], 0  ;;  %s6424_s25 = smov 0   ;;  %s6426_s26 = smov 0  }
   0x5   :  { %s6428_s27 = smov 0   ;;  %s6430_s28 = smov 0  }
   0x6 LB: > { %8847 = sst [smem:[#allocation7_spill]] %s6332_s27  ;;  %s6445_s29 = sadd.s32 4294967295, %s6336_s28   ;;  %s6336_s28 = sphi %s6430_s28, %s8990_s28   ;;  %s6332_s27 = sphi %s6428_s27, %s8987_s27   ;;  %s6328_s26 = sphi %s6426_s26, %s8989_s26   ;;  %s6324_s25 = sphi %s6424_s25, %s8988_s25  }
   0x7   : > { %s5946_s30 = sadd.s32 4294967294, %s6336_s28   ;;  %s6449_s14 = sadd.s32 1, %s6336_s28  }
   0x8   : > { %s311_s15 = sadd.s32 1, %s6332_s27  ;;  %s308_s16 = ssub.s32 %s6336_s28, %s6449_s14 }
   0x9   : > { %p321_p0 = scmp.ne.s32.totalorder %s6332_s27, %s6328_s26  ;;  %p309_p1 = scmp.eq.s32.totalorder %s308_s16, 0 }
   0xa   : > { %p322_p2 = scmp.eq.s32.totalorder %s6445_s29, 1  ;;  %p327_p3 = scmp.ne.s32.totalorder %s6328_s26, %s6324_s25 }
   0xb   : > { %p328_p4 = scmp.eq.s32.totalorder %s5946_s30, 1  ;;  %p5949_p7 = scmp.ge.s32.totalorder %s6336_s28, 1 }
   0xc   : > { %s6460_s17 = scalar_select %p309_p1, %s6332_s27, %s311_s15  }
   0xd   : > { %p6462_p5 = por %p322_p2, %p321_p0  ;;  %p6466_p6 = por %p328_p4, %p327_p3 }
   0xe   : > { %8848 = sst [smem:[#allocation8_spill]] %s6460_s17  ;;  %p390_p8 = scmp.lt.s32.totalorder %s6336_s28, 3 }
  0x10   : > { %p391_p9 = pnand %p5949_p7, %p390_p8 }
  0x12   : > { %394 = sbr.rel (%p391_p9) target bundleno = 2159 (0x86f), region = 72 }
  0x17   : > { %p434_p10 = scmp.lt.s32.totalorder %s6445_s29, 1  ;;  %s8851_s0 = sld [smem:[#allocation43_spill]]  ;;  %v6345_v53 = vmov 1983009808   ;;  %v8805_v55 = vlaneseq  ;;  %v6346_v63 = vmov 1934713408  }
  0x18   : > { %s8836_s30 = smov 126   ;;  %s6339_s15 = smov 124   ;;  %v677_v54 = vunpack.c.l.s4 %v6345_v53  ;;  %vm448_vm0 = vcmask 7168   ;;  %vm453_vm1 = vcmask 80968   ;;  %vm439_vm2 = vcmask 73728  }
  0x19   : > { %s435_s20 = scalar_select %p434_p10, %s6445_s29, 1  ;;  %v6642_v58 = vshrl.u32 %v8805_v55, 7  ;;  %vm2373_vm3 = vcmask 1041409   ;;  %vm2375_vm4 = vcmask 1042434   ;;  %vm2377_vm5 = vcmask 1043459  }
  0x1a   : > { %s6340_s16 = smov 122   ;;  %s6343_s22 = smov 116   ;;  %v678_v57 = vunpack.c.0.s8 %v677_v54  ;;  %vm2379_vm6 = vcmask 1044484   ;;  %vm2381_vm7 = vcmask 1045509   ;;  %vm2383_vm8 = vcmask 1046534  }
  0x1b   : > { %s6218_s21 = sshll.u32 %s435_s20, 6  ;;  %s6341_s20 = smov 120   ;;  %8864 = vst [vmem:[#allocation21_spill] sm:$0xff] %v6642_v58  ;;  %vm2385_vm9 = vcmask 1047559   ;;  %vm2412_vm10 = vcmask 72712   ;;  %vm5861_vm11 = vcmask 64512  }
  0x1c   : > { %s6344_s23 = smov 114   ;;  %s8913_s1 = sld [smem:[#allocation44_spill]] }
  0x1d   : > { %s438_s24 = scalar_lea.vmem %s8851_s0, %s6218_s21  ;;  %s6342_s21 = smov 118  }
  0x1e   : > { %v6477_v0 = vld [vmem:[%s438_s24 + $0x10] sm:$0xff]  ;;  %v6479_v1 = vld [vmem:[%s438_s24] sm:$0xff]  ;;  %v6485_v2 = vld [vmem:[%s438_s24 + $0x18] sm:$0xff] }
  0x1f   : > { %510 = vrot.lane.b32.xlu1 %v6477_v0, %s8836_s30  ;;  %506 = vrot.lane.b32.xlu0 %v6479_v1, %s8836_s30  ;;  %v6487_v3 = vld [vmem:[%s438_s24 + $0x8] sm:$0xff]  ;;  %v6495_v5 = vld [vmem:[%s438_s24 + $0x20] sm:$0xff] }
  0x20   : > { %v6493_v4 = vld [vmem:[%s438_s24 + $0x28] sm:$0xff]  ;;  %v6501_v6 = vld [vmem:[%s438_s24 + $0x38] sm:$0xff]  ;;  %v6503_v7 = vld [vmem:[%s438_s24 + $0x30] sm:$0xff]  ;;  %s8838_s24 = smov 127  }
  0x21   : > { %8852 = vst [vmem:[#allocation9_spill] sm:$0xff] %v6501_v6  ;;  %8853 = vst [vmem:[#allocation10_spill] sm:$0xff] %v6503_v7 }
  0x23   : > { %512 = vrot.lane.b32.xlu1 %v6485_v2, %s8836_s30  ;;  %508 = vrot.lane.b32.xlu0 %v6487_v3, %s8836_s30 }
  0x27   : > { %516 = vrot.lane.b32.xlu1 %v6493_v4, %s8836_s30  ;;  %514 = vrot.lane.b32.xlu0 %v6495_v5, %s8836_s30 }
  0x2b   : > { %520 = vrot.lane.b32.xlu1 %v6501_v6, %s8836_s30  ;;  %518 = vrot.lane.b32.xlu0 %v6503_v7, %s8836_s30  ;;  %s6351_s30 = smov [#allocation4]  }
  0x2f   : > { %532 = vrot.lane.b32.xlu1 %v6487_v3, %s6339_s15  ;;  %530 = vrot.lane.b32.xlu0 %v6479_v1, %s6339_s15 }
  0x33   : > { %536 = vrot.lane.b32.xlu1 %v6485_v2, %s6339_s15  ;;  %534 = vrot.lane.b32.xlu0 %v6477_v0, %s6339_s15 }
  0x37   : > { %540 = vrot.lane.b32.xlu1 %v6493_v4, %s6339_s15  ;;  %538 = vrot.lane.b32.xlu0 %v6495_v5, %s6339_s15 }
  0x3b   : > { %544 = vrot.lane.b32.xlu1 %v6501_v6, %s6339_s15  ;;  %542 = vrot.lane.b32.xlu0 %v6503_v7, %s6339_s15 }
  0x3f   : > { %556 = vrot.lane.b32.xlu1 %v6487_v3, %s6340_s16  ;;  %554 = vrot.lane.b32.xlu0 %v6479_v1, %s6340_s16 }
  0x43   : > { %560 = vrot.lane.b32.xlu1 %v6485_v2, %s6340_s16  ;;  %558 = vrot.lane.b32.xlu0 %v6477_v0, %s6340_s16 }
  0x47   : > { %564 = vrot.lane.b32.xlu1 %v6493_v4, %s6340_s16  ;;  %562 = vrot.lane.b32.xlu0 %v6495_v5, %s6340_s16 }
  0x4b   : > { %568 = vrot.lane.b32.xlu1 %v6501_v6, %s6340_s16  ;;  %566 = vrot.lane.b32.xlu0 %v6503_v7, %s6340_s16  ;;  %s6219_s16 = sshll.u32 %s6445_s29, 10 }
  0x4f   : > { %580 = vrot.lane.b32.xlu1 %v6487_v3, %s6341_s20  ;;  %578 = vrot.lane.b32.xlu0 %v6479_v1, %s6341_s20 }
  0x53   : > { %584 = vrot.lane.b32.xlu1 %v6485_v2, %s6341_s20  ;;  %582 = vrot.lane.b32.xlu0 %v6477_v0, %s6341_s20 }
  0x57   : > { %588 = vrot.lane.b32.xlu1 %v6493_v4, %s6341_s20  ;;  %586 = vrot.lane.b32.xlu0 %v6495_v5, %s6341_s20 }
  0x5b   : > { %592 = vrot.lane.b32.xlu1 %v6501_v6, %s6341_s20  ;;  %590 = vrot.lane.b32.xlu0 %v6503_v7, %s6341_s20  ;;  %s8916_s20 = smov 127  }
  0x5f   : > { %604 = vrot.lane.b32.xlu1 %v6487_v3, %s6342_s21  ;;  %602 = vrot.lane.b32.xlu0 %v6479_v1, %s6342_s21 }
  0x63   : > { %608 = vrot.lane.b32.xlu1 %v6485_v2, %s6342_s21  ;;  %606 = vrot.lane.b32.xlu0 %v6477_v0, %s6342_s21 }
  0x67   : > { %612 = vrot.lane.b32.xlu1 %v6493_v4, %s6342_s21  ;;  %610 = vrot.lane.b32.xlu0 %v6495_v5, %s6342_s21 }
  0x6b   : > { %616 = vrot.lane.b32.xlu1 %v6501_v6, %s6342_s21  ;;  %614 = vrot.lane.b32.xlu0 %v6503_v7, %s6342_s21  ;;  %s8917_s21 = smov 126  }
  0x6f   : > { %628 = vrot.lane.b32.xlu1 %v6487_v3, %s6343_s22  ;;  %626 = vrot.lane.b32.xlu0 %v6479_v1, %s6343_s22 }
  0x73   : > { %632 = vrot.lane.b32.xlu1 %v6485_v2, %s6343_s22  ;;  %630 = vrot.lane.b32.xlu0 %v6477_v0, %s6343_s22 }
  0x77   : > { %636 = vrot.lane.b32.xlu1 %v6493_v4, %s6343_s22  ;;  %634 = vrot.lane.b32.xlu0 %v6495_v5, %s6343_s22 }
  0x7b   : > { %640 = vrot.lane.b32.xlu1 %v6501_v6, %s6343_s22  ;;  %638 = vrot.lane.b32.xlu0 %v6503_v7, %s6343_s22 }
  0x7f   : > { %652 = vrot.lane.b32.xlu1 %v6487_v3, %s6344_s23  ;;  %650 = vrot.lane.b32.xlu0 %v6479_v1, %s6344_s23 }
  0x83   : > { %656 = vrot.lane.b32.xlu1 %v6485_v2, %s6344_s23  ;;  %654 = vrot.lane.b32.xlu0 %v6477_v0, %s6344_s23 }
  0x87   : > { %660 = vrot.lane.b32.xlu1 %v6493_v4, %s6344_s23  ;;  %658 = vrot.lane.b32.xlu0 %v6495_v5, %s6344_s23 }
  0x8b   : > { %664 = vrot.lane.b32.xlu1 %v6501_v6, %s6344_s23  ;;  %662 = vrot.lane.b32.xlu0 %v6503_v7, %s6344_s23 }
  0x91   : > { %v6557_v8 = vpop.permute.xlu1 %510  ;;  %v6559_v9 = vpop.permute.xlu0 %506 }
  0x95   : > { %v6561_v10 = vpop.permute.xlu1 %512  ;;  %v6563_v11 = vpop.permute.xlu0 %508 }
  0x99   : > { %v6565_v12 = vpop.permute.xlu1 %516  ;;  %v6567_v13 = vpop.permute.xlu0 %514 }
  0x9d   : > { %v6569_v14 = vpop.permute.xlu1 %520  ;;  %v6571_v15 = vpop.permute.xlu0 %518 }
  0x9e   : > { %8854 = vst [vmem:[#allocation11_spill] sm:$0xff] %v6569_v14  ;;  %8855 = vst [vmem:[#allocation12_spill] sm:$0xff] %v6571_v15  ;;  %v6648_v14 = vsub.s32 %v678_v57, %v6642_v58 }
  0xa1   : > { %v6573_v16 = vpop.permute.xlu1 %532  ;;  %v6575_v17 = vpop.permute.xlu0 %530 }
  0xa2   : > { %v674_v53 = vcombine.low %v6479_v1, %v6575_v17 }
  0xa4   : > { %v682_v7 = vrot.slane %v674_v53, %v6648_v14 }
  0xa5   : > { %v6577_v18 = vpop.permute.xlu1 %536  ;;  %v6579_v19 = vpop.permute.xlu0 %534 }
  0xa9   : > { %v6581_v20 = vpop.permute.xlu1 %540  ;;  %v6583_v21 = vpop.permute.xlu0 %538 }
  0xad   : > { %v6585_v22 = vpop.permute.xlu1 %544  ;;  %v6587_v23 = vpop.permute.xlu0 %542 }
  0xae   : > { %8856 = vst [vmem:[#allocation13_spill] sm:$0xff] %v6585_v22  ;;  %8857 = vst [vmem:[#allocation14_spill] sm:$0xff] %v6587_v23 }
  0xb1   : > { %v6589_v24 = vpop.permute.xlu1 %556  ;;  %v555_v25 = vpop.permute.xlu0 %554 }
  0xb2   : > { %v690_v60 = vcombine.low %v6559_v9, %v555_v25  ;;  %v691_v57 = vcombine.high %v6559_v9, %v555_v25 }
  0xb4   : > { %v698_v55 = vrot.slane %v690_v60, %v6648_v14  ;;  %v705_v53 = vrot.slane %v691_v57, %v6648_v14 }
  0xb5   : > { %v6591_v26 = vpop.permute.xlu1 %560  ;;  %v6593_v27 = vpop.permute.xlu0 %558 }
  0xb9   : > { %v6595_v28 = vpop.permute.xlu1 %564  ;;  %v6597_v29 = vpop.permute.xlu0 %562 }
  0xbd   : > { %v6599_v30 = vpop.permute.xlu1 %568  ;;  %v6601_v31 = vpop.permute.xlu0 %566 }
  0xbe   : > { %8858 = vst [vmem:[#allocation15_spill] sm:$0xff] %v6599_v30  ;;  %8859 = vst [vmem:[#allocation16_spill] sm:$0xff] %v6601_v31 }
  0xc1   : > { %v6603_v32 = vpop.permute.xlu1 %580  ;;  %v579_v33 = vpop.permute.xlu0 %578 }
  0xc5   : > { %v6605_v34 = vpop.permute.xlu1 %584  ;;  %v6607_v35 = vpop.permute.xlu0 %582 }
  0xc9   : > { %v6609_v36 = vpop.permute.xlu1 %588  ;;  %v6611_v37 = vpop.permute.xlu0 %586 }
  0xcd   : > { %v6613_v38 = vpop.permute.xlu1 %592  ;;  %v6615_v39 = vpop.permute.xlu0 %590 }
  0xce   : > { %8860 = vst [vmem:[#allocation17_spill] sm:$0xff] %v6613_v38  ;;  %8861 = vst [vmem:[#allocation18_spill] sm:$0xff] %v6615_v39  ;;  %v741_v38 = vunpack.c.l.s4 %v6346_v63  ;;  %v738_v39 = vcombine.low %v682_v7, %v698_v55 }
  0xd1   : > { %v6617_v40 = vpop.permute.xlu1 %604  ;;  %v603_v41 = vpop.permute.xlu0 %602 }
  0xd5   : > { %v6619_v42 = vpop.permute.xlu1 %608  ;;  %v6621_v43 = vpop.permute.xlu0 %606 }
  0xd9   : > { %v6623_v44 = vpop.permute.xlu1 %612  ;;  %v6625_v45 = vpop.permute.xlu0 %610 }
  0xdd   : > { %v6627_v46 = vpop.permute.xlu1 %616  ;;  %v6629_v47 = vpop.permute.xlu0 %614 }
  0xde   : > { %8862 = vst [vmem:[#allocation19_spill] sm:$0xff] %v6627_v46  ;;  %v742_v46 = vunpack.c.0.s8 %v741_v38 }
  0xe0   : > { %v6660_v15 = vsub.s32 %v742_v46, %v6642_v58 }
  0xe1   : > { %v627_v48 = vpop.permute.xlu0 %626  ;;  %v6631_v49 = vpop.permute.xlu1 %628 }
  0xe2   : > { %v706_v61 = vcombine.low %v579_v33, %v627_v48  ;;  %v746_v9 = vrot.slane %v738_v39, %v6660_v15  ;;  %v842_v39 = vcombine.low %v6603_v32, %v6631_v49 }
  0xe4   : > { %v714_v6 = vrot.slane %v706_v61, %v6648_v14  ;;  %v850_v58 = vrot.slane %v842_v39, %v6648_v14 }
  0xe5   : > { %v6633_v50 = vpop.permute.xlu0 %630  ;;  %v6635_v51 = vpop.permute.xlu1 %632 }
  0xe9   : > { %v6637_v52 = vpop.permute.xlu0 %634  ;;  %v6644_v59 = vpop.permute.xlu1 %636 }
  0xed   : > { %v6639_v56 = vpop.permute.xlu0 %638  ;;  %v6655_v22 = vpop.permute.xlu1 %640 }
  0xee   : > { %8863 = vst [vmem:[#allocation20_spill] sm:$0xff] %v6639_v56  ;;  %v707_v56 = vcombine.high %v579_v33, %v627_v48 }
  0xf1   : > { %v651_v62 = vpop.permute.xlu0 %650  ;;  %v653_v60 = vpop.permute.xlu1 %652 }
  0xf2   : > { %v722_v30 = vcombine.low %v603_v41, %v651_v62  ;;  %v723_v23 = vcombine.high %v603_v41, %v651_v62  ;;  %v739_v41 = vcombine.high %v682_v7, %v698_v55  ;;  %v721_v62 = vrot.slane %v707_v56, %v6648_v14 }
  0xf3   : > { %v858_v33 = vcombine.low %v6617_v40, %v653_v60  ;;  %v826_v7 = vcombine.low %v6563_v11, %v6589_v24 }
  0xf4   : > { %v730_v54 = vrot.slane %v722_v30, %v6648_v14  ;;  %v675_v30 = vcombine.high %v6479_v1, %v6575_v17  ;;  %v737_v61 = vrot.slane %v723_v23, %v6648_v14  ;;  %v810_v17 = vcombine.low %v6487_v3, %v6573_v16 }
  0xf5   : > { %v753_v55 = vrot.slane %v739_v41, %v6660_v15 }
  0xf6   : > { %v770_v63 = vcombine.low %v714_v6, %v730_v54  ;;  %v771_v31 = vcombine.high %v714_v6, %v730_v54  ;;  %v689_v25 = vrot.slane %v675_v30, %v6648_v14  ;;  %v786_v46 = vcombine.low %v721_v62, %v737_v61 }
  0xf7   : > { %v787_v56 = vcombine.high %v721_v62, %v737_v61  ;;  %v818_v57 = vrot.slane %v810_v17, %v6648_v14  ;;  %v859_v61 = vcombine.high %v6617_v40, %v653_v60 }
  0xf8   : > { %v778_v38 = vrot.slane %v770_v63, %v6660_v15  ;;  %v785_v6 = vrot.slane %v771_v31, %v6660_v15  ;;  %v754_v23 = vcombine.low %v689_v25, %v705_v53  ;;  %v866_v31 = vrot.slane %v858_v33, %v6648_v14 }
  0xf9   : > { %v794_v63 = vrot.slane %v786_v46, %v6660_v15  ;;  %v801_v46 = vrot.slane %v787_v56, %v6660_v15  ;;  %v873_v60 = vrot.slane %v859_v61, %v6648_v14  ;;  %v978_v61 = vcombine.low %v6607_v35, %v6633_v50 }
  0xfa   : > { %v6671_v48 = vcombine.high %v746_v9, %v778_v38  ;;  %v6673_v1 = vcombine.low %v746_v9, %v778_v38  ;;  %v6688_v54 = vcombine.high %v753_v55, %v785_v6  ;;  %v6692_v30 = vcombine.low %v753_v55, %v785_v6 }
  0xfb   : > { %v834_v38 = vrot.slane %v826_v7, %v6648_v14  ;;  %v755_v9 = vcombine.high %v689_v25, %v705_v53  ;;  %v762_v41 = vrot.slane %v754_v23, %v6660_v15  ;;  %v906_v62 = vcombine.low %v850_v58, %v866_v31 }
  0xfc   : > { %1828 = vrot.lane.b32.xlu1 %v6671_v48, %s8838_s24  ;;  %1826 = vrot.lane.b32.xlu0 %v6673_v1, %s8838_s24  ;;  %v811_v53 = vcombine.high %v6487_v3, %v6573_v16  ;;  %v827_v6 = vcombine.high %v6563_v11, %v6589_v24  ;;  %v843_v7 = vcombine.high %v6603_v32, %v6631_v49  ;;  %v655_v24 = vpop.permute.xlu0 %654 }
  0xfd   : > { %v6702_v33 = vcombine.high %v762_v41, %v794_v63  ;;  %v6707_v25 = vcombine.low %v762_v41, %v794_v63  ;;  %v874_v17 = vcombine.low %v818_v57, %v834_v38  ;;  %v769_v40 = vrot.slane %v755_v9, %v6660_v15 }
  0xfe   : > { %v907_v3 = vcombine.high %v850_v58, %v866_v31  ;;  %v914_v23 = vrot.slane %v906_v62, %v6660_v15  ;;  %v825_v11 = vrot.slane %v811_v53, %v6648_v14  ;;  %v841_v32 = vrot.slane %v827_v6, %v6648_v14 }
  0xff   : > { %v6719_v16 = vcombine.high %v769_v40, %v801_v46  ;;  %v6723_v39 = vcombine.low %v769_v40, %v801_v46  ;;  %v875_v49 = vcombine.high %v818_v57, %v834_v38  ;;  %v857_v55 = vrot.slane %v843_v7, %v6648_v14 }
 0x100   : > { %1832 = vrot.lane.b32.xlu1 %v6688_v54, %s8838_s24  ;;  %1830 = vrot.lane.b32.xlu0 %v6692_v30, %s8838_s24  ;;  %v882_v56 = vrot.slane %v874_v17, %v6660_v15  ;;  %v994_v31 = vcombine.low %v6621_v43, %v655_v24  ;;  %v921_v9 = vrot.slane %v907_v3, %v6660_v15 }
 0x101   : > { %v922_v58 = vcombine.low %v857_v55, %v873_v60  ;;  %v890_v57 = vcombine.low %v825_v11, %v841_v32  ;;  %v962_v38 = vcombine.low %v6557_v8, %v6593_v27  ;;  %v889_v62 = vrot.slane %v875_v49, %v6660_v15 }
 0x102   : > { %v6733_v63 = vcombine.high %v882_v56, %v914_v23  ;;  %v6736_v41 = vcombine.low %v882_v56, %v914_v23  ;;  %v946_v46 = vcombine.low %v6477_v0, %v6579_v19  ;;  %v923_v53 = vcombine.high %v857_v55, %v873_v60 }
 0x103   : > { %v1002_v6 = vrot.slane %v994_v31, %v6648_v14  ;;  %v6750_v17 = vcombine.high %v889_v62, %v921_v9  ;;  %v930_v7 = vrot.slane %v922_v58, %v6660_v15  ;;  %v6753_v40 = vcombine.low %v889_v62, %v921_v9 }
 0x104   : > { %1836 = vrot.lane.b32.xlu1 %v6702_v33, %s8838_s24  ;;  %1834 = vrot.lane.b32.xlu0 %v6707_v25, %s8838_s24  ;;  %v891_v3 = vcombine.high %v825_v11, %v841_v32  ;;  %v970_v23 = vrot.slane %v962_v38, %v6648_v14  ;;  %v986_v49 = vrot.slane %v978_v61, %v6648_v14 }
 0x105   : > { %v898_v56 = vrot.slane %v890_v57, %v6660_v15  ;;  %v954_v60 = vrot.slane %v946_v46, %v6648_v14  ;;  %v995_v55 = vcombine.high %v6621_v43, %v655_v24  ;;  %v937_v11 = vrot.slane %v923_v53, %v6660_v15 }
 0x106   : > { %v1042_v58 = vcombine.low %v986_v49, %v1002_v6  ;;  %v963_v32 = vcombine.high %v6557_v8, %v6593_v27  ;;  %v979_v57 = vcombine.high %v6607_v35, %v6633_v50  ;;  %v905_v61 = vrot.slane %v891_v3, %v6660_v15  ;;  %v657_v50 = vpop.permute.xlu1 %656 }
 0x107   : > { %v6764_v31 = vcombine.high %v898_v56, %v930_v7  ;;  %v6769_v9 = vcombine.low %v898_v56, %v930_v7  ;;  %v1010_v38 = vcombine.low %v954_v60, %v970_v23  ;;  %v947_v43 = vcombine.high %v6477_v0, %v6579_v19 }
 0x108   : > { %1840 = vrot.lane.b32.xlu1 %v6719_v16, %s8838_s24  ;;  %1838 = vrot.lane.b32.xlu0 %v6723_v39, %s8838_s24  ;;  %v1009_v24 = vrot.slane %v995_v55, %v6648_v14  ;;  %v1043_v8 = vcombine.high %v986_v49, %v1002_v6  ;;  %v6781_v27 = vcombine.high %v905_v61, %v937_v11  ;;  %v6348_v19 = vmov 0  }
 0x109   : > { %v1050_v62 = vrot.slane %v1042_v58, %v6660_v15  ;;  %v977_v35 = vrot.slane %v963_v32, %v6648_v14  ;;  %v6785_v46 = vcombine.low %v905_v61, %v937_v11  ;;  %v1011_v53 = vcombine.high %v954_v60, %v970_v23  ;;  %6274 = vset.pattern.permute.xlu0 %v6348_v19 }
 0x10a   : > { %v993_v7 = vrot.slane %v979_v57, %v6648_v14  ;;  %v1018_v0 = vrot.slane %v1010_v38, %v6660_v15  ;;  %v961_v6 = vrot.slane %v947_v43, %v6648_v14  ;;  %6275 = vset.pattern.permute.xlu1 %v6348_v19  ;;  %v1130_v3 = vcombine.low %v6619_v42, %v657_v50 }
 0x10b   : > { %8865 = vst [vmem:[#allocation22_spill] sm:$0xff] %v6785_v46  ;;  %v1057_v23 = vrot.slane %v1043_v8, %v6660_v15  ;;  %v1082_v60 = vcombine.low %v6485_v2, %v6577_v18  ;;  %v1098_v58 = vcombine.low %v6561_v10, %v6591_v26  ;;  %v1114_v32 = vcombine.low %v6605_v34, %v6635_v51 }
 0x10c   : > { %1844 = vrot.lane.b32.xlu1 %v6733_v63, %s8838_s24  ;;  %1842 = vrot.lane.b32.xlu0 %v6736_v41, %s8838_s24  ;;  %v1058_v49 = vcombine.low %v993_v7, %v1009_v24  ;;  %v6795_v56 = vcombine.high %v1018_v0, %v1050_v62  ;;  %v6800_v55 = vcombine.low %v1018_v0, %v1050_v62 }
 0x10d   : > { %v1026_v11 = vcombine.low %v961_v6, %v977_v35  ;;  %v1025_v38 = vrot.slane %v1011_v53, %v6660_v15  ;;  %v1138_v57 = vrot.slane %v1130_v3, %v6648_v14  ;;  %v1059_v61 = vcombine.high %v993_v7, %v1009_v24 }
 0x10e   : > { %8866 = vst [vmem:[#allocation23_spill] sm:$0xff] %v6795_v56  ;;  %v1066_v8 = vrot.slane %v1058_v49, %v6660_v15  ;;  %v1090_v62 = vrot.slane %v1082_v60, %v6648_v14  ;;  %v1106_v19 = vrot.slane %v1098_v58, %v6648_v14  ;;  %v1131_v24 = vcombine.high %v6619_v42, %v657_v50 }
 0x10f   : > { %v6812_v43 = vcombine.high %v1025_v38, %v1057_v23  ;;  %v6816_v0 = vcombine.low %v1025_v38, %v1057_v23  ;;  %v1034_v53 = vrot.slane %v1026_v11, %v6660_v15  ;;  %v1073_v49 = vrot.slane %v1059_v61, %v6660_v15 }
 0x110   : > { %1848 = vrot.lane.b32.xlu1 %v6750_v17, %s8838_s24  ;;  %1846 = vrot.lane.b32.xlu0 %v6753_v40, %s8838_s24  ;;  %v1099_v23 = vcombine.high %v6561_v10, %v6591_v26  ;;  %v1146_v60 = vcombine.low %v1090_v62, %v1106_v19  ;;  %v1115_v58 = vcombine.high %v6605_v34, %v6635_v51  ;;  %v659_v26 = vpop.permute.xlu0 %658 }
 0x111   : > { %v6826_v3 = vcombine.high %v1034_v53, %v1066_v8  ;;  %v1145_v50 = vrot.slane %v1131_v24, %v6648_v14  ;;  %v1147_v51 = vcombine.high %v1090_v62, %v1106_v19  ;;  %v1234_v19 = vcombine.low %v6567_v13, %v6597_v29 }
 0x112   : > { %v1113_v34 = vrot.slane %v1099_v23, %v6648_v14  ;;  %v1154_v38 = vrot.slane %v1146_v60, %v6660_v15  ;;  %v1250_v24 = vcombine.low %v6611_v37, %v6637_v52 }
 0x114   : > { %1852 = vrot.lane.b32.xlu1 %v6764_v31, %s8838_s24  ;;  %1850 = vrot.lane.b32.xlu0 %v6769_v9, %s8838_s24 }
 0x118   : > { %1856 = vrot.lane.b32.xlu1 %v6781_v27, %s8838_s24  ;;  %1854 = vrot.lane.b32.xlu0 %v6785_v46, %s8838_s24  ;;  %v1027_v46 = vcombine.high %v961_v6, %v977_v35  ;;  %v1083_v35 = vcombine.high %v6485_v2, %v6577_v18  ;;  %v6831_v6 = vcombine.low %v1034_v53, %v1066_v8 }
 0x11a   : > { %v1041_v42 = vrot.slane %v1027_v46, %v6660_v15  ;;  %v1097_v10 = vrot.slane %v1083_v35, %v6648_v14  ;;  %v1129_v46 = vrot.slane %v1115_v58, %v6648_v14 }
 0x11c   : > { %1860 = vrot.lane.b32.xlu1 %v6795_v56, %s8838_s24  ;;  %1858 = vrot.lane.b32.xlu0 %v6800_v55, %s8838_s24  ;;  %v1122_v56 = vrot.slane %v1114_v32, %v6648_v14  ;;  %v6843_v18 = vcombine.high %v1041_v42, %v1073_v49  ;;  %v6847_v32 = vcombine.low %v1041_v42, %v1073_v49 }
 0x11d   : > { %v1162_v62 = vcombine.low %v1097_v10, %v1113_v34  ;;  %v1218_v49 = vcombine.low %v6495_v5, %v6583_v21  ;;  %v1195_v35 = vcombine.high %v1129_v46, %v1145_v50 }
 0x11e   : > { %v1178_v7 = vcombine.low %v1122_v56, %v1138_v57  ;;  %v1179_v2 = vcombine.high %v1122_v56, %v1138_v57  ;;  %v1194_v56 = vcombine.low %v1129_v46, %v1145_v50  ;;  %v1266_v57 = vcombine.low %v6625_v45, %v659_v26 }
 0x11f   : > { %v1226_v50 = vrot.slane %v1218_v49, %v6648_v14  ;;  %v1267_v46 = vcombine.high %v6625_v45, %v659_v26  ;;  %v1219_v45 = vcombine.high %v6495_v5, %v6583_v21 }
 0x120   : > { %1864 = vrot.lane.b32.xlu1 %v6812_v43, %s8838_s24  ;;  %1862 = vrot.lane.b32.xlu0 %v6816_v0, %s8838_s24  ;;  %v1186_v11 = vrot.slane %v1178_v7, %v6660_v15  ;;  %v1193_v8 = vrot.slane %v1179_v2, %v6660_v15  ;;  %v1161_v7 = vrot.slane %v1147_v51, %v6660_v15 }
 0x121   : > { %v1274_v23 = vrot.slane %v1266_v57, %v6648_v14  ;;  %v1202_v58 = vrot.slane %v1194_v56, %v6660_v15  ;;  %v1163_v2 = vcombine.high %v1097_v10, %v1113_v34  ;;  %v1258_v51 = vrot.slane %v1250_v24, %v6648_v14 }
 0x122   : > { %v6857_v61 = vcombine.high %v1154_v38, %v1186_v11  ;;  %v6860_v53 = vcombine.low %v1154_v38, %v1186_v11  ;;  %v6874_v60 = vcombine.high %v1161_v7, %v1193_v8  ;;  %v6877_v42 = vcombine.low %v1161_v7, %v1193_v8 }
 0x123   : > { %v1242_v11 = vrot.slane %v1234_v19, %v6648_v14  ;;  %v1170_v38 = vrot.slane %v1162_v62, %v6660_v15  ;;  %v1314_v56 = vcombine.low %v1258_v51, %v1274_v23  ;;  %v1209_v10 = vrot.slane %v1195_v35, %v6660_v15 }
 0x124   : > { %1868 = vrot.lane.b32.xlu1 %v6826_v3, %s8838_s24  ;;  %1866 = vrot.lane.b32.xlu0 %v6831_v6, %s8838_s24  ;;  %v1235_v8 = vcombine.high %v6567_v13, %v6597_v29  ;;  %v1251_v62 = vcombine.high %v6611_v37, %v6637_v52  ;;  %v1177_v24 = vrot.slane %v1163_v2, %v6660_v15  ;;  %v661_v29 = vpop.permute.xlu1 %660 }
 0x125   : > { %v6888_v57 = vcombine.high %v1170_v38, %v1202_v58  ;;  %v6891_v34 = vcombine.low %v1170_v38, %v1202_v58  ;;  %v1282_v19 = vcombine.low %v1226_v50, %v1242_v11  ;;  %v1281_v26 = vrot.slane %v1267_v46, %v6648_v14 }
 0x126   : > { %v1315_v7 = vcombine.high %v1258_v51, %v1274_v23  ;;  %v6905_v49 = vcombine.high %v1177_v24, %v1209_v10  ;;  %v1322_v13 = vrot.slane %v1314_v56, %v6660_v15  ;;  %v6908_v37 = vcombine.low %v1177_v24, %v1209_v10 }
 0x127   : > { %v1249_v52 = vrot.slane %v1235_v8, %v6648_v14  ;;  %v1283_v35 = vcombine.high %v1226_v50, %v1242_v11  ;;  %v1265_v58 = vrot.slane %v1251_v62, %v6648_v14  ;;  %v1290_v5 = vrot.slane %v1282_v19, %v6660_v15 }
 0x128   : > { %1872 = vrot.lane.b32.xlu1 %v6843_v18, %s8838_s24  ;;  %1870 = vrot.lane.b32.xlu0 %v6847_v32, %s8838_s24  ;;  %8867 = vst [vmem:[#allocation24_spill] sm:$0xff] %v6908_v37  ;;  %v1233_v21 = vrot.slane %v1219_v45, %v6648_v14  ;;  %v1402_v23 = vcombine.low %v6623_v44, %v661_v29 }
 0x129   : > { %v1330_v2 = vcombine.low %v1265_v58, %v1281_v26  ;;  %v6919_v51 = vcombine.high %v1290_v5, %v1322_v13  ;;  %v1329_v38 = vrot.slane %v1315_v7, %v6660_v15  ;;  %v1354_v11 = vcombine.low %v6493_v4, %v6581_v20 }
 0x12a   : > { %v6924_v50 = vcombine.low %v1290_v5, %v1322_v13  ;;  %v1370_v46 = vcombine.low %v6565_v12, %v6595_v28  ;;  %v1298_v56 = vcombine.low %v1233_v21, %v1249_v52  ;;  %v1386_v10 = vcombine.low %v6609_v36, %v6644_v59 }
 0x12b   : > { %8868 = vst [vmem:[#allocation25_spill] sm:$0xff] %v6919_v51  ;;  %v1297_v8 = vrot.slane %v1283_v35, %v6660_v15  ;;  %v1410_v19 = vrot.slane %v1402_v23, %v6648_v14  ;;  %v1331_v62 = vcombine.high %v1265_v58, %v1281_v26  ;;  %v1338_v45 = vrot.slane %v1330_v2, %v6660_v15 }
 0x12c   : > { %1876 = vrot.lane.b32.xlu1 %v6857_v61, %s8838_s24  ;;  %1874 = vrot.lane.b32.xlu0 %v6860_v53, %s8838_s24  ;;  %v1362_v7 = vrot.slane %v1354_v11, %v6648_v14  ;;  %v1378_v5 = vrot.slane %v1370_v46, %v6648_v14  ;;  %v1306_v35 = vrot.slane %v1298_v56, %v6660_v15 }
 0x12d   : > { %v6936_v24 = vcombine.high %v1297_v8, %v1329_v38  ;;  %v6940_v13 = vcombine.low %v1297_v8, %v1329_v38  ;;  %v1403_v26 = vcombine.high %v6623_v44, %v661_v29  ;;  %v1345_v2 = vrot.slane %v1331_v62, %v6660_v15 }
 0x12e   : > { %v6950_v23 = vcombine.high %v1306_v35, %v1338_v45  ;;  %v1371_v38 = vcombine.high %v6565_v12, %v6595_v28  ;;  %v1418_v11 = vcombine.low %v1362_v7, %v1378_v5  ;;  %v1387_v46 = vcombine.high %v6609_v36, %v6644_v59  ;;  %v663_v28 = vpop.permute.xlu0 %662 }
 0x12f   : > { %8869 = vst [vmem:[#allocation26_spill] sm:$0xff] %v6940_v13  ;;  %v1417_v29 = vrot.slane %v1403_v26, %v6648_v14  ;;  %v1419_v59 = vcombine.high %v1362_v7, %v1378_v5  ;;  %v8876_v5 = vld [vmem:[#allocation16_spill] sm:$0xff] }
 0x130   : > { %1880 = vrot.lane.b32.xlu1 %v6874_v60, %s8838_s24  ;;  %1878 = vrot.lane.b32.xlu0 %v6877_v42, %s8838_s24  ;;  %8870 = vst [vmem:[#allocation27_spill] sm:$0xff] %v6950_v23  ;;  %v1385_v36 = vrot.slane %v1371_v38, %v6648_v14  ;;  %v1426_v8 = vrot.slane %v1418_v11, %v6660_v15  ;;  %v8877_v26 = vld [vmem:[#allocation12_spill] sm:$0xff] }
 0x131   : > { %v1433_v11 = vrot.slane %v1419_v59, %v6660_v15 }
 0x134   : > { %1884 = vrot.lane.b32.xlu1 %v6888_v57, %s8838_s24  ;;  %1882 = vrot.lane.b32.xlu0 %v6891_v34, %s8838_s24 }
 0x138   : > { %1888 = vrot.lane.b32.xlu1 %v6905_v49, %s8838_s24  ;;  %1886 = vrot.lane.b32.xlu0 %v6908_v37, %s8838_s24  ;;  %v1299_v37 = vcombine.high %v1233_v21, %v1249_v52  ;;  %v1355_v52 = vcombine.high %v6493_v4, %v6581_v20  ;;  %v6955_v21 = vcombine.low %v1306_v35, %v1338_v45 }
 0x13a   : > { %8871 = vst [vmem:[#allocation28_spill] sm:$0xff] %v6955_v21  ;;  %v1313_v44 = vrot.slane %v1299_v37, %v6660_v15  ;;  %v1369_v12 = vrot.slane %v1355_v52, %v6648_v14  ;;  %v1401_v37 = vrot.slane %v1387_v46, %v6648_v14  ;;  %v8879_v52 = vld [vmem:[#allocation18_spill] sm:$0xff] }
 0x13b   : > { %v8880_v46 = vld [vmem:[#allocation14_spill] sm:$0xff] }
 0x13c   : > { %1892 = vrot.lane.b32.xlu1 %v6919_v51, %s8838_s24  ;;  %1890 = vrot.lane.b32.xlu0 %v6924_v50, %s8838_s24  ;;  %v1394_v51 = vrot.slane %v1386_v10, %v6648_v14  ;;  %v6967_v20 = vcombine.high %v1313_v44, %v1345_v2  ;;  %v6971_v10 = vcombine.low %v1313_v44, %v1345_v2  ;;  %v8878_v2 = vld [vmem:[#allocation20_spill] sm:$0xff]  ;;  %v8881_v44 = vld [vmem:[#allocation10_spill] sm:$0xff] }
 0x13d   : > { %v1434_v7 = vcombine.low %v1369_v12, %v1385_v36  ;;  %v1522_v38 = vcombine.low %v8879_v52, %v8878_v2 }
 0x13e   : > { %v1450_v58 = vcombine.low %v1394_v51, %v1410_v19  ;;  %v1451_v4 = vcombine.high %v1394_v51, %v1410_v19  ;;  %8872 = vst [vmem:[#allocation29_spill] sm:$0xff] %v6967_v20  ;;  %8873 = vst [vmem:[#allocation30_spill] sm:$0xff] %v6971_v10  ;;  %v1466_v51 = vcombine.low %v1401_v37, %v1417_v29 }
 0x13f   : > { %v1538_v19 = vcombine.low %v6629_v47, %v663_v28  ;;  %v1530_v59 = vrot.slane %v1522_v38, %v6648_v14 }
 0x140   : > { %1896 = vrot.lane.b32.xlu1 %v6936_v24, %s8838_s24  ;;  %1894 = vrot.lane.b32.xlu0 %v6940_v13, %s8838_s24  ;;  %v1458_v56 = vrot.slane %v1450_v58, %v6660_v15  ;;  %v1465_v45 = vrot.slane %v1451_v4, %v6660_v15  ;;  %v1506_v58 = vcombine.low %v8877_v26, %v8876_v5 }
 0x141   : > { %v1467_v4 = vcombine.high %v1401_v37, %v1417_v29  ;;  %v1442_v13 = vrot.slane %v1434_v7, %v6660_v15  ;;  %v1539_v37 = vcombine.high %v6629_v47, %v663_v28  ;;  %v1523_v7 = vcombine.high %v8879_v52, %v8878_v2 }
 0x142   : > { %v6981_v62 = vcombine.high %v1426_v8, %v1458_v56  ;;  %v6984_v35 = vcombine.low %v1426_v8, %v1458_v56  ;;  %v1546_v56 = vrot.slane %v1538_v19, %v6648_v14  ;;  %v6998_v8 = vcombine.high %v1433_v11, %v1465_v45 }
 0x143   : > { %v1491_v47 = vcombine.high %v8881_v44, %v8880_v46 }
 0x144   : > { %1900 = vrot.lane.b32.xlu1 %v6950_v23, %s8838_s24  ;;  %1898 = vrot.lane.b32.xlu0 %v6955_v21, %s8838_s24  ;;  %8874 = vst [vmem:[#allocation31_spill] sm:$0xff] %v6981_v62  ;;  %8875 = vst [vmem:[#allocation32_spill] sm:$0xff] %v6984_v35  ;;  %v7001_v21 = vcombine.low %v1433_v11, %v1465_v45  ;;  %v1435_v23 = vcombine.high %v1369_v12, %v1385_v36 }
 0x145   : > { %8882 = vst [vmem:[#allocation16_spill] sm:$0xff] %v6998_v8  ;;  %v1481_v12 = vrot.slane %v1467_v4, %v6660_v15  ;;  %v1507_v45 = vcombine.high %v8877_v26, %v8876_v5  ;;  %v665_v26 = vpop.permute.xlu1 %664 }
 0x146   : > { %8883 = vst [vmem:[#allocation12_spill] sm:$0xff] %v7001_v21 }
 0x147   : > { %v1521_v52 = vrot.slane %v1507_v45, %v6648_v14  ;;  %v8892_v45 = vld [vmem:[#allocation15_spill] sm:$0xff] }
 0x148   : > { %1904 = vrot.lane.b32.xlu1 %v6967_v20, %s8838_s24  ;;  %1902 = vrot.lane.b32.xlu0 %v6971_v10, %s8838_s24  ;;  %v1490_v10 = vcombine.low %v8881_v44, %v8880_v46  ;;  %v1474_v20 = vrot.slane %v1466_v51, %v6660_v15  ;;  %v1586_v51 = vcombine.low %v1530_v59, %v1546_v56  ;;  %v8888_v44 = vld [vmem:[#allocation19_spill] sm:$0xff] }
 0x149   : > { %v1505_v46 = vrot.slane %v1491_v47, %v6648_v14  ;;  %v1674_v4 = vcombine.low %v8888_v44, %v665_v26  ;;  %v8894_v47 = vld [vmem:[#allocation17_spill] sm:$0xff] }
 0x14a   : > { %v1498_v29 = vrot.slane %v1490_v10, %v6648_v14  ;;  %v7012_v19 = vcombine.high %v1442_v13, %v1474_v20  ;;  %v7015_v36 = vcombine.low %v1442_v13, %v1474_v20  ;;  %v1449_v10 = vrot.slane %v1435_v23, %v6660_v15 }
 0x14b   : > { %v1553_v13 = vrot.slane %v1539_v37, %v6648_v14  ;;  %v1587_v20 = vcombine.high %v1530_v59, %v1546_v56  ;;  %v1594_v5 = vrot.slane %v1586_v51, %v6660_v15  ;;  %v1537_v23 = vrot.slane %v1523_v7, %v6648_v14  ;;  %v8893_v7 = vld [vmem:[#allocation11_spill] sm:$0xff] }
 0x14c   : > { %1908 = vrot.lane.b32.xlu1 %v6981_v62, %s8838_s24  ;;  %1906 = vrot.lane.b32.xlu0 %v6984_v35, %s8838_s24  ;;  %v1514_v62 = vrot.slane %v1506_v58, %v6648_v14  ;;  %8884 = vst [vmem:[#allocation20_spill] sm:$0xff] %v7012_v19  ;;  %8885 = vst [vmem:[#allocation18_spill] sm:$0xff] %v7015_v36  ;;  %v7029_v28 = vcombine.high %v1449_v10, %v1481_v12 }
 0x14d   : > { %v7032_v2 = vcombine.low %v1449_v10, %v1481_v12  ;;  %v1602_v56 = vcombine.low %v1537_v23, %v1553_v13  ;;  %v1601_v37 = vrot.slane %v1587_v20, %v6660_v15  ;;  %v1570_v10 = vcombine.low %v1505_v46, %v1521_v52 }
 0x14e   : > { %v1554_v58 = vcombine.low %v1498_v29, %v1514_v62  ;;  %8886 = vst [vmem:[#allocation14_spill] sm:$0xff] %v7029_v28  ;;  %v1555_v38 = vcombine.high %v1498_v29, %v1514_v62  ;;  %v8890_v62 = vld [vmem:[#allocation13_spill] sm:$0xff]  ;;  %v1682_v20 = vrot.slane %v1674_v4, %v6648_v14  ;;  %v1571_v35 = vcombine.high %v1505_v46, %v1521_v52 }
 0x14f   : > { %8887 = vst [vmem:[#allocation10_spill] sm:$0xff] %v7032_v2  ;;  %v8891_v29 = vld [vmem:[#allocation9_spill] sm:$0xff] }
 0x150   : > { %1912 = vrot.lane.b32.xlu1 %v6998_v8, %s8838_s24  ;;  %1910 = vrot.lane.b32.xlu0 %v7001_v21, %s8838_s24  ;;  %v1562_v11 = vrot.slane %v1554_v58, %v6660_v15  ;;  %v1626_v51 = vcombine.low %v8891_v29, %v8890_v62  ;;  %v1642_v58 = vcombine.low %v8893_v7, %v8892_v45 }
 0x151   : > { %v1627_v52 = vcombine.high %v8891_v29, %v8890_v62 }
 0x152   : > { %v7043_v59 = vcombine.high %v1562_v11, %v1594_v5  ;;  %v7048_v12 = vcombine.low %v1562_v11, %v1594_v5  ;;  %v1610_v11 = vrot.slane %v1602_v56, %v6660_v15  ;;  %v1650_v8 = vrot.slane %v1642_v58, %v6648_v14 }
 0x154   : > { %1916 = vrot.lane.b32.xlu1 %v7012_v19, %s8838_s24  ;;  %1914 = vrot.lane.b32.xlu0 %v7015_v36, %s8838_s24  ;;  %8889 = vst [vmem:[#allocation19_spill] sm:$0xff] %v7043_v59  ;;  %v1603_v36 = vcombine.high %v1537_v23, %v1553_v13  ;;  %v1634_v19 = vrot.slane %v1626_v51, %v6648_v14 }
 0x155   : > { %v1675_v13 = vcombine.high %v8888_v44, %v665_v26  ;;  %v1585_v26 = vrot.slane %v1571_v35, %v6660_v15  ;;  %v1641_v51 = vrot.slane %v1627_v52, %v6648_v14 }
 0x156   : > { %v1690_v56 = vcombine.low %v1634_v19, %v1650_v8 }
 0x158   : > { %1920 = vrot.lane.b32.xlu1 %v7029_v28, %s8838_s24  ;;  %1918 = vrot.lane.b32.xlu0 %v7032_v2, %s8838_s24  ;;  %v1658_v28 = vcombine.low %v8894_v47, %v6655_v22  ;;  %v1569_v2 = vrot.slane %v1555_v38, %v6660_v15  ;;  %v1578_v38 = vrot.slane %v1570_v10, %v6660_v15 }
 0x159   : > { %v1698_v35 = vrot.slane %v1690_v56, %v6660_v15 }
 0x15a   : > { %v7060_v5 = vcombine.high %v1569_v2, %v1601_v37  ;;  %v7064_v21 = vcombine.low %v1569_v2, %v1601_v37  ;;  %v7074_v4 = vcombine.high %v1578_v38, %v1610_v11  ;;  %v1617_v2 = vrot.slane %v1603_v36, %v6660_v15 }
 0x15b   : > { %v7079_v46 = vcombine.low %v1578_v38, %v1610_v11  ;;  %v1659_v37 = vcombine.high %v8894_v47, %v6655_v22  ;;  %v1689_v36 = vrot.slane %v1675_v13, %v6648_v14 }
 0x15c   : > { %1924 = vrot.lane.b32.xlu1 %v7043_v59, %s8838_s24  ;;  %1922 = vrot.lane.b32.xlu0 %v7048_v12, %s8838_s24  ;;  %v1666_v59 = vrot.slane %v1658_v28, %v6648_v14  ;;  %v1643_v28 = vcombine.high %v8893_v7, %v8892_v45  ;;  %v7091_v62 = vcombine.high %v1585_v26, %v1617_v2 }
 0x15d   : > { %v7095_v45 = vcombine.low %v1585_v26, %v1617_v2  ;;  %v1691_v7 = vcombine.high %v1634_v19, %v1650_v8  ;;  %v1673_v58 = vrot.slane %v1659_v37, %v6648_v14 }
 0x15e   : > { %v1722_v23 = vcombine.low %v1666_v59, %v1682_v20  ;;  %v1723_v44 = vcombine.high %v1666_v59, %v1682_v20  ;;  %v1657_v22 = vrot.slane %v1643_v28, %v6648_v14 }
 0x15f   : > { %v1738_v59 = vcombine.low %v1673_v58, %v1689_v36  ;;  %v1705_v14 = vrot.slane %v1691_v7, %v6660_v15  ;;  %v1739_v8 = vcombine.high %v1673_v58, %v1689_v36 }
 0x160   : > { %1928 = vrot.lane.b32.xlu1 %v7060_v5, %s8838_s24  ;;  %1926 = vrot.lane.b32.xlu0 %v7064_v21, %s8838_s24  ;;  %v1730_v29 = vrot.slane %v1722_v23, %v6660_v15  ;;  %v1737_v47 = vrot.slane %v1723_v44, %v6660_v15  ;;  %v1706_v11 = vcombine.low %v1641_v51, %v1657_v22 }
 0x161   : > { %v1746_v13 = vrot.slane %v1738_v59, %v6660_v15  ;;  %v1707_v52 = vcombine.high %v1641_v51, %v1657_v22  ;;  %v1753_v26 = vrot.slane %v1739_v8, %v6660_v15 }
 0x162   : > { %v7104_v10 = vcombine.high %v1698_v35, %v1730_v29  ;;  %v7107_v20 = vcombine.low %v1698_v35, %v1730_v29  ;;  %v7114_v38 = vcombine.high %v1705_v14, %v1737_v47  ;;  %v7117_v2 = vcombine.low %v1705_v14, %v1737_v47 }
 0x163   : > { %v1714_v28 = vrot.slane %v1706_v11, %v6660_v15  ;;  %v1721_v29 = vrot.slane %v1707_v52, %v6660_v15 }
 0x164   : > { %1932 = vrot.lane.b32.xlu1 %v7074_v4, %s8838_s24  ;;  %1930 = vrot.lane.b32.xlu0 %v7079_v46, %s8838_s24 }
 0x165   : > { %v7124_v37 = vcombine.high %v1714_v28, %v1746_v13  ;;  %v7127_v44 = vcombine.low %v1714_v28, %v1746_v13  ;;  %v7136_v58 = vcombine.high %v1721_v29, %v1753_v26  ;;  %v7140_v11 = vcombine.low %v1721_v29, %v1753_v26 }
 0x168   : > { %1936 = vrot.lane.b32.xlu1 %v7091_v62, %s8838_s24  ;;  %1934 = vrot.lane.b32.xlu0 %v7095_v45, %s8838_s24 }
 0x16c   : > { %1940 = vrot.lane.b32.xlu1 %v7104_v10, %s8838_s24  ;;  %1938 = vrot.lane.b32.xlu0 %v7107_v20, %s8838_s24 }
 0x16e   : > { %v1829_v19 = vpop.permute.xlu1 %1828  ;;  %v1827_v23 = vpop.permute.xlu0 %1826 }
 0x16f   : > { %v2019_v35 = vmax.f32 %v6671_v48, %v1829_v19  ;;  %v2018_v59 = vmax.f32 %v6673_v1, %v1827_v23 }
 0x170   : > { %1944 = vrot.lane.b32.xlu1 %v7114_v38, %s8838_s24  ;;  %1942 = vrot.lane.b32.xlu0 %v7117_v2, %s8838_s24 }
 0x171   : > { %v2082_v8 = vmax.f32 %v2018_v59, %v2019_v35 }
 0x172   : > { %v1833_v56 = vpop.permute.xlu1 %1832  ;;  %v1831_v36 = vpop.permute.xlu0 %1830 }
 0x173   : > { %v2021_v51 = vmax.f32 %v6688_v54, %v1833_v56  ;;  %v2020_v22 = vmax.f32 %v6692_v30, %v1831_v36 }
 0x174   : > { %1948 = vrot.lane.b32.xlu1 %v7124_v37, %s8838_s24  ;;  %1946 = vrot.lane.b32.xlu0 %v7127_v44, %s8838_s24 }
 0x175   : > { %v2083_v15 = vmax.f32 %v2020_v22, %v2021_v51 }
 0x176   : > { %v1837_v7 = vpop.permute.xlu1 %1836  ;;  %v1835_v47 = vpop.permute.xlu0 %1834 }
 0x177   : > { %v2023_v54 = vmax.f32 %v6702_v33, %v1837_v7  ;;  %v2022_v30 = vmax.f32 %v6707_v25, %v1835_v47 }
 0x178   : > { %1952 = vrot.lane.b32.xlu1 %v7136_v58, %s8838_s24  ;;  %1950 = vrot.lane.b32.xlu0 %v7140_v11, %s8838_s24 }
 0x179   : > { %v2084_v13 = vmax.f32 %v2022_v30, %v2023_v54 }
 0x17a   : > { %v1841_v14 = vpop.permute.xlu1 %1840  ;;  %v1839_v19 = vpop.permute.xlu0 %1838 }
 0x17b   : > { %v2025_v48 = vmax.f32 %v6719_v16, %v1841_v14  ;;  %v2024_v1 = vmax.f32 %v6723_v39, %v1839_v19 }
 0x17c   : > { %2150 = vperm.xlu1 %6275, %v2083_v15   ;;  %2147 = vperm.xlu0 %6274, %v2082_v8   ;;  %v6349_v15 = vmov 0.0  }
 0x17d   : > { %v2085_v23 = vmax.f32 %v2024_v1, %v2025_v48  ;;  %449 = vst.msk [vmem:[#allocation2 + $0x1] sm:$0xff] %vm448_vm0, %v6349_v15  ;;  %450 = vst.msk [vmem:[#allocation2 + $0x11] sm:$0xff] %vm448_vm0, %v6349_v15 }
 0x17e   : > { %v1845_v52 = vpop.permute.xlu1 %1844  ;;  %v1843_v56 = vpop.permute.xlu0 %1842  ;;  %451 = vst.msk [vmem:[#allocation2 + $0x21] sm:$0xff] %vm448_vm0, %v6349_v15  ;;  %452 = vst.msk [vmem:[#allocation2 + $0x31] sm:$0xff] %vm448_vm0, %v6349_v15 }
 0x17f   : > { %v2027_v28 = vmax.f32 %v6733_v63, %v1845_v52  ;;  %v2026_v26 = vmax.f32 %v6736_v41, %v1843_v56  ;;  %474 = vst.msk [vmem:[#allocation3 + $0x1] sm:$0xff] %vm448_vm0, %v6349_v15  ;;  %475 = vst.msk [vmem:[#allocation3 + $0x11] sm:$0xff] %vm448_vm0, %v6349_v15 }
 0x180   : > { %2153 = vperm.xlu1 %6275, %v2084_v13   ;;  %2156 = vperm.xlu0 %6274, %v2085_v23   ;;  %476 = vst.msk [vmem:[#allocation3 + $0x21] sm:$0xff] %vm448_vm0, %v6349_v15  ;;  %477 = vst.msk [vmem:[#allocation3 + $0x31] sm:$0xff] %vm448_vm0, %v6349_v15 }
 0x181   : > { %v2086_v33 = vmax.f32 %v2026_v26, %v2027_v28  ;;  %478 = vst.msk [vmem:[#allocation3 + $0x41] sm:$0xff] %vm448_vm0, %v6349_v15  ;;  %479 = vst.msk [vmem:[#allocation3 + $0x51] sm:$0xff] %vm448_vm0, %v6349_v15 }
 0x182   : > { %v1849_v25 = vpop.permute.xlu1 %1848  ;;  %v1847_v16 = vpop.permute.xlu0 %1846  ;;  %480 = vst.msk [vmem:[#allocation3 + $0x61] sm:$0xff] %vm448_vm0, %v6349_v15  ;;  %481 = vst.msk [vmem:[#allocation3 + $0x71] sm:$0xff] %vm448_vm0, %v6349_v15 }
 0x183   : > { %v2029_v36 = vmax.f32 %v6750_v17, %v1849_v25  ;;  %v2028_v29 = vmax.f32 %v6753_v40, %v1847_v16  ;;  %v8895_v17 = vld [vmem:[#allocation22_spill] sm:$0xff]  ;;  %454 = vst.msk [vmem:[#allocation2 + $0x1] sm:$0xff] %vm453_vm1, %v6349_v15  ;;  %455 = vst.msk [vmem:[#allocation2 + $0x11] sm:$0xff] %vm453_vm1, %v6349_v15 }
 0x184   : > { %2159 = vperm.xlu1 %6275, %v2086_v33   ;;  %456 = vst.msk [vmem:[#allocation2 + $0x21] sm:$0xff] %vm453_vm1, %v6349_v15  ;;  %457 = vst.msk [vmem:[#allocation2 + $0x31] sm:$0xff] %vm453_vm1, %v6349_v15 }
 0x185   : > { %v2087_v39 = vmax.f32 %v2028_v29, %v2029_v36  ;;  %482 = vst.msk [vmem:[#allocation3 + $0x1] sm:$0xff] %vm453_vm1, %v6349_v15  ;;  %483 = vst.msk [vmem:[#allocation3 + $0x11] sm:$0xff] %vm453_vm1, %v6349_v15 }
 0x186   : > { %v1853_v51 = vpop.permute.xlu1 %1852  ;;  %v1851_v7 = vpop.permute.xlu0 %1850  ;;  %484 = vst.msk [vmem:[#allocation3 + $0x21] sm:$0xff] %vm453_vm1, %v6349_v15  ;;  %485 = vst.msk [vmem:[#allocation3 + $0x31] sm:$0xff] %vm453_vm1, %v6349_v15 }
 0x187   : > { %v2031_v22 = vmax.f32 %v6764_v31, %v1853_v51  ;;  %v2030_v63 = vmax.f32 %v6769_v9, %v1851_v7  ;;  %2162 = vperm.xlu0 %6274, %v2087_v39   ;;  %486 = vst.msk [vmem:[#allocation3 + $0x41] sm:$0xff] %vm453_vm1, %v6349_v15  ;;  %487 = vst.msk [vmem:[#allocation3 + $0x51] sm:$0xff] %vm453_vm1, %v6349_v15 }
 0x188   : > { %488 = vst.msk [vmem:[#allocation3 + $0x61] sm:$0xff] %vm453_vm1, %v6349_v15  ;;  %489 = vst.msk [vmem:[#allocation3 + $0x71] sm:$0xff] %vm453_vm1, %v6349_v15 }
 0x189   : > { %v2088_v35 = vmax.f32 %v2030_v63, %v2031_v22  ;;  %440 = vst.msk [vmem:[#allocation2] sm:$0x1] %vm439_vm2, %v6349_v15  ;;  %441 = vst.msk [vmem:[#allocation2 + $0x10] sm:$0x1] %vm439_vm2, %v6349_v15 }
 0x18a   : > { %v1857_v41 = vpop.permute.xlu1 %1856  ;;  %v1855_v47 = vpop.permute.xlu0 %1854  ;;  %442 = vst.msk [vmem:[#allocation2 + $0x20] sm:$0x1] %vm439_vm2, %v6349_v15  ;;  %443 = vst.msk [vmem:[#allocation2 + $0x30] sm:$0x1] %vm439_vm2, %v6349_v15 }
 0x18b   : > { %v2033_v59 = vmax.f32 %v6781_v27, %v1857_v41  ;;  %v2032_v40 = vmax.f32 %v8895_v17, %v1855_v47  ;;  %2165 = vperm.xlu1 %6275, %v2088_v35   ;;  %v8896_v27 = vld [vmem:[#allocation23_spill] sm:$0xff]  ;;  %444 = vst.msk [vmem:[#allocation2 + $0x9] sm:$0x1] %vm439_vm2, %v6349_v15  ;;  %445 = vst.msk [vmem:[#allocation2 + $0x19] sm:$0x1] %vm439_vm2, %v6349_v15  ;;  %v8897_v17 = vld [vmem:[#allocation24_spill] sm:$0xff] }
 0x18c   : > { %446 = vst.msk [vmem:[#allocation2 + $0x29] sm:$0x1] %vm439_vm2, %v6349_v15  ;;  %447 = vst.msk [vmem:[#allocation2 + $0x39] sm:$0x1] %vm439_vm2, %v6349_v15 }
 0x18d   : > { %v2089_v31 = vmax.f32 %v2032_v40, %v2033_v59  ;;  %458 = vst.msk [vmem:[#allocation3] sm:$0x1] %vm439_vm2, %v6349_v15  ;;  %459 = vst.msk [vmem:[#allocation3 + $0x10] sm:$0x1] %vm439_vm2, %v6349_v15 }
 0x18e   : > { %v1861_v9 = vpop.permute.xlu1 %1860  ;;  %v1859_v30 = vpop.permute.xlu0 %1858  ;;  %460 = vst.msk [vmem:[#allocation3 + $0x20] sm:$0x1] %vm439_vm2, %v6349_v15  ;;  %461 = vst.msk [vmem:[#allocation3 + $0x30] sm:$0x1] %vm439_vm2, %v6349_v15 }
 0x18f   : > { %v2035_v54 = vmax.f32 %v8896_v27, %v1861_v9  ;;  %v2034_v14 = vmax.f32 %v6800_v55, %v1859_v30  ;;  %2168 = vperm.xlu0 %6274, %v2089_v31   ;;  %462 = vst.msk [vmem:[#allocation3 + $0x40] sm:$0x1] %vm439_vm2, %v6349_v15  ;;  %463 = vst.msk [vmem:[#allocation3 + $0x50] sm:$0x1] %vm439_vm2, %v6349_v15 }
 0x190   : > { %464 = vst.msk [vmem:[#allocation3 + $0x60] sm:$0x1] %vm439_vm2, %v6349_v15  ;;  %465 = vst.msk [vmem:[#allocation3 + $0x70] sm:$0x1] %vm439_vm2, %v6349_v15 }
 0x191   : > { %v2090_v8 = vmax.f32 %v2034_v14, %v2035_v54  ;;  %466 = vst.msk [vmem:[#allocation3 + $0x9] sm:$0x1] %vm439_vm2, %v6349_v15  ;;  %467 = vst.msk [vmem:[#allocation3 + $0x19] sm:$0x1] %vm439_vm2, %v6349_v15 }
 0x192   : > { %v1865_v48 = vpop.permute.xlu1 %1864  ;;  %v1863_v1 = vpop.permute.xlu0 %1862  ;;  %468 = vst.msk [vmem:[#allocation3 + $0x29] sm:$0x1] %vm439_vm2, %v6349_v15  ;;  %469 = vst.msk [vmem:[#allocation3 + $0x39] sm:$0x1] %vm439_vm2, %v6349_v15 }
 0x193   : > { %v2037_v19 = vmax.f32 %v6812_v43, %v1865_v48  ;;  %v2036_v13 = vmax.f32 %v6816_v0, %v1863_v1  ;;  %2171 = vperm.xlu1 %6275, %v2090_v8   ;;  %470 = vst.msk [vmem:[#allocation3 + $0x49] sm:$0x1] %vm439_vm2, %v6349_v15  ;;  %471 = vst.msk [vmem:[#allocation3 + $0x59] sm:$0x1] %vm439_vm2, %v6349_v15  ;;  %v8899_v8 = vld [vmem:[#allocation26_spill] sm:$0xff]  ;;  %v8900_v1 = vld [vmem:[#allocation27_spill] sm:$0xff] }
 0x194   : > { %472 = vst.msk [vmem:[#allocation3 + $0x69] sm:$0x1] %vm439_vm2, %v6349_v15  ;;  %473 = vst.msk [vmem:[#allocation3 + $0x79] sm:$0x1] %vm439_vm2, %v6349_v15 }
 0x195   : > { %v2091_v23 = vmax.f32 %v2036_v13, %v2037_v19 }
 0x196   : > { %v1869_v52 = vpop.permute.xlu1 %1868  ;;  %v1867_v56 = vpop.permute.xlu0 %1866 }
 0x197   : > { %v2039_v28 = vmax.f32 %v6826_v3, %v1869_v52  ;;  %v2038_v26 = vmax.f32 %v6831_v6, %v1867_v56  ;;  %2174 = vperm.xlu0 %6274, %v2091_v23   ;;  %v8901_v52 = vld [vmem:[#allocation28_spill] sm:$0xff] }
 0x199   : > { %v2092_v33 = vmax.f32 %v2038_v26, %v2039_v28 }
 0x19a   : > { %v1873_v25 = vpop.permute.xlu1 %1872  ;;  %v1871_v36 = vpop.permute.xlu0 %1870 }
 0x19b   : > { %v2041_v55 = vmax.f32 %v6843_v18, %v1873_v25  ;;  %v2040_v16 = vmax.f32 %v6847_v32, %v1871_v36  ;;  %2177 = vperm.xlu1 %6275, %v2092_v33  }
 0x19d   : > { %v2093_v43 = vmax.f32 %v2040_v16, %v2041_v55  ;;  %v8903_v55 = vld [vmem:[#allocation30_spill] sm:$0xff] }
 0x19e   : > { %v1877_v0 = vpop.permute.xlu1 %1876  ;;  %v1875_v6 = vpop.permute.xlu0 %1874 }
 0x19f   : > { %v2043_v3 = vmax.f32 %v6857_v61, %v1877_v0  ;;  %v2042_v18 = vmax.f32 %v6860_v53, %v1875_v6  ;;  %2180 = vperm.xlu0 %6274, %v2093_v43   ;;  %v8904_v43 = vld [vmem:[#allocation31_spill] sm:$0xff]  ;;  %v8905_v6 = vld [vmem:[#allocation32_spill] sm:$0xff] }
 0x1a1   : > { %v2094_v32 = vmax.f32 %v2042_v18, %v2043_v3 }
 0x1a2   : > { %v1881_v29 = vpop.permute.xlu1 %1880  ;;  %v1879_v51 = vpop.permute.xlu0 %1878 }
 0x1a3   : > { %v2045_v39 = vmax.f32 %v6874_v60, %v1881_v29  ;;  %v2044_v22 = vmax.f32 %v6877_v42, %v1879_v51  ;;  %2183 = vperm.xlu1 %6275, %v2094_v32   ;;  %v8898_v42 = vld [vmem:[#allocation25_spill] sm:$0xff] }
 0x1a5   : > { %v2095_v7 = vmax.f32 %v2044_v22, %v2045_v39  ;;  %v8906_v39 = vld [vmem:[#allocation16_spill] sm:$0xff] }
 0x1a6   : > { %v1885_v63 = vpop.permute.xlu1 %1884  ;;  %v1883_v41 = vpop.permute.xlu0 %1882 }
 0x1a7   : > { %v2047_v35 = vmax.f32 %v6888_v57, %v1885_v63  ;;  %v2046_v59 = vmax.f32 %v6891_v34, %v1883_v41  ;;  %2186 = vperm.xlu0 %6274, %v2095_v7   ;;  %v8907_v7 = vld [vmem:[#allocation12_spill] sm:$0xff] }
 0x1a9   : > { %v2096_v61 = vmax.f32 %v2046_v59, %v2047_v35  ;;  %v8908_v59 = vld [vmem:[#allocation20_spill] sm:$0xff] }
 0x1aa   : > { %v1889_v47 = vpop.permute.xlu1 %1888  ;;  %v1887_v15 = vpop.permute.xlu0 %1886 }
 0x1ab   : > { %v2049_v53 = vmax.f32 %v6905_v49, %v1889_v47  ;;  %v2048_v40 = vmax.f32 %v8897_v17, %v1887_v15  ;;  %2189 = vperm.xlu1 %6275, %v2096_v61  }
 0x1ad   : > { %v2097_v60 = vmax.f32 %v2048_v40, %v2049_v53  ;;  %v8909_v53 = vld [vmem:[#allocation18_spill] sm:$0xff] }
 0x1ae   : > { %v1893_v31 = vpop.permute.xlu1 %1892  ;;  %v1891_v27 = vpop.permute.xlu0 %1890 }
 0x1af   : > { %v2051_v9 = vmax.f32 %v8898_v42, %v1893_v31  ;;  %v2050_v54 = vmax.f32 %v6924_v50, %v1891_v27  ;;  %2192 = vperm.xlu0 %6274, %v2097_v60   ;;  %v8902_v50 = vld [vmem:[#allocation29_spill] sm:$0xff]  ;;  %v8910_v60 = vld [vmem:[#allocation14_spill] sm:$0xff] }
 0x1b1   : > { %v2098_v57 = vmax.f32 %v2050_v54, %v2051_v9  ;;  %v8911_v9 = vld [vmem:[#allocation10_spill] sm:$0xff] }
 0x1b2   : > { %v1897_v30 = vpop.permute.xlu1 %1896  ;;  %v1895_v14 = vpop.permute.xlu0 %1894 }
 0x1b3   : > { %v2053_v34 = vmax.f32 %v6936_v24, %v1897_v30  ;;  %v2052_v48 = vmax.f32 %v8899_v8, %v1895_v14  ;;  %2195 = vperm.xlu1 %6275, %v2098_v57   ;;  %v8912_v30 = vld [vmem:[#allocation19_spill] sm:$0xff] }
 0x1b5   : > { %v2099_v49 = vmax.f32 %v2052_v48, %v2053_v34 }
 0x1b6   : > { %v1901_v19 = vpop.permute.xlu1 %1900  ;;  %v1899_v23 = vpop.permute.xlu0 %1898 }
 0x1b7   : > { %v2055_v13 = vmax.f32 %v8900_v1, %v1901_v19  ;;  %v2054_v28 = vmax.f32 %v8901_v52, %v1899_v23  ;;  %2198 = vperm.xlu0 %6274, %v2099_v49  }
 0x1b9   : > { %v2100_v56 = vmax.f32 %v2054_v28, %v2055_v13 }
 0x1ba   : > { %v1905_v26 = vpop.permute.xlu1 %1904  ;;  %v1903_v25 = vpop.permute.xlu0 %1902 }
 0x1bb   : > { %v2057_v33 = vmax.f32 %v8902_v50, %v1905_v26  ;;  %v2056_v36 = vmax.f32 %v8903_v55, %v1903_v25  ;;  %2201 = vperm.xlu1 %6275, %v2100_v56  }
 0x1bd   : > { %v2101_v24 = vmax.f32 %v2056_v36, %v2057_v33 }
 0x1be   : > { %v1909_v16 = vpop.permute.xlu1 %1908  ;;  %v1907_v3 = vpop.permute.xlu0 %1906 }
 0x1bf   : > { %v2059_v0 = vmax.f32 %v8904_v43, %v1909_v16  ;;  %v2058_v18 = vmax.f32 %v8905_v6, %v1907_v3  ;;  %2204 = vperm.xlu0 %6274, %v2101_v24  }
 0x1c1   : > { %v2102_v32 = vmax.f32 %v2058_v18, %v2059_v0 }
 0x1c2   : > { %v1913_v29 = vpop.permute.xlu1 %1912  ;;  %v1911_v22 = vpop.permute.xlu0 %1910 }
 0x1c3   : > { %v2061_v51 = vmax.f32 %v8906_v39, %v1913_v29  ;;  %v2060_v63 = vmax.f32 %v8907_v7, %v1911_v22  ;;  %2207 = vperm.xlu1 %6275, %v2102_v32   ;;  %v8914_v22 = vlaneseq }
 0x1c5   : > { %v2103_v35 = vmax.f32 %v2060_v63, %v2061_v51  ;;  %v2243_v7 = vand.u32 127, %v8914_v22 }
 0x1c6   : > { %v1917_v41 = vpop.permute.xlu1 %1916  ;;  %v1915_v47 = vpop.permute.xlu0 %1914 }
 0x1c7   : > { %v2063_v61 = vmax.f32 %v8908_v59, %v1917_v41  ;;  %v2062_v15 = vmax.f32 %v8909_v53, %v1915_v47  ;;  %2210 = vperm.xlu0 %6274, %v2103_v35   ;;  %v5959_v35 = vld [vmem:[%s8913_s1 + $0x6] ss:$0 sm:$0xff]  ;;  %v5958_v41 = vld [vmem:[%s8913_s1 + $0x5] ss:$0 sm:$0xff]  ;;  %v2244_v59 = vadd.s32 4294967295, %v2243_v7 }
 0x1c8   : > { %v5961_v53 = vld [vmem:[%s8913_s1 + $0x8] ss:$0 sm:$0xff] }
 0x1c9   : > { %v2104_v17 = vmax.f32 %v2062_v15, %v2063_v61  ;;  %v5960_v15 = vld [vmem:[%s8913_s1 + $0x7] ss:$0 sm:$0xff] }
 0x1ca   : > { %v1921_v40 = vpop.permute.xlu1 %1920  ;;  %v1919_v42 = vpop.permute.xlu0 %1918 }
 0x1cb   : > { %v2065_v31 = vmax.f32 %v8910_v60, %v1921_v40  ;;  %v2064_v27 = vmax.f32 %v8911_v9, %v1919_v42  ;;  %2213 = vperm.xlu1 %6275, %v2104_v17   ;;  %v8915_v17 = vld [vmem:[#allocation21_spill] sm:$0xff]  ;;  %v5962_v42 = vld [vmem:[%s8913_s1 + $0x9] ss:$0 sm:$0xff] }
 0x1cc   : > { %v7331_v40 = vsub.s32 %v2244_v59, %v8915_v17 }
 0x1cd   : > { %v2105_v54 = vmax.f32 %v2064_v27, %v2065_v31  ;;  %v5963_v31 = vld [vmem:[%s8913_s1 + $0xa] ss:$0 sm:$0xff] }
 0x1ce   : > { %v1925_v57 = vpop.permute.xlu1 %1924  ;;  %v1923_v14 = vpop.permute.xlu0 %1922 }
 0x1cf   : > { %v2067_v34 = vmax.f32 %v8912_v30, %v1925_v57  ;;  %v2066_v8 = vmax.f32 %v7048_v12, %v1923_v14  ;;  %2216 = vperm.xlu0 %6274, %v2105_v54   ;;  %v5964_v14 = vld [vmem:[%s8913_s1 + $0xb] ss:$0 sm:$0xff] }
 0x1d1   : > { %v2106_v48 = vmax.f32 %v2066_v8, %v2067_v34  ;;  %v5965_v34 = vld [vmem:[%s8913_s1 + $0xc] ss:$0 sm:$0xff] }
 0x1d2   : > { %v1929_v49 = vpop.permute.xlu1 %1928  ;;  %v1927_v1 = vpop.permute.xlu0 %1926 }
 0x1d3   : > { %v2069_v19 = vmax.f32 %v7060_v5, %v1929_v49  ;;  %v2068_v13 = vmax.f32 %v7064_v21, %v1927_v1  ;;  %2219 = vperm.xlu1 %6275, %v2106_v48  }
 0x1d5   : > { %v2107_v23 = vmax.f32 %v2068_v13, %v2069_v19 }
 0x1d6   : > { %v1933_v52 = vpop.permute.xlu1 %1932  ;;  %v1931_v56 = vpop.permute.xlu0 %1930 }
 0x1d7   : > { %v2071_v28 = vmax.f32 %v7074_v4, %v1933_v52  ;;  %v2070_v26 = vmax.f32 %v7079_v46, %v1931_v56  ;;  %2222 = vperm.xlu0 %6274, %v2107_v23   ;;  %v5967_v52 = vld [vmem:[%s8913_s1 + $0xe] ss:$0 sm:$0xff] }
 0x1d9   : > { %v2108_v50 = vmax.f32 %v2070_v26, %v2071_v28  ;;  %v5966_v28 = vld [vmem:[%s8913_s1 + $0xd] ss:$0 sm:$0xff] }
 0x1da   : > { %v1937_v33 = vpop.permute.xlu1 %1936  ;;  %v1935_v25 = vpop.permute.xlu0 %1934 }
 0x1db   : > { %v2073_v12 = vmax.f32 %v7091_v62, %v1937_v33  ;;  %v2072_v55 = vmax.f32 %v7095_v45, %v1935_v25  ;;  %2225 = vperm.xlu1 %6275, %v2108_v50  }
 0x1dd   : > { %v2109_v5 = vmax.f32 %v2072_v55, %v2073_v12  ;;  %v5969_v55 = vld [vmem:[%s8913_s1 + $0x10] ss:$0 sm:$0xff] }
 0x1de   : > { %v1941_v36 = vpop.permute.xlu1 %1940  ;;  %v1939_v24 = vpop.permute.xlu0 %1938 }
 0x1df   : > { %v2075_v21 = vmax.f32 %v7104_v10, %v1941_v36  ;;  %v2074_v16 = vmax.f32 %v7107_v20, %v1939_v24  ;;  %2228 = vperm.xlu0 %6274, %v2109_v5   ;;  %v5968_v5 = vld [vmem:[%s8913_s1 + $0xf] ss:$0 sm:$0xff]  ;;  %v5970_v24 = vld [vmem:[%s8913_s1 + $0x11] ss:$0 sm:$0xff] }
 0x1e1   : > { %v2110_v4 = vmax.f32 %v2074_v16, %v2075_v21  ;;  %v5971_v21 = vld [vmem:[%s8913_s1 + $0x12] ss:$0 sm:$0xff]  ;;  %v5973_v16 = vld [vmem:[%s8913_s1 + $0x14] ss:$0 sm:$0xff] }
 0x1e2   : > { %v1945_v43 = vpop.permute.xlu1 %1944  ;;  %v1943_v0 = vpop.permute.xlu0 %1942 }
 0x1e3   : > { %v2077_v46 = vmax.f32 %v7114_v38, %v1945_v43  ;;  %v2076_v3 = vmax.f32 %v7117_v2, %v1943_v0  ;;  %2231 = vperm.xlu1 %6275, %v2110_v4   ;;  %v5953_v38 = vld [vmem:[%s8913_s1] ss:$0 sm:$0xff]  ;;  %v5972_v4 = vld [vmem:[%s8913_s1 + $0x13] ss:$0 sm:$0xff]  ;;  %v5975_v43 = vld [vmem:[%s8913_s1 + $0x16] ss:$0 sm:$0xff] }
 0x1e5   : > { %v2111_v62 = vmax.f32 %v2076_v3, %v2077_v46  ;;  %v5974_v46 = vld [vmem:[%s8913_s1 + $0x15] ss:$0 sm:$0xff] }
 0x1e6   : > { %v1949_v6 = vpop.permute.xlu1 %1948  ;;  %v1947_v18 = vpop.permute.xlu0 %1946 }
 0x1e7   : > { %v2079_v45 = vmax.f32 %v7124_v37, %v1949_v6  ;;  %v2078_v32 = vmax.f32 %v7127_v44, %v1947_v18  ;;  %2234 = vperm.xlu0 %6274, %v2111_v62   ;;  %v5955_v37 = vld [vmem:[%s8913_s1 + $0x2] ss:$0 sm:$0xff]  ;;  %v5954_v44 = vld [vmem:[%s8913_s1 + $0x1] ss:$0 sm:$0xff]  ;;  %v5977_v62 = vld [vmem:[%s8913_s1 + $0x18] ss:$0 sm:$0xff] }
 0x1e8   : > { %v5976_v6 = vld [vmem:[%s8913_s1 + $0x17] ss:$0 sm:$0xff] }
 0x1e9   : > { %v2112_v10 = vmax.f32 %v2078_v32, %v2079_v45  ;;  %v5979_v32 = vld [vmem:[%s8913_s1 + $0x1a] ss:$0 sm:$0xff] }
 0x1ea   : > { %v1953_v29 = vpop.permute.xlu1 %1952  ;;  %v1951_v39 = vpop.permute.xlu0 %1950 }
 0x1eb   : > { %v2081_v20 = vmax.f32 %v7136_v58, %v1953_v29  ;;  %v2080_v51 = vmax.f32 %v7140_v11, %v1951_v39  ;;  %2237 = vperm.xlu1 %6275, %v2112_v10   ;;  %v5957_v58 = vld [vmem:[%s8913_s1 + $0x4] ss:$0 sm:$0xff]  ;;  %v5956_v11 = vld [vmem:[%s8913_s1 + $0x3] ss:$0 sm:$0xff]  ;;  %v5978_v10 = vld [vmem:[%s8913_s1 + $0x19] ss:$0 sm:$0xff] }
 0x1ed   : > { %v2113_v2 = vmax.f32 %v2080_v51, %v2081_v20 }
 0x1ef   : > { %2534 = vperm.xlu1 %6275, %v5953_v38   ;;  %2240 = vperm.xlu0 %6274, %v2113_v2   ;;  %v5981_v38 = vld [vmem:[%s8913_s1 + $0x1c] ss:$0 sm:$0xff]  ;;  %v5980_v2 = vld [vmem:[%s8913_s1 + $0x1b] ss:$0 sm:$0xff] }
 0x1f3   : > { %2542 = vperm.xlu1 %6275, %v5955_v37   ;;  %2538 = vperm.xlu0 %6274, %v5954_v44  }
 0x1f7   : > { %v2151_v63 = vpop.permute.xlu1 %2150  ;;  %2574 = vperm.xlu1 %6275, %v5957_v58   ;;  %2546 = vperm.xlu0 %6274, %v5956_v11   ;;  %v2148_v61 = vpop.permute.xlu0 %2147 }
 0x1f8   : > { %v2252_v9 = vrot.slane %v2151_v63, %v7331_v40  ;;  %v2248_v27 = vrot.slane %v2148_v61, %v7331_v40 }
 0x1fa   : > { %v2374_v8 = vsel %vm2373_vm3, %v2252_v9, %v2248_v27 }
 0x1fb   : > { %2582 = vperm.xlu1 %6275, %v5959_v35   ;;  %2578 = vperm.xlu0 %6274, %v5958_v41   ;;  %v2154_v47 = vpop.permute.xlu1 %2153  ;;  %v2157_v60 = vpop.permute.xlu0 %2156 }
 0x1fc   : > { %v2256_v54 = vrot.slane %v2154_v47, %v7331_v40  ;;  %v2260_v48 = vrot.slane %v2157_v60, %v7331_v40 }
 0x1fe   : > { %v2376_v49 = vsel %vm2375_vm4, %v2256_v54, %v2374_v8 }
 0x1ff   : > { %2634 = vperm.xlu1 %6275, %v5961_v53   ;;  %2586 = vperm.xlu0 %6274, %v5960_v15   ;;  %v2160_v57 = vpop.permute.xlu1 %2159  ;;  %v2378_v56 = vsel %vm2377_vm5, %v2260_v48, %v2376_v49 }
 0x200   : > { %v2264_v19 = vrot.slane %v2160_v57, %v7331_v40 }
 0x202   : > { %v2163_v30 = vpop.permute.xlu0 %2162  ;;  %v2380_v26 = vsel %vm2379_vm6, %v2264_v19, %v2378_v56 }
 0x203   : > { %2642 = vperm.xlu1 %6275, %v5963_v31   ;;  %2638 = vperm.xlu0 %6274, %v5962_v42   ;;  %v2268_v13 = vrot.slane %v2163_v30, %v7331_v40 }
 0x205   : > { %v2382_v33 = vsel %vm2381_vm7, %v2268_v13, %v2380_v26 }
 0x206   : > { %v2166_v1 = vpop.permute.xlu1 %2165 }
 0x207   : > { %2698 = vperm.xlu1 %6275, %v5965_v34   ;;  %2646 = vperm.xlu0 %6274, %v5964_v14   ;;  %v2272_v23 = vrot.slane %v2166_v1, %v7331_v40 }
 0x209   : > { %v2384_v25 = vsel %vm2383_vm8, %v2272_v23, %v2382_v33 }
 0x20a   : > { %v2169_v50 = vpop.permute.xlu0 %2168 }
 0x20b   : > { %v2276_v12 = vrot.slane %v2169_v50, %v7331_v40  ;;  %2706 = vperm.xlu1 %6275, %v5967_v52   ;;  %2702 = vperm.xlu0 %6274, %v5966_v28  }
 0x20d   : > { %v2386_v36 = vsel %vm2385_vm9, %v2276_v12, %v2384_v25 }
 0x20e   : > { %2413 = vst.msk [vmem:[#allocation2 + $0x1] sm:$0xff] %vm2412_vm10, %v2386_v36  ;;  %v2172_v0 = vpop.permute.xlu1 %2171 }
 0x20f   : > { %2742 = vperm.xlu1 %6275, %v5969_v55   ;;  %2710 = vperm.xlu0 %6274, %v5968_v5   ;;  %v2280_v37 = vrot.slane %v2172_v0, %v7331_v40 }
 0x212   : > { %v2175_v3 = vpop.permute.xlu0 %2174 }
 0x213   : > { %2750 = vperm.xlu1 %6275, %v5971_v21   ;;  %2746 = vperm.xlu0 %6274, %v5970_v24   ;;  %v2284_v20 = vrot.slane %v2175_v3, %v7331_v40 }
 0x215   : > { %v2387_v22 = vsel %vm2373_vm3, %v2284_v20, %v2280_v37 }
 0x216   : > { %v2178_v45 = vpop.permute.xlu1 %2177 }
 0x217   : > { %2802 = vperm.xlu1 %6275, %v5973_v16   ;;  %2754 = vperm.xlu0 %6274, %v5972_v4   ;;  %v2288_v39 = vrot.slane %v2178_v45, %v7331_v40 }
 0x219   : > { %v2388_v63 = vsel %vm2375_vm4, %v2288_v39, %v2387_v22 }
 0x21a   : > { %v2181_v18 = vpop.permute.xlu0 %2180 }
 0x21b   : > { %2810 = vperm.xlu1 %6275, %v5975_v43   ;;  %2806 = vperm.xlu0 %6274, %v5974_v46   ;;  %v2292_v44 = vrot.slane %v2181_v18, %v7331_v40 }
 0x21d   : > { %v2389_v41 = vsel %vm2377_vm5, %v2292_v44, %v2388_v63  ;;  %v7463_v44 = vld [vmem:[#allocation2] sm:$0xff] }
 0x21e   : > { %v2184_v29 = vpop.permute.xlu1 %2183 }
 0x21f   : > { %2866 = vperm.xlu1 %6275, %v5977_v62   ;;  %2814 = vperm.xlu0 %6274, %v5976_v6   ;;  %v2296_v58 = vrot.slane %v2184_v29, %v7331_v40 }
 0x221   : > { %v2390_v59 = vsel %vm2379_vm6, %v2296_v58, %v2389_v41 }
 0x222   : > { %v2187_v51 = vpop.permute.xlu0 %2186 }
 0x223   : > { %2874 = vperm.xlu1 %6275, %v5979_v32   ;;  %2870 = vperm.xlu0 %6274, %v5978_v10   ;;  %v2300_v7 = vrot.slane %v2187_v51, %v7331_v40 }
 0x225   : > { %v2391_v47 = vsel %vm2381_vm7, %v2300_v7, %v2390_v59 }
 0x226   : > { %v2190_v11 = vpop.permute.xlu1 %2189 }
 0x227   : > { %2910 = vperm.xlu1 %6275, %v5981_v38   ;;  %2878 = vperm.xlu0 %6274, %v5980_v2   ;;  %v2304_v35 = vrot.slane %v2190_v11, %v7331_v40 }
 0x229   : > { %v2392_v15 = vsel %vm2383_vm8, %v2304_v35, %v2391_v47 }
 0x22a   : > { %v2193_v61 = vpop.permute.xlu0 %2192 }
 0x22b   : > { %v2308_v53 = vrot.slane %v2193_v61, %v7331_v40 }
 0x22d   : > { %v2393_v17 = vsel %vm2385_vm9, %v2308_v53, %v2392_v15 }
 0x22e   : > { %2414 = vst.msk [vmem:[#allocation2 + $0x11] sm:$0xff] %vm2412_vm10, %v2393_v17  ;;  %v2196_v60 = vpop.permute.xlu1 %2195 }
 0x22f   : > { %v2312_v34 = vrot.slane %v2196_v60, %v7331_v40 }
 0x232   : > { %v2199_v31 = vpop.permute.xlu0 %2198 }
 0x233   : > { %v2316_v54 = vrot.slane %v2199_v31, %v7331_v40 }
 0x235   : > { %v2394_v49 = vsel %vm2373_vm3, %v2316_v54, %v2312_v34  ;;  %v7471_v7 = vld [vmem:[#allocation2 + $0x10] sm:$0xff] }
 0x236   : > { %v2202_v42 = vpop.permute.xlu1 %2201 }
 0x237   : > { %v2320_v57 = vrot.slane %v2202_v42, %v7331_v40 }
 0x239   : > { %v2395_v1 = vsel %vm2375_vm4, %v2320_v57, %v2394_v49 }
 0x23a   : > { %v2205_v9 = vpop.permute.xlu0 %2204 }
 0x23b   : > { %v2324_v14 = vrot.slane %v2205_v9, %v7331_v40 }
 0x23d   : > { %v2396_v23 = vsel %vm2377_vm5, %v2324_v14, %v2395_v1  ;;  %v2673_v14 = vld [vmem:[#allocation2 + $0x1] sm:$0xff]  ;;  %v2674_v1 = vld [vmem:[#allocation2 + $0x11] sm:$0xff] }
 0x23e   : > { %v2208_v27 = vpop.permute.xlu1 %2207 }
 0x23f   : > { %v2328_v8 = vrot.slane %v2208_v27, %v7331_v40 }
 0x241   : > { %v2397_v52 = vsel %vm2379_vm6, %v2328_v8, %v2396_v23 }
 0x242   : > { %v2211_v30 = vpop.permute.xlu0 %2210 }
 0x243   : > { %v2332_v19 = vrot.slane %v2211_v30, %v7331_v40 }
 0x245   : > { %v2398_v56 = vsel %vm2381_vm7, %v2332_v19, %v2397_v52 }
 0x246   : > { %v2214_v48 = vpop.permute.xlu1 %2213 }
 0x247   : > { %v2336_v13 = vrot.slane %v2214_v48, %v7331_v40 }
 0x249   : > { %v2399_v50 = vsel %vm2383_vm8, %v2336_v13, %v2398_v56 }
 0x24a   : > { %v2217_v28 = vpop.permute.xlu0 %2216 }
 0x24b   : > { %v2340_v26 = vrot.slane %v2217_v28, %v7331_v40 }
 0x24d   : > { %v2400_v33 = vsel %vm2385_vm9, %v2340_v26, %v2399_v50 }
 0x24e   : > { %2415 = vst.msk [vmem:[#allocation2 + $0x21] sm:$0xff] %vm2412_vm10, %v2400_v33  ;;  %v2220_v12 = vpop.permute.xlu1 %2219 }
 0x24f   : > { %v2344_v4 = vrot.slane %v2220_v12, %v7331_v40 }
 0x252   : > { %v2223_v25 = vpop.permute.xlu0 %2222 }
 0x253   : > { %v2348_v21 = vrot.slane %v2223_v25, %v7331_v40 }
 0x255   : > { %v2401_v3 = vsel %vm2373_vm3, %v2348_v21, %v2344_v4  ;;  %v2675_v19 = vld [vmem:[#allocation2 + $0x21] sm:$0xff] }
 0x256   : > { %v2226_v55 = vpop.permute.xlu1 %2225 }
 0x257   : > { %v2352_v24 = vrot.slane %v2226_v55, %v7331_v40 }
 0x259   : > { %v2402_v6 = vsel %vm2375_vm4, %v2352_v24, %v2401_v3 }
 0x25a   : > { %v2229_v5 = vpop.permute.xlu0 %2228 }
 0x25b   : > { %v2356_v43 = vrot.slane %v2229_v5, %v7331_v40 }
 0x25d   : > { %v2403_v18 = vsel %vm2377_vm5, %v2356_v43, %v2402_v6 }
 0x25e   : > { %v2232_v36 = vpop.permute.xlu1 %2231 }
 0x25f   : > { %v2360_v46 = vrot.slane %v2232_v36, %v7331_v40 }
 0x261   : > { %v2404_v32 = vsel %vm2379_vm6, %v2360_v46, %v2403_v18  ;;  %v5982_v46 = vld [vmem:[%s8913_s1 + $0x1d] ss:$0 sm:$0xff] }
 0x262   : > { %v2235_v16 = vpop.permute.xlu0 %2234 }
 0x263   : > { %v2364_v62 = vrot.slane %v2235_v16, %v7331_v40  ;;  %v5983_v16 = vld [vmem:[%s8913_s1 + $0x1e] ss:$0 sm:$0xff] }
 0x265   : > { %v2405_v20 = vsel %vm2381_vm7, %v2364_v62, %v2404_v32  ;;  %v5984_v62 = vld [vmem:[%s8913_s1 + $0x1f] ss:$0 sm:$0xff] }
 0x266   : > { %v2238_v0 = vpop.permute.xlu1 %2237 }
 0x267   : > { %v2368_v45 = vrot.slane %v2238_v0, %v7331_v40  ;;  %v7509_v0 = vld [vmem:[#allocation2 + $0x2] sm:$0xff] }
 0x269   : > { %v2406_v51 = vsel %vm2383_vm8, %v2368_v45, %v2405_v20 }
 0x26a   : > { %v7452_v10 = vpop.permute.xlu1 %2534  ;;  %v2241_v29 = vpop.permute.xlu0 %2240 }
 0x26b   : > { %v2372_v39 = vrot.slane %v2241_v29, %v7331_v40  ;;  %v7469_v40 = vld [vmem:[#allocation2 + $0x20] sm:$0xff] }
 0x26d   : > { %v2407_v38 = vsel %vm2385_vm9, %v2372_v39, %v2406_v51  ;;  %v2549_v39 = vmul.f32 %v7452_v10, %v7463_v44 }
 0x26e   : > { %2416 = vst.msk [vmem:[#allocation2 + $0x31] sm:$0xff] %vm2412_vm10, %v2407_v38  ;;  %v7459_v2 = vpop.permute.xlu1 %2542  ;;  %v7461_v37 = vpop.permute.xlu0 %2538 }
 0x272   : > { %v2575_v58 = vpop.permute.xlu1 %2574  ;;  %v7465_v11 = vpop.permute.xlu0 %2546 }
 0x273   : > { %v2589_v22 = vmul.f32 %v2575_v58, %v7463_v44 }
 0x275   : > { %2597 = vrot.lane.b32.xlu1 %v2589_v22, %s8916_s20  ;;  %v7477_v61 = vld [vmem:[#allocation2 + $0x30] sm:$0xff]  ;;  %v2551_v22 = vmul.f32 %v7459_v2, %v7469_v40 }
 0x276   : > { %v2583_v63 = vpop.permute.xlu1 %2582  ;;  %v2579_v35 = vpop.permute.xlu0 %2578  ;;  %v2676_v56 = vld [vmem:[#allocation2 + $0x31] sm:$0xff] }
 0x277   : > { %v2591_v41 = vmul.f32 %v2583_v63, %v7469_v40  ;;  %v2590_v59 = vmul.f32 %v2579_v35, %v7471_v7  ;;  %v2550_v63 = vmul.f32 %v7461_v37, %v7471_v7 }
 0x279   : > { %2601 = vrot.lane.b32.xlu1 %v2591_v41, %s8916_s20  ;;  %2599 = vrot.lane.b32.xlu0 %v2590_v59, %s8916_s20 }
 0x27a   : > { %v2635_v47 = vpop.permute.xlu1 %2634  ;;  %v2587_v53 = vpop.permute.xlu0 %2586 }
 0x27b   : > { %v2649_v15 = vmul.f32 %v2635_v47, %v7463_v44  ;;  %v2592_v17 = vmul.f32 %v2587_v53, %v7477_v61 }
 0x27d   : > { %2657 = vrot.lane.b32.xlu1 %v2649_v15, %s8917_s21  ;;  %2603 = vrot.lane.b32.xlu0 %v2592_v17, %s8916_s20  ;;  %v2552_v15 = vmul.f32 %v7465_v11, %v7477_v61 }
 0x27e   : > { %v2643_v60 = vpop.permute.xlu1 %2642  ;;  %v2639_v31 = vpop.permute.xlu0 %2638 }
 0x27f   : > { %v2651_v42 = vmul.f32 %v2643_v60, %v7469_v40  ;;  %v2650_v9 = vmul.f32 %v2639_v31, %v7471_v7 }
 0x281   : > { %2661 = vrot.lane.b32.xlu1 %v2651_v42, %s8917_s21  ;;  %2659 = vrot.lane.b32.xlu0 %v2650_v9, %s8917_s21 }
 0x282   : > { %v2699_v27 = vpop.permute.xlu1 %2698  ;;  %v2647_v54 = vpop.permute.xlu0 %2646 }
 0x283   : > { %v2652_v57 = vmul.f32 %v2647_v54, %v7477_v61  ;;  %v2713_v35 = vmul.f32 %v2699_v27, %v2673_v14 }
 0x285   : > { %2663 = vrot.lane.b32.xlu0 %v2652_v57, %s8917_s21 }
 0x286   : > { %v2707_v30 = vpop.permute.xlu1 %2706  ;;  %v2703_v34 = vpop.permute.xlu0 %2702 }
 0x287   : > { %v2715_v44 = vmul.f32 %v2707_v30, %v2675_v19  ;;  %v2714_v60 = vmul.f32 %v2703_v34, %v2674_v1 }
 0x28a   : > { %v2743_v8 = vpop.permute.xlu1 %2742  ;;  %v7489_v48 = vpop.permute.xlu0 %2710 }
 0x28b   : > { %v2757_v49 = vmul.f32 %v2743_v8, %v2673_v14  ;;  %v2716_v7 = vmul.f32 %v7489_v48, %v2676_v56 }
 0x28d   : > { %2765 = vrot.lane.b32.xlu1 %v2757_v49, %s8916_s20  ;;  %v7551_v49 = vld [vmem:[#allocation2 + $0x22] sm:$0xff] }
 0x28e   : > { %v2751_v13 = vpop.permute.xlu1 %2750  ;;  %v2747_v23 = vpop.permute.xlu0 %2746 }
 0x28f   : > { %v2759_v52 = vmul.f32 %v2751_v13, %v2675_v19  ;;  %v2758_v28 = vmul.f32 %v2747_v23, %v2674_v1  ;;  %v7557_v13 = vld [vmem:[#allocation2 + $0x12] sm:$0xff] }
 0x291   : > { %2769 = vrot.lane.b32.xlu1 %v2759_v52, %s8916_s20  ;;  %2767 = vrot.lane.b32.xlu0 %v2758_v28, %s8916_s20  ;;  %v5985_v52 = vld [vmem:[%s8913_s1 + $0x20] ss:$0 sm:$0xff] }
 0x292   : > { %v2803_v26 = vpop.permute.xlu1 %2802  ;;  %v2755_v50 = vpop.permute.xlu0 %2754 }
 0x293   : > { %v2817_v33 = vmul.f32 %v2803_v26, %v2673_v14  ;;  %v2760_v12 = vmul.f32 %v2755_v50, %v2676_v56  ;;  %v5987_v50 = vld [vmem:[%s8913_s1 + $0x22] ss:$0 sm:$0xff] }
 0x295   : > { %2825 = vrot.lane.b32.xlu1 %v2817_v33, %s8917_s21  ;;  %2771 = vrot.lane.b32.xlu0 %v2760_v12, %s8916_s20  ;;  %v5986_v12 = vld [vmem:[%s8913_s1 + $0x21] ss:$0 sm:$0xff] }
 0x296   : > { %v2811_v25 = vpop.permute.xlu1 %2810  ;;  %v2807_v55 = vpop.permute.xlu0 %2806 }
 0x297   : > { %v2819_v5 = vmul.f32 %v2811_v25, %v2675_v19  ;;  %v2818_v36 = vmul.f32 %v2807_v55, %v2674_v1  ;;  %v5988_v25 = vld [vmem:[%s8913_s1 + $0x23] ss:$0 sm:$0xff]  ;;  %s6350_s1 = smov 1  }
 0x299   : > { %2829 = vrot.lane.b32.xlu1 %v2819_v5, %s8917_s21  ;;  %2827 = vrot.lane.b32.xlu0 %v2818_v36, %s8917_s21 }
 0x29a   : > { %v7498_v21 = vpop.permute.xlu1 %2866  ;;  %v2815_v24 = vpop.permute.xlu0 %2814 }
 0x29b   : > { %v2820_v4 = vmul.f32 %v2815_v24, %v2676_v56  ;;  %v7564_v56 = vld [vmem:[#allocation2 + $0x32] sm:$0xff] }
 0x29d   : > { %2918 = vperm.xlu1 %6275, %v5983_v16   ;;  %2831 = vrot.lane.b32.xlu0 %v2820_v4, %s8917_s21 }
 0x29e   : > { %v7504_v43 = vpop.permute.xlu1 %2874  ;;  %v7516_v45 = vpop.permute.xlu0 %2870 }
 0x2a1   : > { %2914 = vperm.xlu0 %6274, %v5982_v46  }
 0x2a2   : > { %v2911_v3 = vpop.permute.xlu1 %2910  ;;  %v7518_v18 = vpop.permute.xlu0 %2878 }
 0x2a3   : > { %v2925_v6 = vmul.f32 %v2911_v3, %v7509_v0 }
 0x2a5   : > { %2933 = vrot.lane.b32.xlu1 %v2925_v6, %s8916_s20  ;;  %2922 = vperm.xlu0 %6274, %v5984_v62   ;;  %v5989_v6 = vld [vmem:[%s8790_s2] ss:$0 sm:$0xff] }
 0x2e7   : > { %v2598_v32 = vpop.permute.xlu1 %2597 }
 0x2e8   : > { %v2609_v51 = vadd.f32 %v2598_v32, %v2549_v39 }
 0x2eb   : > { %v2602_v29 = vpop.permute.xlu1 %2601  ;;  %v2600_v20 = vpop.permute.xlu0 %2599 }
 0x2ec   : > { %v2611_v59 = vadd.f32 %v2602_v29, %v2551_v22  ;;  %v2610_v47 = vadd.f32 %v2600_v20, %v2550_v63  ;;  %v5991_v20 = vld [vmem:[%s8790_s2 + $0x2] ss:$0 sm:$0xff]  ;;  %v5992_v22 = vld [vmem:[%s8790_s2 + $0x3] ss:$0 sm:$0xff]  ;;  %v5997_v63 = vld [vmem:[%s8792_s4] ss:$0 sm:$0xff] }
 0x2ef   : > { %v2658_v38 = vpop.permute.xlu1 %2657  ;;  %v2604_v58 = vpop.permute.xlu0 %2603 }
 0x2f0   : > { %v2669_v41 = vadd.f32 %v2658_v38, %v2609_v51  ;;  %v2612_v9 = vadd.f32 %v2604_v58, %v2552_v15  ;;  %v5993_v51 = vld [vmem:[%s8791_s3] ss:$0 sm:$0xff]  ;;  %v5990_v38 = vld [vmem:[%s8790_s2 + $0x1] ss:$0 sm:$0xff]  ;;  %v5995_v58 = vld [vmem:[%s8791_s3 + $0x2] ss:$0 sm:$0xff] }
 0x2f1   : > { %v5998_v15 = vld [vmem:[%s8792_s4 + $0x1] ss:$0 sm:$0xff] }
 0x2f2   : > { %v7526_v53 = vadd.f32 %v2713_v35, %v2669_v41  ;;  %v5994_v35 = vld [vmem:[%s8791_s3 + $0x1] ss:$0 sm:$0xff]  ;;  %v5999_v41 = vld [vmem:[%s8792_s4 + $0x2] ss:$0 sm:$0xff] }
 0x2f3   : > { %v2662_v17 = vpop.permute.xlu1 %2661  ;;  %v2660_v10 = vpop.permute.xlu0 %2659 }
 0x2f4   : > { %v2671_v31 = vadd.f32 %v2662_v17, %v2611_v59  ;;  %v2670_v42 = vadd.f32 %v2660_v10, %v2610_v47  ;;  %v5996_v59 = vld [vmem:[%s8791_s3 + $0x3] ss:$0 sm:$0xff]  ;;  %v6001_v47 = vld [vmem:[%s8792_s4 + $0x4] ss:$0 sm:$0xff]  ;;  %v6003_v17 = vld [vmem:[%s8792_s4 + $0x6] ss:$0 sm:$0xff] }
 0x2f5   : > { %v6000_v10 = vld [vmem:[%s8792_s4 + $0x3] ss:$0 sm:$0xff] }
 0x2f6   : > { %v7530_v2 = vadd.f32 %v2715_v44, %v2671_v31  ;;  %v7532_v40 = vadd.f32 %v2714_v60, %v2670_v42  ;;  %v6005_v44 = vld [vmem:[%s8792_s4 + $0x8] ss:$0 sm:$0xff]  ;;  %v6002_v60 = vld [vmem:[%s8792_s4 + $0x5] ss:$0 sm:$0xff]  ;;  %v6007_v31 = vld [vmem:[%s8792_s4 + $0xa] ss:$0 sm:$0xff] }
 0x2f7   : > { %v2664_v37 = vpop.permute.xlu0 %2663  ;;  %v6004_v42 = vld [vmem:[%s8792_s4 + $0x7] ss:$0 sm:$0xff] }
 0x2f8   : > { %v2672_v27 = vadd.f32 %v2664_v37, %v2612_v9  ;;  %v6009_v9 = vld [vmem:[%s8792_s4 + $0xc] ss:$0 sm:$0xff]  ;;  %v6006_v37 = vld [vmem:[%s8792_s4 + $0x9] ss:$0 sm:$0xff] }
 0x2fa   : > { %v7535_v54 = vadd.f32 %v2716_v7, %v2672_v27  ;;  %v6011_v7 = vld [vmem:[%s8792_s4 + $0xe] ss:$0 sm:$0xff]  ;;  %v6008_v27 = vld [vmem:[%s8792_s4 + $0xb] ss:$0 sm:$0xff] }
 0x2ff   : > { %v7537_v57 = vpop.permute.xlu1 %2765 }
 0x303   : > { %v7539_v11 = vpop.permute.xlu0 %2767  ;;  %v7541_v61 = vpop.permute.xlu1 %2769 }
 0x307   : > { %v7543_v30 = vpop.permute.xlu0 %2771  ;;  %v7545_v34 = vpop.permute.xlu1 %2825 }
 0x30b   : > { %v7547_v14 = vpop.permute.xlu0 %2827  ;;  %v7549_v8 = vpop.permute.xlu1 %2829 }
 0x30f   : > { %v7553_v48 = vpop.permute.xlu0 %2831 }
 0x318   : > { %v2919_v19 = vpop.permute.xlu1 %2918 }
 0x319   : > { %v2927_v1 = vmul.f32 %v2919_v19, %v7551_v49  ;;  %v6013_v19 = vld [vmem:[%s8792_s4 + $0x10] ss:$0 sm:$0xff] }
 0x31b   : > { %2937 = vrot.lane.b32.xlu1 %v2927_v1, %s8916_s20  ;;  %v6010_v1 = vld [vmem:[%s8792_s4 + $0xd] ss:$0 sm:$0xff] }
 0x31c   : > { %v2915_v23 = vpop.permute.xlu0 %2914  ;;  %v7577_v55 = vpop.permute.xlu1 %2933 }
 0x31d   : > { %v2926_v28 = vmul.f32 %v2915_v23, %v7557_v13  ;;  %v6015_v23 = vld [vmem:[%s8792_s4 + $0x12] ss:$0 sm:$0xff] }
 0x31f   : > { %2970 = vperm.xlu1 %6275, %v5985_v52   ;;  %2935 = vrot.lane.b32.xlu0 %v2926_v28, %s8916_s20  ;;  %v6012_v52 = vld [vmem:[%s8792_s4 + $0xf] ss:$0 sm:$0xff]  ;;  %v6017_v28 = vld [vmem:[%s8792_s4 + $0x14] ss:$0 sm:$0xff] }
 0x320   : > { %v2923_v26 = vpop.permute.xlu0 %2922 }
 0x321   : > { %v2928_v33 = vmul.f32 %v2923_v26, %v7564_v56  ;;  %v6014_v26 = vld [vmem:[%s8792_s4 + $0x11] ss:$0 sm:$0xff] }
 0x323   : > { %2978 = vperm.xlu1 %6275, %v5987_v50   ;;  %2939 = vrot.lane.b32.xlu0 %v2928_v33, %s8916_s20  ;;  %v6019_v50 = vld [vmem:[%s8792_s4 + $0x16] ss:$0 sm:$0xff]  ;;  %v6016_v33 = vld [vmem:[%s8792_s4 + $0x13] ss:$0 sm:$0xff] }
 0x327   : > { %2974 = vperm.xlu0 %6274, %v5986_v12   ;;  %v6021_v12 = vld [vmem:[%s8792_s4 + $0x18] ss:$0 sm:$0xff] }
 0x32b   : > { %2982 = vperm.xlu0 %6274, %v5988_v25   ;;  %v6018_v25 = vld [vmem:[%s8792_s4 + $0x15] ss:$0 sm:$0xff] }
 0x38d   : > { %v7579_v5 = vpop.permute.xlu1 %2937 }
 0x391   : > { %v7581_v36 = vpop.permute.xlu0 %2935 }
 0x395   : > { %v7585_v4 = vpop.permute.xlu0 %2939 }
 0x39a   : > { %v2971_v24 = vpop.permute.xlu1 %2970 }
 0x39b   : > { %v2985_v16 = vmul.f32 %v2971_v24, %v7509_v0  ;;  %v6023_v24 = vld [vmem:[%s8792_s4 + $0x1a] ss:$0 sm:$0xff] }
 0x39d   : > { %2993 = vrot.lane.b32.xlu1 %v2985_v16, %s8917_s21  ;;  %v6020_v16 = vld [vmem:[%s8792_s4 + $0x17] ss:$0 sm:$0xff] }
 0x39e   : > { %v2979_v46 = vpop.permute.xlu1 %2978 }
 0x39f   : > { %v2987_v3 = vmul.f32 %v2979_v46, %v7551_v49  ;;  %v6025_v46 = vld [vmem:[%s8792_s4 + $0x1c] ss:$0 sm:$0xff] }
 0x3a1   : > { %2997 = vrot.lane.b32.xlu1 %v2987_v3, %s8917_s21  ;;  %v6022_v3 = vld [vmem:[%s8792_s4 + $0x19] ss:$0 sm:$0xff] }
 0x3a2   : > { %v2975_v62 = vpop.permute.xlu0 %2974 }
 0x3a3   : > { %v2986_v32 = vmul.f32 %v2975_v62, %v7557_v13  ;;  %v6027_v62 = vld [vmem:[%s8792_s4 + $0x1e] ss:$0 sm:$0xff] }
 0x3a5   : > { %3030 = vperm.xlu1 %6275, %v5989_v6   ;;  %2995 = vrot.lane.b32.xlu0 %v2986_v32, %s8917_s21  ;;  %v6024_v6 = vld [vmem:[%s8792_s4 + $0x1b] ss:$0 sm:$0xff]  ;;  %v6029_v32 = vld [vmem:[%s8793_s5] ss:$0 sm:$0xff] }
 0x3a6   : > { %v2983_v29 = vpop.permute.xlu0 %2982 }
 0x3a7   : > { %v2988_v39 = vmul.f32 %v2983_v29, %v7564_v56  ;;  %v6026_v29 = vld [vmem:[%s8792_s4 + $0x1d] ss:$0 sm:$0xff] }
 0x3a9   : > { %3038 = vperm.xlu1 %6275, %v5991_v20   ;;  %2999 = vrot.lane.b32.xlu0 %v2988_v39, %s8917_s21  ;;  %v6031_v20 = vld [vmem:[%s8793_s5 + $0x2] ss:$0 sm:$0xff]  ;;  %v6028_v39 = vld [vmem:[%s8792_s4 + $0x1f] ss:$0 sm:$0xff] }
 0x3ad   : > { %3070 = vperm.xlu1 %6275, %v5993_v51   ;;  %3034 = vperm.xlu0 %6274, %v5990_v38   ;;  %v6033_v51 = vld [vmem:[%s8793_s5 + $0x4] ss:$0 sm:$0xff]  ;;  %v6030_v38 = vld [vmem:[%s8793_s5 + $0x1] ss:$0 sm:$0xff] }
 0x3b1   : > { %3078 = vperm.xlu1 %6275, %v5995_v58   ;;  %3042 = vperm.xlu0 %6274, %v5992_v22   ;;  %v6035_v58 = vld [vmem:[%s8793_s5 + $0x6] ss:$0 sm:$0xff]  ;;  %v6032_v22 = vld [vmem:[%s8793_s5 + $0x3] ss:$0 sm:$0xff] }
 0x3b5   : > { %3134 = vperm.xlu1 %6275, %v5997_v63   ;;  %3074 = vperm.xlu0 %6274, %v5994_v35   ;;  %v6037_v63 = vld [vmem:[%s8794_s6] ss:$0 sm:$0xff]  ;;  %v6034_v35 = vld [vmem:[%s8793_s5 + $0x5] ss:$0 sm:$0xff] }
 0x3b9   : > { %3142 = vperm.xlu1 %6275, %v5999_v41   ;;  %3082 = vperm.xlu0 %6274, %v5996_v59   ;;  %v6039_v41 = vld [vmem:[%s8794_s6 + $0x2] ss:$0 sm:$0xff]  ;;  %v6036_v59 = vld [vmem:[%s8793_s5 + $0x7] ss:$0 sm:$0xff] }
 0x3bd   : > { %3150 = vperm.xlu1 %6275, %v6001_v47   ;;  %3138 = vperm.xlu0 %6274, %v5998_v15   ;;  %v6041_v47 = vld [vmem:[%s8794_s6 + $0x4] ss:$0 sm:$0xff]  ;;  %v6038_v15 = vld [vmem:[%s8794_s6 + $0x1] ss:$0 sm:$0xff] }
 0x3c1   : > { %3158 = vperm.xlu1 %6275, %v6003_v17   ;;  %3146 = vperm.xlu0 %6274, %v6000_v10   ;;  %v6043_v17 = vld [vmem:[%s8794_s6 + $0x6] ss:$0 sm:$0xff]  ;;  %v6040_v10 = vld [vmem:[%s8794_s6 + $0x3] ss:$0 sm:$0xff] }
 0x3c5   : > { %3222 = vperm.xlu1 %6275, %v6005_v44   ;;  %3154 = vperm.xlu0 %6274, %v6002_v60   ;;  %v6042_v44 = vld [vmem:[%s8794_s6 + $0x5] ss:$0 sm:$0xff] }
 0x3c9   : > { %3230 = vperm.xlu1 %6275, %v6007_v31   ;;  %3162 = vperm.xlu0 %6274, %v6004_v42   ;;  %v6044_v31 = vld [vmem:[%s8794_s6 + $0x7] ss:$0 sm:$0xff] }
 0x3cd   : > { %3238 = vperm.xlu1 %6275, %v6009_v9   ;;  %3226 = vperm.xlu0 %6274, %v6006_v37  }
 0x3d1   : > { %3246 = vperm.xlu1 %6275, %v6011_v7   ;;  %3234 = vperm.xlu0 %6274, %v6008_v27  }
 0x3d5   : > { %3310 = vperm.xlu1 %6275, %v6013_v19   ;;  %3242 = vperm.xlu0 %6274, %v6010_v1  }
 0x3d9   : > { %3318 = vperm.xlu1 %6275, %v6015_v23   ;;  %3250 = vperm.xlu0 %6274, %v6012_v52  }
 0x3dd   : > { %3326 = vperm.xlu1 %6275, %v6017_v28   ;;  %3314 = vperm.xlu0 %6274, %v6014_v26   ;;  %v2777_v28 = vadd.f32 %v7537_v57, %v7526_v53  ;;  %v2778_v26 = vadd.f32 %v7539_v11, %v7532_v40 }
 0x3e1   : > { %3334 = vperm.xlu1 %6275, %v6019_v50   ;;  %3322 = vperm.xlu0 %6274, %v6016_v33   ;;  %v2837_v50 = vadd.f32 %v7545_v34, %v2777_v28  ;;  %v2838_v33 = vadd.f32 %v7547_v14, %v2778_v26  ;;  %v2780_v28 = vadd.f32 %v7543_v30, %v7535_v54 }
 0x3e5   : > { %3398 = vperm.xlu1 %6275, %v6021_v12   ;;  %3330 = vperm.xlu0 %6274, %v6018_v25  }
 0x3e9   : > { %3406 = vperm.xlu1 %6275, %v6023_v24   ;;  %3338 = vperm.xlu0 %6274, %v6020_v16   ;;  %v2881_v24 = vmul.f32 %v7498_v21, %v7509_v0  ;;  %v2882_v16 = vmul.f32 %v7516_v45, %v7557_v13  ;;  %v2779_v0 = vadd.f32 %v7541_v61, %v7530_v2 }
 0x3ed   : > { %3414 = vperm.xlu1 %6275, %v6025_v46   ;;  %3402 = vperm.xlu0 %6274, %v6022_v3   ;;  %v2885_v46 = vadd.f32 %v2881_v24, %v2837_v50  ;;  %v2886_v3 = vadd.f32 %v2882_v16, %v2838_v33 }
 0x3ef   : > { %v2945_v53 = vadd.f32 %v7577_v55, %v2885_v46  ;;  %v2946_v40 = vadd.f32 %v7581_v36, %v2886_v3  ;;  %v2883_v55 = vmul.f32 %v7504_v43, %v7551_v49 }
 0x3f1   : > { %3422 = vperm.xlu1 %6275, %v6027_v62   ;;  %3410 = vperm.xlu0 %6274, %v6024_v6  }
 0x3f5   : > { %3486 = vperm.xlu1 %6275, %v6029_v32   ;;  %3418 = vperm.xlu0 %6274, %v6026_v29  }
 0x3f9   : > { %3494 = vperm.xlu1 %6275, %v6031_v20   ;;  %3426 = vperm.xlu0 %6274, %v6028_v39   ;;  %v2839_v39 = vadd.f32 %v7549_v8, %v2779_v0 }
 0x3fd   : > { %3502 = vperm.xlu1 %6275, %v6033_v51   ;;  %3490 = vperm.xlu0 %6274, %v6030_v38  }
 0x401   : > { %3510 = vperm.xlu1 %6275, %v6035_v58   ;;  %3498 = vperm.xlu0 %6274, %v6032_v22  }
 0x405   : > { %3566 = vperm.xlu1 %6275, %v6037_v63   ;;  %3506 = vperm.xlu0 %6274, %v6034_v35   ;;  %v2887_v35 = vadd.f32 %v2883_v55, %v2839_v39 }
 0x409   : > { %3574 = vperm.xlu1 %6275, %v6039_v41   ;;  %3514 = vperm.xlu0 %6274, %v6036_v59   ;;  %v2947_v59 = vadd.f32 %v7579_v5, %v2887_v35 }
 0x40d   : > { %3582 = vperm.xlu1 %6275, %v6041_v47   ;;  %3570 = vperm.xlu0 %6274, %v6038_v15  }
 0x40f   : > { %v2994_v60 = vpop.permute.xlu1 %2993 }
 0x410   : > { %v3005_v57 = vadd.f32 %v2994_v60, %v2945_v53 }
 0x411   : > { %3590 = vperm.xlu1 %6275, %v6043_v17   ;;  %3578 = vperm.xlu0 %6274, %v6040_v10  }
 0x413   : > { %v2998_v42 = vpop.permute.xlu1 %2997 }
 0x414   : > { %v3007_v17 = vadd.f32 %v2998_v42, %v2947_v59 }
 0x415   : > { %3586 = vperm.xlu0 %6274, %v6042_v44  }
 0x417   : > { %v2996_v9 = vpop.permute.xlu0 %2995 }
 0x418   : > { %v3006_v11 = vadd.f32 %v2996_v9, %v2946_v40 }
 0x419   : > { %3594 = vperm.xlu0 %6274, %v6044_v31  }
 0x41b   : > { %v7761_v7 = vpop.permute.xlu0 %2999 }
 0x420   : > { %v3031_v37 = vpop.permute.xlu1 %3030 }
 0x421   : > { %v3045_v32 = vmul.f32 %v3031_v37, %v3005_v57 }
 0x424   : > { %v3039_v27 = vpop.permute.xlu1 %3038 }
 0x425   : > { %v3047_v8 = vmul.f32 %v3039_v27, %v3007_v17  ;;  %v2840_v27 = vadd.f32 %v7553_v48, %v2780_v28 }
 0x428   : > { %v3071_v19 = vpop.permute.xlu1 %3070  ;;  %v3035_v1 = vpop.permute.xlu0 %3034 }
 0x429   : > { %v3046_v29 = vmul.f32 %v3035_v1, %v3006_v11  ;;  %v3085_v20 = vadd.f32 %v3071_v19, %v3045_v32 }
 0x42b   : > { %v3089_v51 = vmax.f32 %v3085_v20, 0.0 }
 0x42c   : > { %v3079_v23 = vpop.permute.xlu1 %3078  ;;  %v7763_v52 = vpop.permute.xlu0 %3042 }
 0x42d   : > { %v3087_v37 = vadd.f32 %v3079_v23, %v3047_v8  ;;  %v2884_v23 = vmul.f32 %v7518_v18, %v7564_v56 }
 0x42f   : > { %v2888_v54 = vadd.f32 %v2884_v23, %v2840_v27 }
 0x430   : > { %v3135_v12 = vpop.permute.xlu1 %3134  ;;  %v3075_v25 = vpop.permute.xlu0 %3074 }
 0x431   : > { %v3086_v21 = vadd.f32 %v3075_v25, %v3046_v29  ;;  %v3165_v22 = vmul.f32 %v3135_v12, %v3089_v51  ;;  %v3091_v25 = vmax.f32 %v3087_v37, 0.0 }
 0x433   : > { %v3090_v38 = vmax.f32 %v3086_v21, 0.0 }
 0x434   : > { %v3143_v62 = vpop.permute.xlu1 %3142  ;;  %v7775_v6 = vpop.permute.xlu0 %3082 }
 0x435   : > { %v3167_v2 = vmul.f32 %v3143_v62, %v3089_v51 }
 0x438   : > { %v3151_v34 = vpop.permute.xlu1 %3150  ;;  %v3139_v14 = vpop.permute.xlu0 %3138 }
 0x439   : > { %v3169_v31 = vmul.f32 %v3151_v34, %v3089_v51  ;;  %v3166_v9 = vmul.f32 %v3139_v14, %v3089_v51  ;;  %v2948_v14 = vadd.f32 %v7585_v4, %v2888_v54 }
 0x43b   : > { %v3008_v20 = vadd.f32 %v7761_v7, %v2948_v14 }
 0x43c   : > { %v3159_v45 = vpop.permute.xlu1 %3158  ;;  %v3147_v13 = vpop.permute.xlu0 %3146 }
 0x43d   : > { %v3171_v50 = vmul.f32 %v3159_v45, %v3089_v51  ;;  %v3168_v33 = vmul.f32 %v3147_v13, %v3089_v51  ;;  %v3048_v18 = vmul.f32 %v7763_v52, %v3008_v20 }
 0x43f   : > { %v3088_v55 = vadd.f32 %v7775_v6, %v3048_v18 }
 0x440   : > { %v3223_v36 = vpop.permute.xlu1 %3222  ;;  %v3155_v58 = vpop.permute.xlu0 %3154 }
 0x441   : > { %v3253_v63 = vmul.f32 %v3223_v36, %v3090_v38  ;;  %v3170_v62 = vmul.f32 %v3155_v58, %v3089_v51  ;;  %v3092_v35 = vmax.f32 %v3088_v55, 0.0 }
 0x443   : > { %v3261_v41 = vadd.f32 %v3253_v63, %v3165_v22 }
 0x444   : > { %v3231_v47 = vpop.permute.xlu1 %3230  ;;  %v3163_v15 = vpop.permute.xlu0 %3162 }
 0x445   : > { %v3255_v61 = vmul.f32 %v3231_v47, %v3090_v38  ;;  %v3172_v32 = vmul.f32 %v3163_v15, %v3089_v51 }
 0x447   : > { %v3263_v10 = vadd.f32 %v3255_v61, %v3167_v2 }
 0x448   : > { %v3239_v44 = vpop.permute.xlu1 %3238  ;;  %v3227_v60 = vpop.permute.xlu0 %3226 }
 0x449   : > { %v3257_v43 = vmul.f32 %v3239_v44, %v3090_v38  ;;  %v3254_v49 = vmul.f32 %v3227_v60, %v3090_v38 }
 0x44b   : > { %v3265_v19 = vadd.f32 %v3257_v43, %v3169_v31  ;;  %v3262_v1 = vadd.f32 %v3254_v49, %v3166_v9 }
 0x44c   : > { %v3247_v5 = vpop.permute.xlu1 %3246  ;;  %v3235_v26 = vpop.permute.xlu0 %3234 }
 0x44d   : > { %v3259_v12 = vmul.f32 %v3247_v5, %v3090_v38  ;;  %v3256_v42 = vmul.f32 %v3235_v26, %v3090_v38 }
 0x44f   : > { %v3267_v24 = vadd.f32 %v3259_v12, %v3171_v50  ;;  %v3264_v16 = vadd.f32 %v3256_v42, %v3168_v33 }
 0x450   : > { %v3311_v46 = vpop.permute.xlu1 %3310  ;;  %v3243_v3 = vpop.permute.xlu0 %3242 }
 0x451   : > { %v3341_v53 = vmul.f32 %v3311_v46, %v3091_v25  ;;  %v3258_v40 = vmul.f32 %v3243_v3, %v3090_v38 }
 0x453   : > { %v3349_v30 = vadd.f32 %v3341_v53, %v3261_v41  ;;  %v3266_v57 = vadd.f32 %v3258_v40, %v3170_v62 }
 0x454   : > { %v3319_v11 = vpop.permute.xlu1 %3318  ;;  %v3251_v34 = vpop.permute.xlu0 %3250 }
 0x455   : > { %v3343_v48 = vmul.f32 %v3319_v11, %v3091_v25  ;;  %v3260_v29 = vmul.f32 %v3251_v34, %v3090_v38 }
 0x457   : > { %v3351_v21 = vadd.f32 %v3343_v48, %v3263_v10  ;;  %v3268_v0 = vadd.f32 %v3260_v29, %v3172_v32 }
 0x458   : > { %v3327_v45 = vpop.permute.xlu1 %3326  ;;  %v3315_v13 = vpop.permute.xlu0 %3314 }
 0x459   : > { %v3345_v56 = vmul.f32 %v3327_v45, %v3091_v25  ;;  %v3342_v39 = vmul.f32 %v3315_v13, %v3091_v25 }
 0x45b   : > { %v3353_v36 = vadd.f32 %v3345_v56, %v3265_v19  ;;  %v3350_v58 = vadd.f32 %v3342_v39, %v3262_v1 }
 0x45c   : > { %v3335_v22 = vpop.permute.xlu1 %3334  ;;  %v3323_v63 = vpop.permute.xlu0 %3322 }
 0x45d   : > { %v3347_v4 = vmul.f32 %v3335_v22, %v3091_v25  ;;  %v3344_v51 = vmul.f32 %v3323_v63, %v3091_v25 }
 0x45f   : > { %v3355_v38 = vadd.f32 %v3347_v4, %v3267_v24  ;;  %v3352_v41 = vadd.f32 %v3344_v51, %v3264_v16 }
 0x460   : > { %v3399_v7 = vpop.permute.xlu1 %3398  ;;  %v3331_v59 = vpop.permute.xlu0 %3330 }
 0x461   : > { %v3429_v47 = vmul.f32 %v3399_v7, %v3092_v35  ;;  %v3346_v15 = vmul.f32 %v3331_v59, %v3091_v25  ;;  %v6045_v59 = vld [vmem:[%s8795_s7] ss:$0 sm:$0xff] }
 0x463   : > { %v3354_v2 = vadd.f32 %v3346_v15, %v3266_v57  ;;  %v3437_v61 = vadd.f32 %v3429_v47, %v3349_v30 }
 0x464   : > { %v3407_v52 = vpop.permute.xlu1 %3406  ;;  %v3339_v17 = vpop.permute.xlu0 %3338 }
 0x465   : > { %v3431_v10 = vmul.f32 %v3407_v52, %v3092_v35  ;;  %v3348_v8 = vmul.f32 %v3339_v17, %v3091_v25  ;;  %v6047_v52 = vld [vmem:[%s8795_s7 + $0x2] ss:$0 sm:$0xff] }
 0x467   : > { %v3356_v6 = vadd.f32 %v3348_v8, %v3268_v0  ;;  %v3439_v44 = vadd.f32 %v3431_v10, %v3351_v21  ;;  %v6049_v10 = vld [vmem:[%s8795_s7 + $0x4] ss:$0 sm:$0xff]  ;;  %v6046_v8 = vld [vmem:[%s8795_s7 + $0x1] ss:$0 sm:$0xff] }
 0x468   : > { %v3415_v60 = vpop.permute.xlu1 %3414  ;;  %v3403_v31 = vpop.permute.xlu0 %3402 }
 0x469   : > { %v3433_v9 = vmul.f32 %v3415_v60, %v3092_v35  ;;  %v3430_v43 = vmul.f32 %v3403_v31, %v3092_v35  ;;  %v6053_v60 = vld [vmem:[%s8795_s7 + $0x8] ss:$0 sm:$0xff]  ;;  %v6050_v31 = vld [vmem:[%s8795_s7 + $0x5] ss:$0 sm:$0xff] }
 0x46b   : > { %v3441_v49 = vadd.f32 %v3433_v9, %v3353_v36  ;;  %v3438_v37 = vadd.f32 %v3430_v43, %v3350_v58  ;;  %v6055_v9 = vld [vmem:[%s8795_s7 + $0xa] ss:$0 sm:$0xff]  ;;  %v6052_v43 = vld [vmem:[%s8795_s7 + $0x7] ss:$0 sm:$0xff] }
 0x46c   : > { %v3423_v19 = vpop.permute.xlu1 %3422  ;;  %v3411_v1 = vpop.permute.xlu0 %3410 }
 0x46d   : > { %v3435_v28 = vmul.f32 %v3423_v19, %v3092_v35  ;;  %v3432_v5 = vmul.f32 %v3411_v1, %v3092_v35  ;;  %v6059_v19 = vld [vmem:[%s8795_s7 + $0xe] ss:$0 sm:$0xff]  ;;  %v6056_v1 = vld [vmem:[%s8795_s7 + $0xb] ss:$0 sm:$0xff] }
 0x46f   : > { %v3443_v26 = vadd.f32 %v3435_v28, %v3355_v38  ;;  %v3440_v50 = vadd.f32 %v3432_v5, %v3352_v41  ;;  %v6061_v28 = vld [vmem:[%s8795_s7 + $0x10] ss:$0 sm:$0xff]  ;;  %v6058_v5 = vld [vmem:[%s8795_s7 + $0xd] ss:$0 sm:$0xff] }
 0x470   : > { %v3487_v33 = vpop.permute.xlu1 %3486  ;;  %v3419_v12 = vpop.permute.xlu0 %3418 }
 0x471   : > { %v3434_v42 = vmul.f32 %v3419_v12, %v3092_v35  ;;  %v3517_v40 = vmul.f32 %v3487_v33, %v3437_v61  ;;  %v6065_v33 = vld [vmem:[%s8795_s7 + $0x14] ss:$0 sm:$0xff]  ;;  %v6062_v12 = vld [vmem:[%s8795_s7 + $0x11] ss:$0 sm:$0xff] }
 0x473   : > { %v3442_v27 = vadd.f32 %v3434_v42, %v3354_v2  ;;  %v6067_v42 = vld [vmem:[%s8795_s7 + $0x16] ss:$0 sm:$0xff] }
 0x474   : > { %v3495_v24 = vpop.permute.xlu1 %3494  ;;  %v3427_v25 = vpop.permute.xlu0 %3426 }
 0x475   : > { %v3436_v16 = vmul.f32 %v3427_v25, %v3092_v35  ;;  %v3519_v11 = vmul.f32 %v3495_v24, %v3439_v44  ;;  %v6048_v44 = vld [vmem:[%s8795_s7 + $0x3] ss:$0 sm:$0xff]  ;;  %v6069_v24 = vld [vmem:[%s8795_s7 + $0x18] ss:$0 sm:$0xff]  ;;  %v6066_v25 = vld [vmem:[%s8795_s7 + $0x15] ss:$0 sm:$0xff] }
 0x477   : > { %v3444_v46 = vadd.f32 %v3436_v16, %v3356_v6  ;;  %v6051_v6 = vld [vmem:[%s8795_s7 + $0x6] ss:$0 sm:$0xff]  ;;  %v6071_v16 = vld [vmem:[%s8795_s7 + $0x1a] ss:$0 sm:$0xff] }
 0x478   : > { %v3503_v3 = vpop.permute.xlu1 %3502  ;;  %v3491_v23 = vpop.permute.xlu0 %3490 }
 0x479   : > { %v3521_v29 = vmul.f32 %v3503_v3, %v3441_v49  ;;  %v3518_v20 = vmul.f32 %v3491_v23, %v3438_v37  ;;  %v6057_v49 = vld [vmem:[%s8795_s7 + $0xc] ss:$0 sm:$0xff]  ;;  %v6054_v37 = vld [vmem:[%s8795_s7 + $0x9] ss:$0 sm:$0xff]  ;;  %v6073_v3 = vld [vmem:[%s8795_s7 + $0x1c] ss:$0 sm:$0xff] }
 0x47a   : > { %v6070_v23 = vld [vmem:[%s8795_s7 + $0x19] ss:$0 sm:$0xff] }
 0x47c   : > { %v3511_v62 = vpop.permute.xlu1 %3510  ;;  %v3499_v53 = vpop.permute.xlu0 %3498 }
 0x47d   : > { %v3523_v56 = vmul.f32 %v3511_v62, %v3443_v26  ;;  %v3520_v39 = vmul.f32 %v3499_v53, %v3440_v50  ;;  %v6063_v26 = vld [vmem:[%s8795_s7 + $0x12] ss:$0 sm:$0xff]  ;;  %v6060_v50 = vld [vmem:[%s8795_s7 + $0xf] ss:$0 sm:$0xff]  ;;  %v6075_v62 = vld [vmem:[%s8795_s7 + $0x1e] ss:$0 sm:$0xff] }
 0x47e   : > { %v6072_v53 = vld [vmem:[%s8795_s7 + $0x1b] ss:$0 sm:$0xff] }
 0x480   : > { %v3567_v54 = vpop.permute.xlu1 %3566  ;;  %v3507_v30 = vpop.permute.xlu0 %3506 }
 0x481   : > { %v3597_v57 = vadd.f32 %v3567_v54, %v3517_v40  ;;  %v3522_v51 = vmul.f32 %v3507_v30, %v3442_v27  ;;  %v6064_v27 = vld [vmem:[%s8795_s7 + $0x13] ss:$0 sm:$0xff]  ;;  %v6077_v40 = vld [vmem:[%s8795_s7 + $0x20] ss:$0 sm:$0xff]  ;;  %v6074_v54 = vld [vmem:[%s8795_s7 + $0x1d] ss:$0 sm:$0xff] }
 0x482   : > { %v6079_v30 = vld [vmem:[%s8795_s7 + $0x22] ss:$0 sm:$0xff] }
 0x483   : > { %v3605_v34 = vmax.f32 %v3597_v57, 0.0  ;;  %v6076_v57 = vld [vmem:[%s8795_s7 + $0x1f] ss:$0 sm:$0xff] }
 0x484   : > { %v3575_v14 = vpop.permute.xlu1 %3574  ;;  %v3515_v32 = vpop.permute.xlu0 %3514 }
 0x485   : > { %v3599_v48 = vadd.f32 %v3575_v14, %v3519_v11  ;;  %3621 = vrot.lane.b32.xlu1 %v3605_v34, %s6350_s1  ;;  %v3524_v47 = vmul.f32 %v3515_v32, %v3444_v46  ;;  %v6068_v46 = vld [vmem:[%s8795_s7 + $0x17] ss:$0 sm:$0xff]  ;;  %v6081_v11 = vld [vmem:[%s8795_s7 + $0x24] ss:$0 sm:$0xff]  ;;  %v6078_v34 = vld [vmem:[%s8795_s7 + $0x21] ss:$0 sm:$0xff] }
 0x486   : > { %v6083_v14 = vld [vmem:[%s8795_s7 + $0x26] ss:$0 sm:$0xff]  ;;  %v6080_v32 = vld [vmem:[%s8795_s7 + $0x23] ss:$0 sm:$0xff] }
 0x487   : > { %v3607_v21 = vmax.f32 %v3599_v48, 0.0  ;;  %v6082_v48 = vld [vmem:[%s8795_s7 + $0x25] ss:$0 sm:$0xff] }
 0x488   : > { %v3583_v0 = vpop.permute.xlu1 %3582  ;;  %v3571_v45 = vpop.permute.xlu0 %3570 }
 0x489   : > { %v3601_v13 = vadd.f32 %v3583_v0, %v3521_v29  ;;  %v3598_v18 = vadd.f32 %v3571_v45, %v3518_v20  ;;  %3625 = vrot.lane.b32.xlu1 %v3607_v21, %s6350_s1  ;;  %v6084_v29 = vld [vmem:[%s8795_s7 + $0x27] ss:$0 sm:$0xff] }
 0x48b   : > { %v3609_v55 = vmax.f32 %v3601_v13, 0.0  ;;  %v3606_v36 = vmax.f32 %v3598_v18, 0.0 }
 0x48c   : > { %v3591_v58 = vpop.permute.xlu1 %3590  ;;  %v3579_v22 = vpop.permute.xlu0 %3578 }
 0x48d   : > { %v3603_v63 = vadd.f32 %v3591_v58, %v3523_v56  ;;  %v3600_v4 = vadd.f32 %v3579_v22, %v3520_v39  ;;  %3629 = vrot.lane.b32.xlu1 %v3609_v55, %s6350_s1  ;;  %3623 = vrot.lane.b32.xlu0 %v3606_v36, %s6350_s1 }
 0x48f   : > { %v3611_v35 = vmax.f32 %v3603_v63, 0.0  ;;  %v3608_v38 = vmax.f32 %v3600_v4, 0.0 }
 0x490   : > { %v3587_v41 = vpop.permute.xlu0 %3586 }
 0x491   : > { %v3602_v7 = vadd.f32 %v3587_v41, %v3522_v51  ;;  %3633 = vrot.lane.b32.xlu1 %v3611_v35, %s6350_s1  ;;  %3627 = vrot.lane.b32.xlu0 %v3608_v38, %s6350_s1 }
 0x493   : > { %v3610_v15 = vmax.f32 %v3602_v7, 0.0 }
 0x494   : > { %v3595_v2 = vpop.permute.xlu0 %3594 }
 0x495   : > { %v3604_v61 = vadd.f32 %v3595_v2, %v3524_v47  ;;  %3870 = vperm.xlu1 %6275, %v6045_v59   ;;  %3631 = vrot.lane.b32.xlu0 %v3610_v15, %s6350_s1 }
 0x497   : > { %v3612_v17 = vmax.f32 %v3604_v61, 0.0 }
 0x499   : > { %3878 = vperm.xlu1 %6275, %v6047_v52   ;;  %3635 = vrot.lane.b32.xlu0 %v3612_v17, %s6350_s1  ;;  %s6280_s1 = sshll.u32 %s6351_s30, 4  ;;  %s6281_s1 = int_to_ptr.vmem [resolvable:$false] %s6280_s1 }
 0x49a   : > { %s6282_s24 = scalar_lea.vmem %s6281_s1, 2048 }
 0x49d   : > { %3886 = vperm.xlu1 %6275, %v6049_v10   ;;  %3874 = vperm.xlu0 %6274, %v6046_v8  }
 0x4a1   : > { %3894 = vperm.xlu1 %6275, %v6051_v6   ;;  %3882 = vperm.xlu0 %6274, %v6048_v44  }
 0x4a5   : > { %3950 = vperm.xlu1 %6275, %v6053_v60   ;;  %3890 = vperm.xlu0 %6274, %v6050_v31  }
 0x4a9   : > { %3958 = vperm.xlu1 %6275, %v6055_v9   ;;  %3898 = vperm.xlu0 %6274, %v6052_v43  }
 0x4ad   : > { %3966 = vperm.xlu1 %6275, %v6057_v49   ;;  %3954 = vperm.xlu0 %6274, %v6054_v37  }
 0x4b1   : > { %3974 = vperm.xlu1 %6275, %v6059_v19   ;;  %3962 = vperm.xlu0 %6274, %v6056_v1  }
 0x4b5   : > { %4070 = vperm.xlu1 %6275, %v6061_v28   ;;  %3970 = vperm.xlu0 %6274, %v6058_v5  }
 0x4b9   : > { %4078 = vperm.xlu1 %6275, %v6063_v26   ;;  %3978 = vperm.xlu0 %6274, %v6060_v50  }
 0x4bd   : > { %4086 = vperm.xlu1 %6275, %v6065_v33   ;;  %4074 = vperm.xlu0 %6274, %v6062_v12  }
 0x4c1   : > { %4094 = vperm.xlu1 %6275, %v6067_v42   ;;  %4082 = vperm.xlu0 %6274, %v6064_v27  }
 0x4c5   : > { %4198 = vperm.xlu1 %6275, %v6069_v24   ;;  %4090 = vperm.xlu0 %6274, %v6066_v25  }
 0x4c9   : > { %4206 = vperm.xlu1 %6275, %v6071_v16   ;;  %4098 = vperm.xlu0 %6274, %v6068_v46  }
 0x4cd   : > { %4214 = vperm.xlu1 %6275, %v6073_v3   ;;  %4202 = vperm.xlu0 %6274, %v6070_v23  }
 0x4d1   : > { %4222 = vperm.xlu1 %6275, %v6075_v62   ;;  %4210 = vperm.xlu0 %6274, %v6072_v53  }
 0x4d5   : > { %4286 = vperm.xlu1 %6275, %v6077_v40   ;;  %4218 = vperm.xlu0 %6274, %v6074_v54  }
 0x4d9   : > { %4294 = vperm.xlu1 %6275, %v6079_v30   ;;  %4226 = vperm.xlu0 %6274, %v6076_v57  }
 0x4dd   : > { %4302 = vperm.xlu1 %6275, %v6081_v11   ;;  %4290 = vperm.xlu0 %6274, %v6078_v34  }
 0x4e1   : > { %4310 = vperm.xlu1 %6275, %v6083_v14   ;;  %4298 = vperm.xlu0 %6274, %v6080_v32  }
 0x4e5   : > { %4306 = vperm.xlu0 %6274, %v6082_v48  }
 0x4e9   : > { %4314 = vperm.xlu0 %6274, %v6084_v29  }
 0x4f7   : > { %v3622_v20 = vpop.permute.xlu1 %3621 }
 0x4f8   : > { %3645 = vst.msk [vmem:[#allocation3 + $0x1] sm:$0xff] %vm2412_vm10, %v3622_v20 }
 0x4fb   : > { %v3626_v21 = vpop.permute.xlu1 %3625 }
 0x4fc   : > { %3647 = vst.msk [vmem:[#allocation3 + $0x21] sm:$0xff] %vm2412_vm10, %v3626_v21 }
 0x4ff   : > { %v3630_v0 = vpop.permute.xlu1 %3629  ;;  %v3624_v45 = vpop.permute.xlu0 %3623  ;;  %v7942_v51 = vld [vmem:[#allocation3] sm:$0xff] }
 0x500   : > { %3649 = vst.msk [vmem:[#allocation3 + $0x41] sm:$0xff] %vm2412_vm10, %v3630_v0  ;;  %3646 = vst.msk [vmem:[#allocation3 + $0x11] sm:$0xff] %vm2412_vm10, %v3624_v45  ;;  %v8006_v48 = vld [vmem:[#allocation3 + $0x1] sm:$0xff] }
 0x503   : > { %v3634_v13 = vpop.permute.xlu1 %3633  ;;  %v3628_v18 = vpop.permute.xlu0 %3627  ;;  %v7948_v7 = vld [vmem:[#allocation3 + $0x20] sm:$0xff] }
 0x504   : > { %3651 = vst.msk [vmem:[#allocation3 + $0x61] sm:$0xff] %vm2412_vm10, %v3634_v13  ;;  %3648 = vst.msk [vmem:[#allocation3 + $0x31] sm:$0xff] %vm2412_vm10, %v3628_v18  ;;  %v8012_v0 = vld [vmem:[#allocation3 + $0x21] sm:$0xff] }
 0x507   : > { %v3632_v56 = vpop.permute.xlu0 %3631  ;;  %v7954_v2 = vld [vmem:[#allocation3 + $0x40] sm:$0xff]  ;;  %v7956_v61 = vld [vmem:[#allocation3 + $0x10] sm:$0xff] }
 0x508   : > { %3650 = vst.msk [vmem:[#allocation3 + $0x51] sm:$0xff] %vm2412_vm10, %v3632_v56  ;;  %v8018_v56 = vld [vmem:[#allocation3 + $0x41] sm:$0xff] }
 0x50b   : > { %v3636_v39 = vpop.permute.xlu0 %3635  ;;  %v7962_v6 = vld [vmem:[#allocation3 + $0x60] sm:$0xff]  ;;  %v7964_v44 = vld [vmem:[#allocation3 + $0x30] sm:$0xff] }
 0x50c   : > { %3652 = vst.msk [vmem:[#allocation3 + $0x71] sm:$0xff] %vm2412_vm10, %v3636_v39  ;;  %v8020_v39 = vld [vmem:[#allocation3 + $0x11] sm:$0xff] }
 0x50d   : > { %8923 = vst [vmem:[#allocation22_spill] sm:$0xff] %v8020_v39 }
 0x50f   : > { %v7970_v49 = vld [vmem:[#allocation3 + $0x50] sm:$0xff] }
 0x510   : > { %v7930_v55 = vpop.permute.xlu1 %3870  ;;  %8919 = vst [vmem:[#allocation9_spill] sm:$0xff] %v7970_v49 }
 0x513   : > { %v7976_v5 = vld [vmem:[#allocation3 + $0x70] sm:$0xff] }
 0x514   : > { %v7932_v36 = vpop.permute.xlu1 %3878 }
 0x518   : > { %v7934_v58 = vpop.permute.xlu1 %3886  ;;  %v7936_v22 = vpop.permute.xlu0 %3874 }
 0x51c   : > { %v7938_v63 = vpop.permute.xlu1 %3894  ;;  %v7940_v4 = vpop.permute.xlu0 %3882 }
 0x520   : > { %v3951_v35 = vpop.permute.xlu1 %3950  ;;  %v7944_v38 = vpop.permute.xlu0 %3890 }
 0x521   : > { %8918 = vst [vmem:[#allocation13_spill] sm:$0xff] %v7944_v38  ;;  %v3981_v41 = vmul.f32 %v3951_v35, %v7942_v51  ;;  %v8241_v38 = vld [vmem:[#allocation3 + $0x72] sm:$0xff] }
 0x523   : > { %3997 = vrot.lane.b32.xlu1 %v3981_v41, %s8916_s20 }
 0x524   : > { %v3959_v59 = vpop.permute.xlu1 %3958  ;;  %v7950_v47 = vpop.permute.xlu0 %3898 }
 0x525   : > { %v3983_v15 = vmul.f32 %v3959_v59, %v7948_v7 }
 0x527   : > { %4001 = vrot.lane.b32.xlu1 %v3983_v15, %s8916_s20 }
 0x528   : > { %v3967_v52 = vpop.permute.xlu1 %3966  ;;  %v3955_v17 = vpop.permute.xlu0 %3954 }
 0x529   : > { %v3985_v10 = vmul.f32 %v3967_v52, %v7954_v2  ;;  %v3982_v8 = vmul.f32 %v3955_v17, %v7956_v61  ;;  %v8026_v52 = vld [vmem:[#allocation3 + $0x61] sm:$0xff]  ;;  %v8028_v17 = vld [vmem:[#allocation3 + $0x31] sm:$0xff] }
 0x52a   : > { %8924 = vst [vmem:[#allocation23_spill] sm:$0xff] %v8028_v17 }
 0x52b   : > { %4005 = vrot.lane.b32.xlu1 %v3985_v10, %s8916_s20  ;;  %3999 = vrot.lane.b32.xlu0 %v3982_v8, %s8916_s20 }
 0x52c   : > { %v3975_v60 = vpop.permute.xlu1 %3974  ;;  %v3963_v31 = vpop.permute.xlu0 %3962 }
 0x52d   : > { %v3987_v9 = vmul.f32 %v3975_v60, %v7962_v6  ;;  %v3984_v43 = vmul.f32 %v3963_v31, %v7964_v44 }
 0x52f   : > { %4009 = vrot.lane.b32.xlu1 %v3987_v9, %s8916_s20  ;;  %4003 = vrot.lane.b32.xlu0 %v3984_v43, %s8916_s20  ;;  %v8034_v9 = vld [vmem:[#allocation3 + $0x51] sm:$0xff] }
 0x530   : > { %v4071_v37 = vpop.permute.xlu1 %4070  ;;  %v3971_v19 = vpop.permute.xlu0 %3970  ;;  %8925 = vst [vmem:[#allocation24_spill] sm:$0xff] %v8034_v9 }
 0x531   : > { %v4101_v1 = vmul.f32 %v4071_v37, %v7942_v51  ;;  %v3986_v28 = vmul.f32 %v3971_v19, %v7970_v49  ;;  %v6085_v37 = vld [vmem:[%s8795_s7 + $0x28] ss:$0 sm:$0xff] }
 0x533   : > { %4117 = vrot.lane.b32.xlu1 %v4101_v1, %s8917_s21  ;;  %4007 = vrot.lane.b32.xlu0 %v3986_v28, %s8916_s20  ;;  %v8041_v1 = vld [vmem:[#allocation3 + $0x71] sm:$0xff] }
 0x534   : > { %v4079_v26 = vpop.permute.xlu1 %4078  ;;  %v3979_v50 = vpop.permute.xlu0 %3978 }
 0x535   : > { %v4103_v33 = vmul.f32 %v4079_v26, %v7948_v7  ;;  %v3988_v12 = vmul.f32 %v3979_v50, %v7976_v5  ;;  %v6087_v26 = vld [vmem:[%s8795_s7 + $0x2a] ss:$0 sm:$0xff] }
 0x537   : > { %4121 = vrot.lane.b32.xlu1 %v4103_v33, %s8917_s21  ;;  %4011 = vrot.lane.b32.xlu0 %v3988_v12, %s8916_s20  ;;  %v6089_v33 = vld [vmem:[%s8795_s7 + $0x2c] ss:$0 sm:$0xff]  ;;  %v6086_v12 = vld [vmem:[%s8795_s7 + $0x29] ss:$0 sm:$0xff] }
 0x538   : > { %v4087_v42 = vpop.permute.xlu1 %4086  ;;  %v4075_v27 = vpop.permute.xlu0 %4074 }
 0x539   : > { %v4105_v24 = vmul.f32 %v4087_v42, %v7954_v2  ;;  %v4102_v25 = vmul.f32 %v4075_v27, %v7956_v61  ;;  %v6091_v42 = vld [vmem:[%s8795_s7 + $0x2e] ss:$0 sm:$0xff]  ;;  %v6088_v27 = vld [vmem:[%s8795_s7 + $0x2b] ss:$0 sm:$0xff] }
 0x53b   : > { %4125 = vrot.lane.b32.xlu1 %v4105_v24, %s8917_s21  ;;  %4119 = vrot.lane.b32.xlu0 %v4102_v25, %s8917_s21  ;;  %v6090_v24 = vld [vmem:[%s8795_s7 + $0x2d] ss:$0 sm:$0xff]  ;;  %v6092_v25 = vld [vmem:[%s8795_s7 + $0x2f] ss:$0 sm:$0xff] }
 0x53c   : > { %v4095_v16 = vpop.permute.xlu1 %4094  ;;  %v4083_v46 = vpop.permute.xlu0 %4082 }
 0x53d   : > { %v4107_v3 = vmul.f32 %v4095_v16, %v7962_v6  ;;  %v4104_v23 = vmul.f32 %v4083_v46, %v7964_v44 }
 0x53f   : > { %4129 = vrot.lane.b32.xlu1 %v4107_v3, %s8917_s21  ;;  %4123 = vrot.lane.b32.xlu0 %v4104_v23, %s8917_s21 }
 0x540   : > { %v7990_v62 = vpop.permute.xlu1 %4198  ;;  %v4091_v53 = vpop.permute.xlu0 %4090 }
 0x541   : > { %v4106_v40 = vmul.f32 %v4091_v53, %v7970_v49 }
 0x543   : > { %4127 = vrot.lane.b32.xlu0 %v4106_v40, %s8917_s21 }
 0x544   : > { %v7994_v54 = vpop.permute.xlu1 %4206  ;;  %v4099_v30 = vpop.permute.xlu0 %4098 }
 0x545   : > { %v4108_v57 = vmul.f32 %v4099_v30, %v7976_v5 }
 0x547   : > { %4131 = vrot.lane.b32.xlu0 %v4108_v57, %s8917_s21 }
 0x548   : > { %v7998_v11 = vpop.permute.xlu1 %4214  ;;  %v8000_v34 = vpop.permute.xlu0 %4202 }
 0x549   : > { %8920 = vst [vmem:[#allocation15_spill] sm:$0xff] %v8000_v34 }
 0x54c   : > { %v8002_v14 = vpop.permute.xlu1 %4222  ;;  %v8004_v32 = vpop.permute.xlu0 %4210 }
 0x54d   : > { %8921 = vst [vmem:[#allocation11_spill] sm:$0xff] %v8004_v32 }
 0x550   : > { %v4287_v29 = vpop.permute.xlu1 %4286  ;;  %v8008_v20 = vpop.permute.xlu0 %4218 }
 0x551   : > { %8922 = vst [vmem:[#allocation17_spill] sm:$0xff] %v8008_v20  ;;  %v4317_v21 = vmul.f32 %v4287_v29, %v8006_v48 }
 0x553   : > { %4333 = vrot.lane.b32.xlu1 %v4317_v21, %s8916_s20 }
 0x554   : > { %v4295_v45 = vpop.permute.xlu1 %4294  ;;  %v8014_v13 = vpop.permute.xlu0 %4226 }
 0x555   : > { %v4319_v18 = vmul.f32 %v4295_v45, %v8012_v0 }
 0x557   : > { %4337 = vrot.lane.b32.xlu1 %v4319_v18, %s8916_s20 }
 0x558   : > { %v4303_v35 = vpop.permute.xlu1 %4302  ;;  %v4291_v41 = vpop.permute.xlu0 %4290 }
 0x559   : > { %v4321_v59 = vmul.f32 %v4303_v35, %v8018_v56  ;;  %v4318_v15 = vmul.f32 %v4291_v41, %v8020_v39 }
 0x55b   : > { %4341 = vrot.lane.b32.xlu1 %v4321_v59, %s8916_s20  ;;  %4335 = vrot.lane.b32.xlu0 %v4318_v15, %s8916_s20 }
 0x55c   : > { %v4311_v10 = vpop.permute.xlu1 %4310  ;;  %v4299_v8 = vpop.permute.xlu0 %4298 }
 0x55d   : > { %v4323_v60 = vmul.f32 %v4311_v10, %v8026_v52  ;;  %v4320_v31 = vmul.f32 %v4299_v8, %v8028_v17 }
 0x55f   : > { %4345 = vrot.lane.b32.xlu1 %v4323_v60, %s8916_s20  ;;  %4339 = vrot.lane.b32.xlu0 %v4320_v31, %s8916_s20 }
 0x560   : > { %v4307_v43 = vpop.permute.xlu0 %4306 }
 0x561   : > { %v4322_v19 = vmul.f32 %v4307_v43, %v8034_v9 }
 0x563   : > { %4406 = vperm.xlu1 %6275, %v6085_v37   ;;  %4343 = vrot.lane.b32.xlu0 %v4322_v19, %s8916_s20 }
 0x564   : > { %v4315_v28 = vpop.permute.xlu0 %4314 }
 0x565   : > { %v4324_v50 = vmul.f32 %v4315_v28, %v8041_v1 }
 0x567   : > { %4414 = vperm.xlu1 %6275, %v6087_v26   ;;  %4347 = vrot.lane.b32.xlu0 %v4324_v50, %s8916_s20 }
 0x56b   : > { %4422 = vperm.xlu1 %6275, %v6089_v33   ;;  %4410 = vperm.xlu0 %6274, %v6086_v12  }
 0x56f   : > { %4430 = vperm.xlu1 %6275, %v6091_v42   ;;  %4418 = vperm.xlu0 %6274, %v6088_v27  }
 0x573   : > { %4426 = vperm.xlu0 %6274, %v6090_v24  }
 0x577   : > { %4434 = vperm.xlu0 %6274, %v6092_v25  }
 0x595   : > { %v8066_v16 = vpop.permute.xlu1 %3997 }
 0x599   : > { %v8068_v46 = vpop.permute.xlu1 %4001 }
 0x59d   : > { %v8070_v3 = vpop.permute.xlu0 %3999  ;;  %v8072_v23 = vpop.permute.xlu1 %4005 }
 0x5a1   : > { %v8074_v53 = vpop.permute.xlu0 %4003  ;;  %v8076_v40 = vpop.permute.xlu1 %4009 }
 0x5a2   : > { %8926 = vst [vmem:[#allocation25_spill] sm:$0xff] %v8074_v53 }
 0x5a5   : > { %v8078_v30 = vpop.permute.xlu0 %4007  ;;  %v8080_v57 = vpop.permute.xlu1 %4117 }
 0x5a6   : > { %8927 = vst [vmem:[#allocation26_spill] sm:$0xff] %v8078_v30 }
 0x5a9   : > { %v8082_v29 = vpop.permute.xlu0 %4011  ;;  %v8084_v21 = vpop.permute.xlu1 %4121 }
 0x5ad   : > { %v8086_v45 = vpop.permute.xlu0 %4119  ;;  %v8088_v18 = vpop.permute.xlu1 %4125 }
 0x5b1   : > { %v8090_v35 = vpop.permute.xlu0 %4123  ;;  %v8092_v41 = vpop.permute.xlu1 %4129 }
 0x5b2   : > { %8928 = vst [vmem:[#allocation27_spill] sm:$0xff] %v8090_v35  ;;  %v8228_v35 = vld [vmem:[#allocation3 + $0x32] sm:$0xff] }
 0x5b5   : > { %v8094_v59 = vpop.permute.xlu0 %4127 }
 0x5b6   : > { %8929 = vst [vmem:[#allocation28_spill] sm:$0xff] %v8094_v59 }
 0x5b9   : > { %v8098_v10 = vpop.permute.xlu0 %4131 }
 0x5c5   : > { %v8096_v15 = vpop.permute.xlu1 %4333 }
 0x5c9   : > { %v8100_v8 = vpop.permute.xlu1 %4337 }
 0x5ca   : > { %8930 = vst [vmem:[#allocation29_spill] sm:$0xff] %v8100_v8 }
 0x5cd   : > { %v8102_v60 = vpop.permute.xlu0 %4335  ;;  %v8104_v31 = vpop.permute.xlu1 %4341 }
 0x5ce   : > { %8931 = vst [vmem:[#allocation30_spill] sm:$0xff] %v8102_v60  ;;  %8932 = vst [vmem:[#allocation31_spill] sm:$0xff] %v8104_v31  ;;  %v8212_v31 = vld [vmem:[#allocation3 + $0x22] sm:$0xff] }
 0x5d1   : > { %v8106_v43 = vpop.permute.xlu0 %4339  ;;  %v8108_v37 = vpop.permute.xlu1 %4345 }
 0x5d2   : > { %8933 = vst [vmem:[#allocation32_spill] sm:$0xff] %v8106_v43 }
 0x5d5   : > { %v8110_v19 = vpop.permute.xlu0 %4343 }
 0x5d6   : > { %8934 = vst [vmem:[#allocation16_spill] sm:$0xff] %v8110_v19 }
 0x5d9   : > { %v8114_v50 = vpop.permute.xlu0 %4347 }
 0x5de   : > { %v4407_v28 = vpop.permute.xlu1 %4406 }
 0x5df   : > { %v4437_v26 = vmul.f32 %v4407_v28, %v8006_v48 }
 0x5e1   : > { %4453 = vrot.lane.b32.xlu1 %v4437_v26, %s8917_s21 }
 0x5e2   : > { %v4415_v33 = vpop.permute.xlu1 %4414 }
 0x5e3   : > { %v4439_v12 = vmul.f32 %v4415_v33, %v8012_v0 }
 0x5e5   : > { %4457 = vrot.lane.b32.xlu1 %v4439_v12, %s8917_s21  ;;  %v6093_v12 = vld [vmem:[%s8795_s7 + $0x30] ss:$0 sm:$0xff] }
 0x5e6   : > { %v4423_v42 = vpop.permute.xlu1 %4422  ;;  %v4411_v27 = vpop.permute.xlu0 %4410 }
 0x5e7   : > { %v4441_v24 = vmul.f32 %v4423_v42, %v8018_v56  ;;  %v4438_v25 = vmul.f32 %v4411_v27, %v8020_v39 }
 0x5e9   : > { %4461 = vrot.lane.b32.xlu1 %v4441_v24, %s8917_s21  ;;  %4455 = vrot.lane.b32.xlu0 %v4438_v25, %s8917_s21  ;;  %v6095_v24 = vld [vmem:[%s8795_s7 + $0x32] ss:$0 sm:$0xff]  ;;  %v6094_v25 = vld [vmem:[%s8795_s7 + $0x31] ss:$0 sm:$0xff] }
 0x5ea   : > { %v4431_v28 = vpop.permute.xlu1 %4430  ;;  %v4419_v19 = vpop.permute.xlu0 %4418 }
 0x5eb   : > { %v4443_v26 = vmul.f32 %v4431_v28, %v8026_v52  ;;  %v4440_v43 = vmul.f32 %v4419_v19, %v8028_v17  ;;  %v6099_v28 = vld [vmem:[%s8795_s7 + $0x36] ss:$0 sm:$0xff] }
 0x5ed   : > { %4465 = vrot.lane.b32.xlu1 %v4443_v26, %s8917_s21  ;;  %4459 = vrot.lane.b32.xlu0 %v4440_v43, %s8917_s21  ;;  %v6097_v43 = vld [vmem:[%s8795_s7 + $0x34] ss:$0 sm:$0xff]  ;;  %v6096_v26 = vld [vmem:[%s8795_s7 + $0x33] ss:$0 sm:$0xff] }
 0x5ee   : > { %v4427_v33 = vpop.permute.xlu0 %4426 }
 0x5ef   : > { %v4442_v42 = vmul.f32 %v4427_v33, %v8034_v9  ;;  %v6101_v33 = vld [vmem:[%s8795_s7 + $0x38] ss:$0 sm:$0xff] }
 0x5f1   : > { %4534 = vperm.xlu1 %6275, %v6093_v12   ;;  %4463 = vrot.lane.b32.xlu0 %v4442_v42, %s8917_s21  ;;  %v6098_v12 = vld [vmem:[%s8795_s7 + $0x35] ss:$0 sm:$0xff]  ;;  %v6103_v42 = vld [vmem:[%s8795_s7 + $0x3a] ss:$0 sm:$0xff] }
 0x5f2   : > { %v4435_v27 = vpop.permute.xlu0 %4434 }
 0x5f3   : > { %v4444_v19 = vmul.f32 %v4435_v27, %v8041_v1  ;;  %v6100_v27 = vld [vmem:[%s8795_s7 + $0x37] ss:$0 sm:$0xff] }
 0x5f5   : > { %4542 = vperm.xlu1 %6275, %v6095_v24   ;;  %4467 = vrot.lane.b32.xlu0 %v4444_v19, %s8917_s21  ;;  %v6105_v24 = vld [vmem:[%s8795_s7 + $0x3c] ss:$0 sm:$0xff]  ;;  %v6102_v19 = vld [vmem:[%s8795_s7 + $0x39] ss:$0 sm:$0xff] }
 0x5f9   : > { %4550 = vperm.xlu1 %6275, %v6097_v43   ;;  %4538 = vperm.xlu0 %6274, %v6094_v25   ;;  %v6107_v43 = vld [vmem:[%s8795_s7 + $0x3e] ss:$0 sm:$0xff]  ;;  %v6104_v25 = vld [vmem:[%s8795_s7 + $0x3b] ss:$0 sm:$0xff] }
 0x5fd   : > { %4558 = vperm.xlu1 %6275, %v6099_v28   ;;  %4546 = vperm.xlu0 %6274, %v6096_v26   ;;  %v6106_v28 = vld [vmem:[%s8795_s7 + $0x3d] ss:$0 sm:$0xff]  ;;  %v6108_v26 = vld [vmem:[%s8795_s7 + $0x3f] ss:$0 sm:$0xff] }
 0x601   : > { %4622 = vperm.xlu1 %6275, %v6101_v33   ;;  %4554 = vperm.xlu0 %6274, %v6098_v12  }
 0x605   : > { %4630 = vperm.xlu1 %6275, %v6103_v42   ;;  %4562 = vperm.xlu0 %6274, %v6100_v27  }
 0x609   : > { %4638 = vperm.xlu1 %6275, %v6105_v24   ;;  %4626 = vperm.xlu0 %6274, %v6102_v19  }
 0x60d   : > { %4646 = vperm.xlu1 %6275, %v6107_v43   ;;  %4634 = vperm.xlu0 %6274, %v6104_v25  }
 0x611   : > { %4642 = vperm.xlu0 %6274, %v6106_v28  }
 0x615   : > { %4650 = vperm.xlu0 %6274, %v6108_v26  }
 0x653   : > { %v8178_v33 = vpop.permute.xlu1 %4453 }
 0x657   : > { %v8180_v12 = vpop.permute.xlu1 %4457 }
 0x658   : > { %8935 = vst [vmem:[#allocation12_spill] sm:$0xff] %v8180_v12 }
 0x65b   : > { %v8182_v42 = vpop.permute.xlu0 %4455  ;;  %v8184_v27 = vpop.permute.xlu1 %4461 }
 0x65c   : > { %8936 = vst [vmem:[#allocation20_spill] sm:$0xff] %v8182_v42  ;;  %8937 = vst [vmem:[#allocation18_spill] sm:$0xff] %v8184_v27  ;;  %v8206_v27 = vld [vmem:[#allocation3 + $0x2] sm:$0xff] }
 0x65f   : > { %v8186_v24 = vpop.permute.xlu0 %4459  ;;  %v8188_v19 = vpop.permute.xlu1 %4465 }
 0x660   : > { %8938 = vst [vmem:[#allocation14_spill] sm:$0xff] %v8186_v24 }
 0x663   : > { %v8190_v43 = vpop.permute.xlu0 %4463 }
 0x664   : > { %8939 = vst [vmem:[#allocation10_spill] sm:$0xff] %v8190_v43 }
 0x667   : > { %v8194_v28 = vpop.permute.xlu0 %4467 }
 0x66c   : > { %v8192_v25 = vpop.permute.xlu1 %4534 }
 0x670   : > { %v8196_v20 = vpop.permute.xlu1 %4542 }
 0x671   : > { %8940 = vst [vmem:[#allocation19_spill] sm:$0xff] %v8196_v20 }
 0x674   : > { %v8198_v26 = vpop.permute.xlu1 %4550  ;;  %v8200_v9 = vpop.permute.xlu0 %4538 }
 0x675   : > { %8941 = vst [vmem:[#allocation21_spill] sm:$0xff] %v8198_v26  ;;  %8942 = vst [vmem:[#allocation33_spill] sm:$0xff] %v8200_v9  ;;  %v8218_v26 = vld [vmem:[#allocation3 + $0x42] sm:$0xff] }
 0x678   : > { %v8202_v59 = vpop.permute.xlu1 %4558  ;;  %v8204_v42 = vpop.permute.xlu0 %4546 }
 0x679   : > { %8943 = vst [vmem:[#allocation34_spill] sm:$0xff] %v8204_v42  ;;  %v8220_v42 = vld [vmem:[#allocation3 + $0x12] sm:$0xff] }
 0x67c   : > { %v4623_v24 = vpop.permute.xlu1 %4622  ;;  %v8208_v60 = vpop.permute.xlu0 %4554 }
 0x67d   : > { %8944 = vst [vmem:[#allocation35_spill] sm:$0xff] %v8208_v60  ;;  %v4653_v43 = vmul.f32 %v4623_v24, %v8206_v27 }
 0x67f   : > { %4669 = vrot.lane.b32.xlu1 %v4653_v43, %s8916_s20  ;;  %v8226_v43 = vld [vmem:[#allocation3 + $0x62] sm:$0xff] }
 0x680   : > { %v4631_v30 = vpop.permute.xlu1 %4630  ;;  %v8214_v32 = vpop.permute.xlu0 %4562 }
 0x681   : > { %v4655_v9 = vmul.f32 %v4631_v30, %v8212_v31 }
 0x683   : > { %4673 = vrot.lane.b32.xlu1 %v4655_v9, %s8916_s20 }
 0x684   : > { %v4639_v17 = vpop.permute.xlu1 %4638  ;;  %v4627_v12 = vpop.permute.xlu0 %4626 }
 0x685   : > { %v4657_v60 = vmul.f32 %v4639_v17, %v8218_v26  ;;  %v4654_v24 = vmul.f32 %v4627_v12, %v8220_v42  ;;  %v8234_v17 = vld [vmem:[#allocation3 + $0x52] sm:$0xff] }
 0x687   : > { %4677 = vrot.lane.b32.xlu1 %v4657_v60, %s8916_s20  ;;  %4671 = vrot.lane.b32.xlu0 %v4654_v24, %s8916_s20  ;;  %v6109_v60 = vld [vmem:[%s8795_s7 + $0x40] ss:$0 sm:$0xff] }
 0x688   : > { %v4647_v30 = vpop.permute.xlu1 %4646  ;;  %v4635_v9 = vpop.permute.xlu0 %4634 }
 0x689   : > { %v4659_v20 = vmul.f32 %v4647_v30, %v8226_v43  ;;  %v4656_v8 = vmul.f32 %v4635_v9, %v8228_v35  ;;  %v6113_v9 = vld [vmem:[%s8795_s7 + $0x44] ss:$0 sm:$0xff] }
 0x68b   : > { %4681 = vrot.lane.b32.xlu1 %v4659_v20, %s8916_s20  ;;  %4675 = vrot.lane.b32.xlu0 %v4656_v8, %s8916_s20  ;;  %v6111_v20 = vld [vmem:[%s8795_s7 + $0x42] ss:$0 sm:$0xff] }
 0x68c   : > { %v4643_v12 = vpop.permute.xlu0 %4642 }
 0x68d   : > { %v4658_v24 = vmul.f32 %v4643_v12, %v8234_v17  ;;  %v6110_v12 = vld [vmem:[%s8795_s7 + $0x41] ss:$0 sm:$0xff] }
 0x68f   : > { %4742 = vperm.xlu1 %6275, %v6109_v60   ;;  %4679 = vrot.lane.b32.xlu0 %v4658_v24, %s8916_s20  ;;  %v6115_v60 = vld [vmem:[%s8795_s7 + $0x46] ss:$0 sm:$0xff]  ;;  %v6112_v24 = vld [vmem:[%s8795_s7 + $0x43] ss:$0 sm:$0xff] }
 0x690   : > { %v4651_v30 = vpop.permute.xlu0 %4650 }
 0x691   : > { %v4660_v8 = vmul.f32 %v4651_v30, %v8241_v38  ;;  %v6114_v30 = vld [vmem:[%s8795_s7 + $0x45] ss:$0 sm:$0xff] }
 0x693   : > { %4750 = vperm.xlu1 %6275, %v6111_v20   ;;  %4683 = vrot.lane.b32.xlu0 %v4660_v8, %s8916_s20  ;;  %v6116_v20 = vld [vmem:[%s8795_s7 + $0x47] ss:$0 sm:$0xff]  ;;  %s8740_s20 = scalar_lea.hbm %s8801_s13, %s6219_s16 }
 0x697   : > { %4758 = vperm.xlu1 %6275, %v6113_v9   ;;  %4746 = vperm.xlu0 %6274, %v6110_v12  }
 0x69b   : > { %4766 = vperm.xlu1 %6275, %v6115_v60   ;;  %4754 = vperm.xlu0 %6274, %v6112_v24  }
 0x69f   : > { %4762 = vperm.xlu0 %6274, %v6114_v30  }
 0x6a3   : > { %4770 = vperm.xlu0 %6274, %v6116_v20  }
 0x6f1   : > { %v8266_v8 = vpop.permute.xlu1 %4669 }
 0x6f2   : > { %8945 = vst [vmem:[#allocation36_spill] sm:$0xff] %v8266_v8 }
 0x6f5   : > { %v8268_v9 = vpop.permute.xlu1 %4673 }
 0x6f6   : > { %8946 = vst [vmem:[#allocation37_spill] sm:$0xff] %v8268_v9 }
 0x6f9   : > { %v8270_v12 = vpop.permute.xlu0 %4671  ;;  %v8272_v49 = vpop.permute.xlu1 %4677 }
 0x6fa   : > { %8947 = vst [vmem:[#allocation38_spill] sm:$0xff] %v8270_v12  ;;  %8948 = vst [vmem:[#allocation39_spill] sm:$0xff] %v8272_v49 }
 0x6fd   : > { %v8274_v60 = vpop.permute.xlu0 %4675  ;;  %v8276_v24 = vpop.permute.xlu1 %4681 }
 0x6fe   : > { %8949 = vst [vmem:[#allocation40_spill] sm:$0xff] %v8274_v60 }
 0x701   : > { %v8278_v53 = vpop.permute.xlu0 %4679 }
 0x702   : > { %8950 = vst [vmem:[#allocation41_spill] sm:$0xff] %v8278_v53 }
 0x705   : > { %v8282_v20 = vpop.permute.xlu0 %4683 }
 0x706   : > { %8951 = vst [vmem:[#allocation42_spill] sm:$0xff] %v8282_v20 }
 0x70a   : > { %v4743_v30 = vpop.permute.xlu1 %4742 }
 0x70b   : > { %v4773_v34 = vmul.f32 %v4743_v30, %v8206_v27 }
 0x70d   : > { %4789 = vrot.lane.b32.xlu1 %v4773_v34, %s8917_s21 }
 0x70e   : > { %v4751_v8 = vpop.permute.xlu1 %4750 }
 0x70f   : > { %v4775_v9 = vmul.f32 %v4751_v8, %v8212_v31 }
 0x711   : > { %4793 = vrot.lane.b32.xlu1 %v4775_v9, %s8917_s21  ;;  %v6117_v9 = vld [vmem:[%s8796_s8] ss:$0 sm:$0xff] }
 0x712   : > { %v4759_v12 = vpop.permute.xlu1 %4758  ;;  %v4747_v49 = vpop.permute.xlu0 %4746 }
 0x713   : > { %v4777_v60 = vmul.f32 %v4759_v12, %v8218_v26  ;;  %v4774_v39 = vmul.f32 %v4747_v49, %v8220_v42  ;;  %v6119_v12 = vld [vmem:[%s8796_s8 + $0x2] ss:$0 sm:$0xff] }
 0x715   : > { %4797 = vrot.lane.b32.xlu1 %v4777_v60, %s8917_s21  ;;  %4791 = vrot.lane.b32.xlu0 %v4774_v39, %s8917_s21  ;;  %v6121_v60 = vld [vmem:[%s8796_s8 + $0x4] ss:$0 sm:$0xff] }
 0x716   : > { %v4767_v30 = vpop.permute.xlu1 %4766  ;;  %v4755_v53 = vpop.permute.xlu0 %4754 }
 0x717   : > { %v4779_v34 = vmul.f32 %v4767_v30, %v8226_v43  ;;  %v4776_v20 = vmul.f32 %v4755_v53, %v8228_v35  ;;  %v6123_v30 = vld [vmem:[%s8796_s8 + $0x6] ss:$0 sm:$0xff] }
 0x719   : > { %4801 = vrot.lane.b32.xlu1 %v4779_v34, %s8917_s21  ;;  %4795 = vrot.lane.b32.xlu0 %v4776_v20, %s8917_s21  ;;  %v6118_v20 = vld [vmem:[%s8796_s8 + $0x1] ss:$0 sm:$0xff]  ;;  %v6120_v34 = vld [vmem:[%s8796_s8 + $0x3] ss:$0 sm:$0xff] }
 0x71a   : > { %v4763_v8 = vpop.permute.xlu0 %4762 }
 0x71b   : > { %v4778_v49 = vmul.f32 %v4763_v8, %v8234_v17  ;;  %v6125_v8 = vld [vmem:[%s8797_s9] ss:$0 sm:$0xff] }
 0x71d   : > { %4862 = vperm.xlu1 %6275, %v6117_v9   ;;  %4799 = vrot.lane.b32.xlu0 %v4778_v49, %s8917_s21  ;;  %v6122_v9 = vld [vmem:[%s8796_s8 + $0x5] ss:$0 sm:$0xff]  ;;  %v6127_v49 = vld [vmem:[%s8797_s9 + $0x2] ss:$0 sm:$0xff] }
 0x71e   : > { %v4771_v39 = vpop.permute.xlu0 %4770 }
 0x71f   : > { %v4780_v53 = vmul.f32 %v4771_v39, %v8241_v38  ;;  %v6124_v39 = vld [vmem:[%s8796_s8 + $0x7] ss:$0 sm:$0xff] }
 0x721   : > { %4870 = vperm.xlu1 %6275, %v6119_v12   ;;  %4803 = vrot.lane.b32.xlu0 %v4780_v53, %s8917_s21  ;;  %v6129_v12 = vld [vmem:[%s8797_s9 + $0x4] ss:$0 sm:$0xff]  ;;  %v6126_v53 = vld [vmem:[%s8797_s9 + $0x1] ss:$0 sm:$0xff]  ;;  %s431_s21 = sand.u32 1, %s6328_s26  }
 0x722   : > { %s5950_s23 = sshll.u32 %s431_s21, 6  ;;  %s8748_s29 = scalar_lea.sflag [#allocation5], %s431_s21 }
 0x723   : > { %s8719_s15 = scalar_lea.vmem [#allocation4], %s5950_s23 }
 0x724   : > { %s5884_s17 = sshll.u32 %s8719_s15, 4  ;;  %s8742_s17 = int_to_ptr.vmem [resolvable:$true] %s5884_s17 }
 0x725   : > { %4878 = vperm.xlu1 %6275, %v6121_v60   ;;  %4866 = vperm.xlu0 %6274, %v6118_v20   ;;  %v6131_v60 = vld [vmem:[%s8797_s9 + $0x6] ss:$0 sm:$0xff]  ;;  %v6128_v20 = vld [vmem:[%s8797_s9 + $0x3] ss:$0 sm:$0xff]  ;;  %s6276_s0 = scalar_lea.vmem %s8742_s17, 1024  ;;  %p6283_p0 = scmp.lt.s32.totalorder %s8742_s17, %s6281_s1 }
 0x726   : > { %p6277_p11 = scmp.ne.s32.totalorder %s8742_s17, %s6276_s0  ;;  %p6284_p1 = scmp.lt.s32.totalorder %s6282_s24, %s6276_s0 }
 0x728   : > { %p6278_p12 = pnand %p6277_p11, %p6462_p5  ;;  %p6285_p2 = por %p6284_p1, %p6283_p0 }
 0x729   : > { %4886 = vperm.xlu1 %6275, %v6123_v30   ;;  %4874 = vperm.xlu0 %6274, %v6120_v34   ;;  %v6133_v30 = vld [vmem:[%s8798_s10] ss:$0 sm:$0xff]  ;;  %v6130_v34 = vld [vmem:[%s8797_s9 + $0x5] ss:$0 sm:$0xff] }
 0x72a   : > { %p6279_p13 = pneg %p6278_p12 }
 0x72c   : > { %p6286_p3 = pnand %p6285_p2, %p6279_p13 }
 0x72d   : > { %4942 = vperm.xlu1 %6275, %v6125_v8   ;;  %4882 = vperm.xlu0 %6274, %v6122_v9   ;;  %v6135_v8 = vld [vmem:[%s8798_s10 + $0x2] ss:$0 sm:$0xff]  ;;  %v6132_v9 = vld [vmem:[%s8797_s9 + $0x7] ss:$0 sm:$0xff] }
 0x731   : > { %4950 = vperm.xlu1 %6275, %v6127_v49   ;;  %4890 = vperm.xlu0 %6274, %v6124_v39   ;;  %v6137_v49 = vld [vmem:[%s8798_s10 + $0x4] ss:$0 sm:$0xff]  ;;  %v6134_v39 = vld [vmem:[%s8798_s10 + $0x1] ss:$0 sm:$0xff] }
 0x735   : > { %4958 = vperm.xlu1 %6275, %v6129_v12   ;;  %4946 = vperm.xlu0 %6274, %v6126_v53   ;;  %v6139_v12 = vld [vmem:[%s8798_s10 + $0x6] ss:$0 sm:$0xff]  ;;  %v6136_v53 = vld [vmem:[%s8798_s10 + $0x3] ss:$0 sm:$0xff] }
 0x739   : > { %4966 = vperm.xlu1 %6275, %v6131_v60   ;;  %4954 = vperm.xlu0 %6274, %v6128_v20   ;;  %v6141_v60 = vld [vmem:[%s8798_s10 + $0x8] ss:$0 sm:$0xff]  ;;  %v6138_v20 = vld [vmem:[%s8798_s10 + $0x5] ss:$0 sm:$0xff] }
 0x73d   : > { %5030 = vperm.xlu1 %6275, %v6133_v30   ;;  %4962 = vperm.xlu0 %6274, %v6130_v34   ;;  %v6143_v30 = vld [vmem:[%s8798_s10 + $0xa] ss:$0 sm:$0xff]  ;;  %v6140_v34 = vld [vmem:[%s8798_s10 + $0x7] ss:$0 sm:$0xff] }
 0x741   : > { %5038 = vperm.xlu1 %6275, %v6135_v8   ;;  %4970 = vperm.xlu0 %6274, %v6132_v9   ;;  %v6145_v8 = vld [vmem:[%s8798_s10 + $0xc] ss:$0 sm:$0xff]  ;;  %v6142_v9 = vld [vmem:[%s8798_s10 + $0x9] ss:$0 sm:$0xff] }
 0x745   : > { %5046 = vperm.xlu1 %6275, %v6137_v49   ;;  %5034 = vperm.xlu0 %6274, %v6134_v39   ;;  %v6147_v49 = vld [vmem:[%s8798_s10 + $0xe] ss:$0 sm:$0xff]  ;;  %v6144_v39 = vld [vmem:[%s8798_s10 + $0xb] ss:$0 sm:$0xff] }
 0x749   : > { %5054 = vperm.xlu1 %6275, %v6139_v12   ;;  %5042 = vperm.xlu0 %6274, %v6136_v53   ;;  %v6149_v12 = vld [vmem:[%s8798_s10 + $0x10] ss:$0 sm:$0xff]  ;;  %v6146_v53 = vld [vmem:[%s8798_s10 + $0xd] ss:$0 sm:$0xff] }
 0x74d   : > { %5118 = vperm.xlu1 %6275, %v6141_v60   ;;  %5050 = vperm.xlu0 %6274, %v6138_v20   ;;  %v6151_v60 = vld [vmem:[%s8798_s10 + $0x12] ss:$0 sm:$0xff]  ;;  %v6148_v20 = vld [vmem:[%s8798_s10 + $0xf] ss:$0 sm:$0xff] }
 0x751   : > { %5126 = vperm.xlu1 %6275, %v6143_v30   ;;  %5058 = vperm.xlu0 %6274, %v6140_v34   ;;  %v6153_v30 = vld [vmem:[%s8798_s10 + $0x14] ss:$0 sm:$0xff]  ;;  %v6150_v34 = vld [vmem:[%s8798_s10 + $0x11] ss:$0 sm:$0xff] }
 0x755   : > { %5134 = vperm.xlu1 %6275, %v6145_v8   ;;  %5122 = vperm.xlu0 %6274, %v6142_v9   ;;  %v6155_v8 = vld [vmem:[%s8798_s10 + $0x16] ss:$0 sm:$0xff]  ;;  %v6152_v9 = vld [vmem:[%s8798_s10 + $0x13] ss:$0 sm:$0xff] }
 0x759   : > { %5142 = vperm.xlu1 %6275, %v6147_v49   ;;  %5130 = vperm.xlu0 %6274, %v6144_v39   ;;  %v6157_v49 = vld [vmem:[%s8798_s10 + $0x18] ss:$0 sm:$0xff]  ;;  %v6154_v39 = vld [vmem:[%s8798_s10 + $0x15] ss:$0 sm:$0xff] }
 0x75d   : > { %5206 = vperm.xlu1 %6275, %v6149_v12   ;;  %5138 = vperm.xlu0 %6274, %v6146_v53   ;;  %v6159_v12 = vld [vmem:[%s8798_s10 + $0x1a] ss:$0 sm:$0xff]  ;;  %v6156_v53 = vld [vmem:[%s8798_s10 + $0x17] ss:$0 sm:$0xff] }
 0x761   : > { %5214 = vperm.xlu1 %6275, %v6151_v60   ;;  %5146 = vperm.xlu0 %6274, %v6148_v20   ;;  %v6161_v60 = vld [vmem:[%s8798_s10 + $0x1c] ss:$0 sm:$0xff]  ;;  %v6158_v20 = vld [vmem:[%s8798_s10 + $0x19] ss:$0 sm:$0xff] }
 0x765   : > { %5222 = vperm.xlu1 %6275, %v6153_v30   ;;  %5210 = vperm.xlu0 %6274, %v6150_v34   ;;  %v6163_v30 = vld [vmem:[%s8798_s10 + $0x1e] ss:$0 sm:$0xff]  ;;  %v6160_v34 = vld [vmem:[%s8798_s10 + $0x1b] ss:$0 sm:$0xff] }
 0x769   : > { %5230 = vperm.xlu1 %6275, %v6155_v8   ;;  %5218 = vperm.xlu0 %6274, %v6152_v9   ;;  %v3907_v8 = vmul.f32 %v7938_v63, %v7962_v6  ;;  %v6165_v9 = vld [vmem:[%s8798_s10 + $0x20] ss:$0 sm:$0xff]  ;;  %v6164_v63 = vld [vmem:[%s8798_s10 + $0x1f] ss:$0 sm:$0xff] }
 0x76d   : > { %5294 = vperm.xlu1 %6275, %v6157_v49   ;;  %5226 = vperm.xlu0 %6274, %v6154_v39   ;;  %v6162_v49 = vld [vmem:[%s8798_s10 + $0x1d] ss:$0 sm:$0xff]  ;;  %v4027_v39 = vadd.f32 %v8076_v40, %v3907_v8  ;;  %v3908_v40 = vmul.f32 %v7950_v47, %v7976_v5  ;;  %v3901_v47 = vmul.f32 %v7930_v55, %v7942_v51 }
 0x76e   : > { %v4236_v55 = vmul.f32 %v8014_v13, %v8041_v1  ;;  %v3905_v13 = vmul.f32 %v7934_v58, %v7954_v2 }
 0x76f   : > { %v4028_v8 = vadd.f32 %v8082_v29, %v3908_v40  ;;  %v6168_v29 = vld [vmem:[%s8798_s10 + $0x23] ss:$0 sm:$0xff] }
 0x771   : > { %5302 = vperm.xlu1 %6275, %v6159_v12   ;;  %5234 = vperm.xlu0 %6274, %v6156_v53   ;;  %v4147_v12 = vadd.f32 %v8092_v41, %v4027_v39  ;;  %v6167_v53 = vld [vmem:[%s8798_s10 + $0x22] ss:$0 sm:$0xff]  ;;  %v6169_v41 = vld [vmem:[%s8798_s10 + $0x24] ss:$0 sm:$0xff]  ;;  %v4148_v5 = vadd.f32 %v8098_v10, %v4028_v8  ;;  %v3903_v10 = vmul.f32 %v7932_v36, %v7948_v7 }
 0x772   : > { %v4229_v36 = vmul.f32 %v7990_v62, %v8006_v48  ;;  %v4025_v62 = vadd.f32 %v8072_v23, %v3905_v13  ;;  %v4565_v23 = vmul.f32 %v8192_v25, %v8206_v27  ;;  %v8954_v25 = vld [vmem:[#allocation25_spill] sm:$0xff]  ;;  %v8964_v13 = vld [vmem:[#allocation11_spill] sm:$0xff] }
 0x773   : > { %v4244_v39 = vadd.f32 %v4236_v55, %v4148_v5  ;;  %v4023_v7 = vadd.f32 %v8068_v46, %v3903_v10 }
 0x775   : > { %5310 = vperm.xlu1 %6275, %v6161_v60   ;;  %5298 = vperm.xlu0 %6274, %v6158_v20   ;;  %v4235_v60 = vmul.f32 %v8002_v14, %v8026_v52  ;;  %v4571_v52 = vmul.f32 %v8202_v59, %v8226_v43  ;;  %v4143_v58 = vadd.f32 %v8084_v21, %v4023_v7  ;;  %v8965_v7 = vld [vmem:[#allocation26_spill] sm:$0xff] }
 0x777   : > { %v4243_v20 = vadd.f32 %v4235_v60, %v4147_v12  ;;  %v4572_v60 = vmul.f32 %v8214_v32, %v8241_v38  ;;  %v6172_v38 = vld [vmem:[%s8798_s10 + $0x27] ss:$0 sm:$0xff] }
 0x779   : > { %5318 = vperm.xlu1 %6275, %v6163_v30   ;;  %5306 = vperm.xlu0 %6274, %v6160_v34   ;;  %v6166_v30 = vld [vmem:[%s8798_s10 + $0x21] ss:$0 sm:$0xff]  ;;  %v4363_v14 = vadd.f32 %v8108_v37, %v4243_v20  ;;  %v4021_v37 = vadd.f32 %v8066_v16, %v3901_v47  ;;  %v6173_v16 = vld [vmem:[%s8798_s10 + $0x28] ss:$0 sm:$0xff] }
 0x77a   : > { %v8958_v47 = vld [vmem:[#allocation29_spill] sm:$0xff] }
 0x77d   : > { %5382 = vperm.xlu1 %6275, %v6165_v9   ;;  %5314 = vperm.xlu0 %6274, %v6162_v49   ;;  %v4483_v9 = vadd.f32 %v8188_v19, %v4363_v14  ;;  %v6171_v49 = vld [vmem:[%s8798_s10 + $0x26] ss:$0 sm:$0xff]  ;;  %v4141_v19 = vadd.f32 %v8080_v57, %v4021_v37  ;;  %v8955_v14 = vld [vmem:[#allocation42_spill] sm:$0xff] }
 0x77f   : > { %v8452_v6 = vpop.permute.xlu1 %4789  ;;  %v4579_v51 = vadd.f32 %v4571_v52, %v4483_v9  ;;  %v4237_v2 = vadd.f32 %v4229_v36, %v4141_v19  ;;  %v8961_v19 = vld [vmem:[#allocation12_spill] sm:$0xff] }
 0x781   : > { %5390 = vperm.xlu1 %6275, %v6167_v53   ;;  %5322 = vperm.xlu0 %6274, %v6164_v63   ;;  %v4699_v12 = vadd.f32 %v8276_v24, %v4579_v51  ;;  %v6170_v53 = vld [vmem:[%s8798_s10 + $0x25] ss:$0 sm:$0xff]  ;;  %v3902_v24 = vmul.f32 %v7936_v22, %v7956_v61  ;;  %v4364_v63 = vadd.f32 %v8114_v50, %v4244_v39  ;;  %v6175_v22 = vld [vmem:[%s8798_s10 + $0x2a] ss:$0 sm:$0xff] }
 0x782   : > { %v4231_v61 = vmul.f32 %v7994_v54, %v8012_v0  ;;  %v4357_v32 = vadd.f32 %v8096_v15, %v4237_v2  ;;  %v4145_v50 = vadd.f32 %v8088_v18, %v4025_v62  ;;  %v4233_v54 = vmul.f32 %v7998_v11, %v8018_v56  ;;  %v8952_v0 = vld [vmem:[#allocation22_spill] sm:$0xff]  ;;  %v8953_v15 = vld [vmem:[#allocation15_spill] sm:$0xff]  ;;  %v8956_v18 = vld [vmem:[#allocation9_spill] sm:$0xff] }
 0x783   : > { %v8464_v34 = vpop.permute.xlu1 %4793  ;;  %v4022_v48 = vadd.f32 %v8070_v3, %v3902_v24  ;;  %v4484_v46 = vadd.f32 %v8194_v28, %v4364_v63  ;;  %v3904_v3 = vmul.f32 %v7940_v4, %v7964_v44  ;;  %v4230_v27 = vmul.f32 %v8953_v15, %v8952_v0  ;;  %v6177_v44 = vld [vmem:[%s8798_s10 + $0x2c] ss:$0 sm:$0xff]  ;;  %v8959_v56 = vld [vmem:[#allocation19_spill] sm:$0xff]  ;;  %v6176_v2 = vld [vmem:[%s8798_s10 + $0x2b] ss:$0 sm:$0xff] }
 0x784   : > { %v4567_v5 = vmul.f32 %v8959_v56, %v8212_v31  ;;  %v4241_v55 = vadd.f32 %v4233_v54, %v4145_v50  ;;  %v8966_v31 = vld [vmem:[#allocation31_spill] sm:$0xff]  ;;  %v8967_v63 = vld [vmem:[#allocation30_spill] sm:$0xff]  ;;  %v8968_v62 = vld [vmem:[#allocation21_spill] sm:$0xff] }
 0x785   : > { %5398 = vperm.xlu1 %6275, %v6169_v41   ;;  %5386 = vperm.xlu0 %6274, %v6166_v30   ;;  %v4142_v28 = vadd.f32 %v8086_v45, %v4022_v48  ;;  %v4580_v20 = vadd.f32 %v4572_v60, %v4484_v46  ;;  %v4239_v41 = vadd.f32 %v4231_v61, %v4143_v58  ;;  %v6174_v45 = vld [vmem:[%s8798_s10 + $0x29] ss:$0 sm:$0xff]  ;;  %v6179_v58 = vld [vmem:[%s8798_s10 + $0x2e] ss:$0 sm:$0xff]  ;;  %v8969_v46 = vld [vmem:[#allocation33_spill] sm:$0xff] }
 0x786   : > { %v4477_v30 = vadd.f32 %v8178_v33, %v4357_v32  ;;  %v4024_v8 = vadd.f32 %v8954_v25, %v3904_v3  ;;  %v8957_v33 = vld [vmem:[#allocation13_spill] sm:$0xff]  ;;  %v4361_v24 = vadd.f32 %v8966_v31, %v4241_v55  ;;  %v4569_v48 = vmul.f32 %v8968_v62, %v8218_v26  ;;  %v8970_v32 = vld [vmem:[#allocation28_spill] sm:$0xff]  ;;  %v8971_v50 = vld [vmem:[#allocation18_spill] sm:$0xff] }
 0x787   : > { %v8481_v59 = vpop.permute.xlu1 %4797  ;;  %v8483_v43 = vpop.permute.xlu0 %4791  ;;  %v4700_v4 = vadd.f32 %v8955_v14, %v4580_v20  ;;  %v3906_v52 = vmul.f32 %v8957_v33, %v8956_v18  ;;  %v4359_v11 = vadd.f32 %v8958_v47, %v4239_v41  ;;  %v4238_v51 = vadd.f32 %v4230_v27, %v4142_v28  ;;  %v8972_v41 = vld [vmem:[#allocation20_spill] sm:$0xff]  ;;  %v8973_v54 = vld [vmem:[#allocation37_spill] sm:$0xff]  ;;  %v6178_v14 = vld [vmem:[%s8798_s10 + $0x2d] ss:$0 sm:$0xff] }
 0x788   : > { %v4573_v9 = vadd.f32 %v4565_v23, %v4477_v30  ;;  %v4481_v28 = vadd.f32 %v8971_v50, %v4361_v24  ;;  %v8974_v26 = vld [vmem:[#allocation24_spill] sm:$0xff]  ;;  %v8975_v27 = vld [vmem:[#allocation17_spill] sm:$0xff]  ;;  %v8978_v47 = vld [vmem:[#allocation14_spill] sm:$0xff] }
 0x789   : > { %5406 = vperm.xlu1 %6275, %v6171_v49   ;;  %5394 = vperm.xlu0 %6274, %v6168_v29   ;;  %v8960_v29 = vld [vmem:[#allocation27_spill] sm:$0xff]  ;;  %v4479_v39 = vadd.f32 %v8961_v19, %v4359_v11  ;;  %v4358_v60 = vadd.f32 %v8967_v63, %v4238_v51  ;;  %v4234_v25 = vmul.f32 %v8975_v27, %v8974_v26  ;;  %v8981_v55 = vld [vmem:[#allocation16_spill] sm:$0xff] }
 0x78a   : > { %v4144_v37 = vadd.f32 %v8960_v29, %v4024_v8  ;;  %v8982_v19 = vld [vmem:[#allocation35_spill] sm:$0xff]  ;;  %v8984_v31 = vld [vmem:[#allocation40_spill] sm:$0xff] }
 0x78b   : > { %v4802_v1 = vpop.permute.xlu1 %4801  ;;  %v8502_v57 = vpop.permute.xlu0 %4795  ;;  %v4478_v30 = vadd.f32 %v8972_v41, %v4358_v60 }
 0x78c   : > { %v8509_v40 = vadd.f32 %v4802_v1, %v4699_v12  ;;  %v8962_v12 = vld [vmem:[#allocation36_spill] sm:$0xff]  ;;  %v4026_v1 = vadd.f32 %v8965_v7, %v3906_v52 }
 0x78d   : > { %5470 = vperm.xlu1 %6275, %v6173_v16   ;;  %5402 = vperm.xlu0 %6274, %v6170_v53   ;;  %v4693_v16 = vadd.f32 %v8962_v12, %v4573_v9  ;;  %v8963_v53 = vld [vmem:[#allocation23_spill] sm:$0xff] }
 0x78e   : > { %v4232_v36 = vmul.f32 %v8964_v13, %v8963_v53  ;;  %v4146_v23 = vadd.f32 %v8970_v32, %v4026_v1  ;;  %v8983_v13 = vld [vmem:[#allocation10_spill] sm:$0xff]  ;;  %v6184_v32 = vld [vmem:[%s8798_s10 + $0x33] ss:$0 sm:$0xff] }
 0x78f   : > { %v8526_v21 = vpop.permute.xlu0 %4799  ;;  %v4813_v61 = vadd.f32 %v8452_v6, %v4693_v16  ;;  %v6181_v6 = vld [vmem:[%s8798_s10 + $0x30] ss:$0 sm:$0xff] }
 0x790   : > { %v4240_v3 = vadd.f32 %v4232_v36, %v4144_v37  ;;  %v4242_v52 = vadd.f32 %v4234_v25, %v4146_v23 }
 0x791   : > { %5478 = vperm.xlu1 %6275, %v6175_v22   ;;  %5410 = vperm.xlu0 %6274, %v6172_v38   ;;  %v4566_v22 = vmul.f32 %v8969_v46, %v8220_v42  ;;  %v4575_v38 = vadd.f32 %v4567_v5, %v4479_v39  ;;  %v8976_v42 = vld [vmem:[#allocation32_spill] sm:$0xff]  ;;  %v8979_v5 = vld [vmem:[#allocation39_spill] sm:$0xff]  ;;  %v4570_v39 = vmul.f32 %v8982_v19, %v8234_v17 }
 0x792   : > { %v4360_v8 = vadd.f32 %v8976_v42, %v4240_v3  ;;  %v4362_v51 = vadd.f32 %v8981_v55, %v4242_v52  ;;  %v6182_v17 = vld [vmem:[%s8798_s10 + $0x31] ss:$0 sm:$0xff] }
 0x793   : > { %v4804_v49 = vpop.permute.xlu0 %4803  ;;  %v4695_v0 = vadd.f32 %v8973_v54, %v4575_v38  ;;  %v4574_v18 = vadd.f32 %v4566_v22, %v4478_v30 }
 0x794   : > { %v8551_v10 = vadd.f32 %v4804_v49, %v4700_v4  ;;  %v8977_v4 = vld [vmem:[#allocation34_spill] sm:$0xff]  ;;  %v4480_v11 = vadd.f32 %v8978_v47, %v4360_v8  ;;  %v4482_v36 = vadd.f32 %v8983_v13, %v4362_v51  ;;  %v6190_v8 = vld [vmem:[%s8798_s10 + $0x39] ss:$0 sm:$0xff]  ;;  %v6199_v51 = vld [vmem:[%s8799_s11 + $0x2] ss:$0 sm:$0xff] }
 0x795   : > { %5486 = vperm.xlu1 %6275, %v6177_v44   ;;  %5474 = vperm.xlu0 %6274, %v6174_v45   ;;  %v4568_v44 = vmul.f32 %v8977_v4, %v8228_v35  ;;  %v4577_v45 = vadd.f32 %v4569_v48, %v4481_v28  ;;  %v4815_v33 = vadd.f32 %v8464_v34, %v4695_v0  ;;  %v8980_v49 = vld [vmem:[#allocation38_spill] sm:$0xff]  ;;  %v6183_v35 = vld [vmem:[%s8798_s10 + $0x32] ss:$0 sm:$0xff]  ;;  %v8985_v48 = vld [vmem:[#allocation41_spill] sm:$0xff] }
 0x796   : > { %v4694_v29 = vadd.f32 %v8980_v49, %v4574_v18  ;;  %v6180_v34 = vld [vmem:[%s8798_s10 + $0x2f] ss:$0 sm:$0xff]  ;;  %v6191_v0 = vld [vmem:[%s8798_s10 + $0x3a] ss:$0 sm:$0xff]  ;;  %v6192_v18 = vld [vmem:[%s8798_s10 + $0x3b] ss:$0 sm:$0xff] }
 0x797   : > { %v4697_v9 = vadd.f32 %v8979_v5, %v4577_v45  ;;  %v4576_v12 = vadd.f32 %v4568_v44, %v4480_v11  ;;  %v6195_v45 = vld [vmem:[%s8798_s10 + $0x3e] ss:$0 sm:$0xff]  ;;  %v6197_v5 = vld [vmem:[%s8799_s11] ss:$0 sm:$0xff] }
 0x798   : > { %v4863_v20 = vpop.permute.xlu1 %4862  ;;  %v4814_v53 = vadd.f32 %v8483_v43, %v4694_v29 }
 0x799   : > { %v4893_v15 = vmul.f32 %v4863_v20, %v4813_v61  ;;  %5494 = vperm.xlu1 %6275, %v6179_v58   ;;  %5482 = vperm.xlu0 %6274, %v6176_v2   ;;  %v4817_v16 = vadd.f32 %v8481_v59, %v4697_v9  ;;  %v4696_v24 = vadd.f32 %v8984_v31, %v4576_v12  ;;  %v6185_v58 = vld [vmem:[%s8798_s10 + $0x34] ss:$0 sm:$0xff]  ;;  %v6187_v61 = vld [vmem:[%s8798_s10 + $0x36] ss:$0 sm:$0xff]  ;;  %v6186_v20 = vld [vmem:[%s8798_s10 + $0x35] ss:$0 sm:$0xff] }
 0x79a   : > { %v4578_v59 = vadd.f32 %v4570_v39, %v4482_v36  ;;  %v6194_v9 = vld [vmem:[%s8798_s10 + $0x3d] ss:$0 sm:$0xff]  ;;  %v6203_v31 = vld [vmem:[%s8799_s11 + $0x6] ss:$0 sm:$0xff] }
 0x79b   : > { %v4816_v43 = vadd.f32 %v8502_v57, %v4696_v24  ;;  %v6200_v24 = vld [vmem:[%s8799_s11 + $0x3] ss:$0 sm:$0xff] }
 0x79c   : > { %v4871_v56 = vpop.permute.xlu1 %4870  ;;  %v4698_v46 = vadd.f32 %v8985_v48, %v4578_v59 }
 0x79d   : > { %v4895_v37 = vmul.f32 %v4871_v56, %v4815_v33  ;;  %5558 = vperm.xlu1 %6275, %v6181_v6   ;;  %5490 = vperm.xlu0 %6274, %v6178_v14  }
 0x79e   : > { %v4818_v23 = vadd.f32 %v8526_v21, %v4698_v46 }
 0x7a0   : > { %v4879_v7 = vpop.permute.xlu1 %4878  ;;  %v4867_v1 = vpop.permute.xlu0 %4866 }
 0x7a1   : > { %v4897_v63 = vmul.f32 %v4879_v7, %v4817_v16  ;;  %v4894_v60 = vmul.f32 %v4867_v1, %v4814_v53  ;;  %5566 = vperm.xlu1 %6275, %v6183_v35   ;;  %5498 = vperm.xlu0 %6274, %v6180_v34   ;;  %v6196_v35 = vld [vmem:[%s8798_s10 + $0x3f] ss:$0 sm:$0xff]  ;;  %v6201_v16 = vld [vmem:[%s8799_s11 + $0x4] ss:$0 sm:$0xff]  ;;  %v6198_v53 = vld [vmem:[%s8799_s11 + $0x1] ss:$0 sm:$0xff] }
 0x7a4   : > { %v4887_v2 = vpop.permute.xlu1 %4886  ;;  %v4875_v62 = vpop.permute.xlu0 %4874 }
 0x7a5   : > { %v4899_v22 = vmul.f32 %v4887_v2, %v8509_v40  ;;  %v4896_v38 = vmul.f32 %v4875_v62, %v4816_v43  ;;  %5574 = vperm.xlu1 %6275, %v6185_v58   ;;  %5562 = vperm.xlu0 %6274, %v6182_v17   ;;  %v6189_v40 = vld [vmem:[%s8798_s10 + $0x38] ss:$0 sm:$0xff]  ;;  %v6205_v43 = vld [vmem:[%s8800_s12] ss:$0 sm:$0xff]  ;;  %v6202_v2 = vld [vmem:[%s8799_s11 + $0x5] ss:$0 sm:$0xff] }
 0x7a8   : > { %v4943_v57 = vpop.permute.xlu1 %4942  ;;  %v4883_v3 = vpop.permute.xlu0 %4882 }
 0x7a9   : > { %v4973_v50 = vadd.f32 %v4943_v57, %v4893_v15  ;;  %v4898_v28 = vmul.f32 %v4883_v3, %v4818_v23  ;;  %5582 = vperm.xlu1 %6275, %v6187_v61   ;;  %5570 = vperm.xlu0 %6274, %v6184_v32   ;;  %v6188_v15 = vld [vmem:[%s8798_s10 + $0x37] ss:$0 sm:$0xff]  ;;  %v6207_v61 = vld [vmem:[%s8800_s12 + $0x2] ss:$0 sm:$0xff]  ;;  %v6204_v32 = vld [vmem:[%s8799_s11 + $0x7] ss:$0 sm:$0xff] }
 0x7ab   : > { %v4981_v33 = vmax.f32 %v4973_v50, 0.0 }
 0x7ac   : > { %v4951_v41 = vpop.permute.xlu1 %4950  ;;  %v4891_v30 = vpop.permute.xlu0 %4890 }
 0x7ad   : > { %v8625_v54 = vadd.f32 %v4951_v41, %v4895_v37  ;;  %v4900_v21 = vmul.f32 %v4891_v30, %v8551_v10  ;;  %5646 = vperm.xlu1 %6275, %v6189_v40   ;;  %5578 = vperm.xlu0 %6274, %v6186_v20   ;;  %v6193_v10 = vld [vmem:[%s8798_s10 + $0x3c] ss:$0 sm:$0xff]  ;;  %v6209_v40 = vld [vmem:[%s8800_s12 + $0x4] ss:$0 sm:$0xff]  ;;  %v6206_v20 = vld [vmem:[%s8800_s12 + $0x1] ss:$0 sm:$0xff] }
 0x7b0   : > { %v4959_v26 = vpop.permute.xlu1 %4958  ;;  %v4947_v27 = vpop.permute.xlu0 %4946 }
 0x7b1   : > { %v8634_v25 = vadd.f32 %v4959_v26, %v4897_v63  ;;  %v4974_v42 = vadd.f32 %v4947_v27, %v4894_v60  ;;  %5654 = vperm.xlu1 %6275, %v6191_v0   ;;  %5586 = vperm.xlu0 %6274, %v6188_v15   ;;  %v6211_v27 = vld [vmem:[%s8800_s12 + $0x6] ss:$0 sm:$0xff] }
 0x7b3   : > { %v4982_v63 = vmax.f32 %v4974_v42, 0.0  ;;  %v6208_v42 = vld [vmem:[%s8800_s12 + $0x3] ss:$0 sm:$0xff] }
 0x7b4   : > { %v4967_v6 = vpop.permute.xlu1 %4966  ;;  %v4955_v14 = vpop.permute.xlu0 %4954 }
 0x7b5   : > { %v8642_v4 = vadd.f32 %v4967_v6, %v4899_v22  ;;  %v8644_v44 = vadd.f32 %v4955_v14, %v4896_v38  ;;  %5662 = vperm.xlu1 %6275, %v6193_v10   ;;  %5650 = vperm.xlu0 %6274, %v6190_v8   ;;  %v4983_v10 = vmax.f32 %v8625_v54, 0.0  ;;  %v6212_v54 = vld [vmem:[%s8800_s12 + $0x7] ss:$0 sm:$0xff] }
 0x7b8   : > { %v5031_v52 = vpop.permute.xlu1 %5030  ;;  %v4963_v47 = vpop.permute.xlu0 %4962 }
 0x7b9   : > { %v5061_v11 = vmul.f32 %v5031_v52, %v4981_v33  ;;  %v8652_v56 = vadd.f32 %v4963_v47, %v4898_v28  ;;  %5670 = vperm.xlu1 %6275, %v6195_v45   ;;  %5658 = vperm.xlu0 %6274, %v6192_v18   ;;  %v6210_v52 = vld [vmem:[%s8800_s12 + $0x5] ss:$0 sm:$0xff] }
 0x7bc   : > { %v5039_v49 = vpop.permute.xlu1 %5038  ;;  %v4971_v29 = vpop.permute.xlu0 %4970 }
 0x7bd   : > { %v5063_v37 = vmul.f32 %v5039_v49, %v4981_v33  ;;  %v8660_v55 = vadd.f32 %v4971_v29, %v4900_v21  ;;  %5734 = vperm.xlu1 %6275, %v6197_v5   ;;  %5666 = vperm.xlu0 %6274, %v6194_v9  }
 0x7c0   : > { %v5047_v34 = vpop.permute.xlu1 %5046  ;;  %v5035_v19 = vpop.permute.xlu0 %5034 }
 0x7c1   : > { %v5065_v39 = vmul.f32 %v5047_v34, %v4981_v33  ;;  %v5062_v12 = vmul.f32 %v5035_v19, %v4981_v33  ;;  %5742 = vperm.xlu1 %6275, %v6199_v51   ;;  %5674 = vperm.xlu0 %6274, %v6196_v35  }
 0x7c4   : > { %v5055_v13 = vpop.permute.xlu1 %5054  ;;  %v5043_v36 = vpop.permute.xlu0 %5042 }
 0x7c5   : > { %v5067_v7 = vmul.f32 %v5055_v13, %v4981_v33  ;;  %v5064_v1 = vmul.f32 %v5043_v36, %v4981_v33  ;;  %5750 = vperm.xlu1 %6275, %v6201_v16   ;;  %5738 = vperm.xlu0 %6274, %v6198_v53  }
 0x7c8   : > { %v5119_v60 = vpop.permute.xlu1 %5118  ;;  %v5051_v58 = vpop.permute.xlu0 %5050 }
 0x7c9   : > { %v5149_v17 = vmul.f32 %v5119_v60, %v4982_v63  ;;  %v5066_v59 = vmul.f32 %v5051_v58, %v4981_v33  ;;  %5758 = vperm.xlu1 %6275, %v6203_v31   ;;  %5746 = vperm.xlu0 %6274, %v6200_v24  }
 0x7cb   : > { %v5157_v62 = vadd.f32 %v5149_v17, %v5061_v11 }
 0x7cc   : > { %v5127_v48 = vpop.permute.xlu1 %5126  ;;  %v5059_v46 = vpop.permute.xlu0 %5058 }
 0x7cd   : > { %v5151_v22 = vmul.f32 %v5127_v48, %v4982_v63  ;;  %v5068_v38 = vmul.f32 %v5059_v46, %v4981_v33  ;;  %5814 = vperm.xlu1 %6275, %v6205_v43   ;;  %5754 = vperm.xlu0 %6274, %v6202_v2  }
 0x7cf   : > { %v5159_v23 = vadd.f32 %v5151_v22, %v5063_v37 }
 0x7d0   : > { %v5135_v57 = vpop.permute.xlu1 %5134  ;;  %v5123_v3 = vpop.permute.xlu0 %5122 }
 0x7d1   : > { %v5153_v50 = vmul.f32 %v5135_v57, %v4982_v63  ;;  %v5150_v28 = vmul.f32 %v5123_v3, %v4982_v63  ;;  %5822 = vperm.xlu1 %6275, %v6207_v61   ;;  %5762 = vperm.xlu0 %6274, %v6204_v32  }
 0x7d3   : > { %v5161_v41 = vadd.f32 %v5153_v50, %v5065_v39  ;;  %v5158_v30 = vadd.f32 %v5150_v28, %v5062_v12 }
 0x7d4   : > { %v5143_v21 = vpop.permute.xlu1 %5142  ;;  %v5131_v0 = vpop.permute.xlu0 %5130 }
 0x7d5   : > { %v5155_v15 = vmul.f32 %v5143_v21, %v4982_v63  ;;  %v5152_v26 = vmul.f32 %v5131_v0, %v4982_v63  ;;  %5830 = vperm.xlu1 %6275, %v6209_v40   ;;  %5818 = vperm.xlu0 %6274, %v6206_v20  }
 0x7d7   : > { %v5163_v8 = vadd.f32 %v5155_v15, %v5067_v7  ;;  %v5160_v6 = vadd.f32 %v5152_v26, %v5064_v1  ;;  %v4984_v1 = vmax.f32 %v8644_v44, 0.0 }
 0x7d8   : > { %v5207_v14 = vpop.permute.xlu1 %5206  ;;  %v5139_v45 = vpop.permute.xlu0 %5138 }
 0x7d9   : > { %v5237_v18 = vmul.f32 %v5207_v14, %v4983_v10  ;;  %v5154_v33 = vmul.f32 %v5139_v45, %v4982_v63  ;;  %5838 = vperm.xlu1 %6275, %v6211_v27   ;;  %5826 = vperm.xlu0 %6274, %v6208_v42  }
 0x7db   : > { %v5245_v47 = vadd.f32 %v5237_v18, %v5157_v62  ;;  %v5162_v11 = vadd.f32 %v5154_v33, %v5066_v59 }
 0x7dc   : > { %v5215_v5 = vpop.permute.xlu1 %5214  ;;  %v5147_v9 = vpop.permute.xlu0 %5146 }
 0x7dd   : > { %v5239_v49 = vmul.f32 %v5215_v5, %v4983_v10  ;;  %v5156_v29 = vmul.f32 %v5147_v9, %v4982_v63  ;;  %5834 = vperm.xlu0 %6274, %v6210_v52  }
 0x7df   : > { %v5247_v37 = vadd.f32 %v5239_v49, %v5159_v23  ;;  %v5164_v51 = vadd.f32 %v5156_v29, %v5068_v38 }
 0x7e0   : > { %v5223_v35 = vpop.permute.xlu1 %5222  ;;  %v5211_v34 = vpop.permute.xlu0 %5210 }
 0x7e1   : > { %v5241_v19 = vmul.f32 %v5223_v35, %v4983_v10  ;;  %v5238_v39 = vmul.f32 %v5211_v34, %v4983_v10  ;;  %5842 = vperm.xlu0 %6274, %v6212_v54  }
 0x7e3   : > { %v5249_v12 = vadd.f32 %v5241_v19, %v5161_v41  ;;  %v5246_v16 = vadd.f32 %v5238_v39, %v5158_v30  ;;  %v4985_v41 = vmax.f32 %v8634_v25, 0.0 }
 0x7e4   : > { %v5231_v53 = vpop.permute.xlu1 %5230  ;;  %v5219_v13 = vpop.permute.xlu0 %5218 }
 0x7e5   : > { %v5243_v36 = vmul.f32 %v5231_v53, %v4983_v10  ;;  %v5240_v7 = vmul.f32 %v5219_v13, %v4983_v10 }
 0x7e7   : > { %v5251_v31 = vadd.f32 %v5243_v36, %v5163_v8  ;;  %v5248_v24 = vadd.f32 %v5240_v7, %v5160_v6 }
 0x7e8   : > { %v5295_v63 = vpop.permute.xlu1 %5294  ;;  %v5227_v60 = vpop.permute.xlu0 %5226 }
 0x7e9   : > { %v5325_v58 = vmul.f32 %v5295_v63, %v4984_v1  ;;  %v5242_v17 = vmul.f32 %v5227_v60, %v4983_v10 }
 0x7eb   : > { %v5333_v59 = vadd.f32 %v5325_v58, %v5245_v47  ;;  %v5250_v43 = vadd.f32 %v5242_v17, %v5162_v11 }
 0x7ec   : > { %v5303_v2 = vpop.permute.xlu1 %5302  ;;  %v5235_v62 = vpop.permute.xlu0 %5234 }
 0x7ed   : > { %v5327_v48 = vmul.f32 %v5303_v2, %v4984_v1  ;;  %v5244_v46 = vmul.f32 %v5235_v62, %v4983_v10 }
 0x7ef   : > { %v5335_v22 = vadd.f32 %v5327_v48, %v5247_v37  ;;  %v5252_v38 = vadd.f32 %v5244_v46, %v5164_v51  ;;  %v4986_v51 = vmax.f32 %v8652_v56, 0.0 }
 0x7f0   : > { %v5311_v61 = vpop.permute.xlu1 %5310  ;;  %v5299_v32 = vpop.permute.xlu0 %5298 }
 0x7f1   : > { %v5329_v23 = vmul.f32 %v5311_v61, %v4984_v1  ;;  %v5326_v57 = vmul.f32 %v5299_v32, %v4984_v1 }
 0x7f3   : > { %v5337_v3 = vadd.f32 %v5329_v23, %v5249_v12  ;;  %v5334_v44 = vadd.f32 %v5326_v57, %v5246_v16 }
 0x7f4   : > { %v5319_v50 = vpop.permute.xlu1 %5318  ;;  %v5307_v28 = vpop.permute.xlu0 %5306 }
 0x7f5   : > { %v5331_v40 = vmul.f32 %v5319_v50, %v4984_v1  ;;  %v5328_v20 = vmul.f32 %v5307_v28, %v4984_v1 }
 0x7f7   : > { %v5339_v30 = vadd.f32 %v5331_v40, %v5251_v31  ;;  %v5336_v21 = vadd.f32 %v5328_v20, %v5248_v24 }
 0x7f8   : > { %v5383_v0 = vpop.permute.xlu1 %5382  ;;  %v5315_v15 = vpop.permute.xlu0 %5314 }
 0x7f9   : > { %v5413_v26 = vmul.f32 %v5383_v0, %v4985_v41  ;;  %v5330_v27 = vmul.f32 %v5315_v15, %v4984_v1 }
 0x7fb   : > { %v5421_v42 = vadd.f32 %v5413_v26, %v5333_v59  ;;  %v5338_v10 = vadd.f32 %v5330_v27, %v5250_v43 }
 0x7fc   : > { %v5391_v8 = vpop.permute.xlu1 %5390  ;;  %v5323_v6 = vpop.permute.xlu0 %5322 }
 0x7fd   : > { %v5415_v14 = vmul.f32 %v5391_v8, %v4985_v41  ;;  %v5332_v45 = vmul.f32 %v5323_v6, %v4984_v1 }
 0x7ff   : > { %v5423_v18 = vadd.f32 %v5415_v14, %v5335_v22  ;;  %v5340_v33 = vadd.f32 %v5332_v45, %v5252_v38  ;;  %v4987_v22 = vmax.f32 %v8642_v4, 0.0  ;;  %v4988_v45 = vmax.f32 %v8660_v55, 0.0 }
 0x800   : > { %v5399_v52 = vpop.permute.xlu1 %5398  ;;  %v5387_v47 = vpop.permute.xlu0 %5386 }
 0x801   : > { %v5417_v11 = vmul.f32 %v5399_v52, %v4985_v41  ;;  %v5414_v5 = vmul.f32 %v5387_v47, %v4985_v41 }
 0x803   : > { %v5425_v9 = vadd.f32 %v5417_v11, %v5337_v3  ;;  %v5422_v25 = vadd.f32 %v5414_v5, %v5334_v44 }
 0x804   : > { %v5407_v49 = vpop.permute.xlu1 %5406  ;;  %v5395_v29 = vpop.permute.xlu0 %5394 }
 0x805   : > { %v5419_v54 = vmul.f32 %v5407_v49, %v4985_v41  ;;  %v5416_v37 = vmul.f32 %v5395_v29, %v4985_v41 }
 0x807   : > { %v5427_v35 = vadd.f32 %v5419_v54, %v5339_v30  ;;  %v5424_v34 = vadd.f32 %v5416_v37, %v5336_v21 }
 0x808   : > { %v5471_v19 = vpop.permute.xlu1 %5470  ;;  %v5403_v39 = vpop.permute.xlu0 %5402 }
 0x809   : > { %v5501_v12 = vmul.f32 %v5471_v19, %v4986_v51  ;;  %v5418_v16 = vmul.f32 %v5403_v39, %v4985_v41 }
 0x80b   : > { %v5509_v53 = vadd.f32 %v5501_v12, %v5421_v42  ;;  %v5426_v13 = vadd.f32 %v5418_v16, %v5338_v10 }
 0x80c   : > { %v5479_v36 = vpop.permute.xlu1 %5478  ;;  %v5411_v7 = vpop.permute.xlu0 %5410 }
 0x80d   : > { %v5503_v1 = vmul.f32 %v5479_v36, %v4986_v51  ;;  %v5420_v31 = vmul.f32 %v5411_v7, %v4985_v41 }
 0x80f   : > { %v5511_v24 = vadd.f32 %v5503_v1, %v5423_v18  ;;  %v5428_v63 = vadd.f32 %v5420_v31, %v5340_v33 }
 0x810   : > { %v5487_v60 = vpop.permute.xlu1 %5486  ;;  %v5475_v58 = vpop.permute.xlu0 %5474 }
 0x811   : > { %v5505_v17 = vmul.f32 %v5487_v60, %v4986_v51  ;;  %v5502_v59 = vmul.f32 %v5475_v58, %v4986_v51 }
 0x813   : > { %v5513_v43 = vadd.f32 %v5505_v17, %v5425_v9  ;;  %v5510_v56 = vadd.f32 %v5502_v59, %v5422_v25 }
 0x814   : > { %v5495_v2 = vpop.permute.xlu1 %5494  ;;  %v5483_v62 = vpop.permute.xlu0 %5482 }
 0x815   : > { %v5507_v48 = vmul.f32 %v5495_v2, %v4986_v51  ;;  %v5504_v46 = vmul.f32 %v5483_v62, %v4986_v51 }
 0x817   : > { %v5515_v38 = vadd.f32 %v5507_v48, %v5427_v35  ;;  %v5512_v61 = vadd.f32 %v5504_v46, %v5424_v34 }
 0x818   : > { %v5559_v32 = vpop.permute.xlu1 %5558  ;;  %v5491_v23 = vpop.permute.xlu0 %5490 }
 0x819   : > { %v5589_v57 = vmul.f32 %v5559_v32, %v4987_v22  ;;  %v5506_v3 = vmul.f32 %v5491_v23, %v4986_v51 }
 0x81b   : > { %v5597_v44 = vadd.f32 %v5589_v57, %v5509_v53  ;;  %v5514_v50 = vadd.f32 %v5506_v3, %v5426_v13 }
 0x81c   : > { %v5567_v28 = vpop.permute.xlu1 %5566  ;;  %v5499_v40 = vpop.permute.xlu0 %5498 }
 0x81d   : > { %v5591_v20 = vmul.f32 %v5567_v28, %v4987_v22  ;;  %v5508_v41 = vmul.f32 %v5499_v40, %v4986_v51 }
 0x81f   : > { %v5599_v30 = vadd.f32 %v5591_v20, %v5511_v24  ;;  %v5516_v21 = vadd.f32 %v5508_v41, %v5428_v63 }
 0x820   : > { %v5575_v0 = vpop.permute.xlu1 %5574  ;;  %v5563_v15 = vpop.permute.xlu0 %5562 }
 0x821   : > { %v5593_v26 = vmul.f32 %v5575_v0, %v4987_v22  ;;  %v5590_v27 = vmul.f32 %v5563_v15, %v4987_v22 }
 0x823   : > { %v5601_v42 = vadd.f32 %v5593_v26, %v5513_v43  ;;  %v5598_v4 = vadd.f32 %v5590_v27, %v5510_v56 }
 0x824   : > { %v5583_v10 = vpop.permute.xlu1 %5582  ;;  %v5571_v8 = vpop.permute.xlu0 %5570 }
 0x825   : > { %v5595_v6 = vmul.f32 %v5583_v10, %v4987_v22  ;;  %v5592_v14 = vmul.f32 %v5571_v8, %v4987_v22 }
 0x827   : > { %v5603_v18 = vadd.f32 %v5595_v6, %v5515_v38  ;;  %v5600_v33 = vadd.f32 %v5592_v14, %v5512_v61 }
 0x828   : > { %v5647_v52 = vpop.permute.xlu1 %5646  ;;  %v5579_v47 = vpop.permute.xlu0 %5578 }
 0x829   : > { %v5677_v11 = vmul.f32 %v5647_v52, %v4988_v45  ;;  %v5594_v5 = vmul.f32 %v5579_v47, %v4987_v22 }
 0x82b   : > { %v5602_v9 = vadd.f32 %v5594_v5, %v5514_v50  ;;  %v5685_v25 = vadd.f32 %v5677_v11, %v5597_v44 }
 0x82c   : > { %v5655_v49 = vpop.permute.xlu1 %5654  ;;  %v5587_v29 = vpop.permute.xlu0 %5586 }
 0x82d   : > { %v5679_v54 = vmul.f32 %v5655_v49, %v4988_v45  ;;  %v5596_v37 = vmul.f32 %v5587_v29, %v4987_v22 }
 0x82f   : > { %v5604_v51 = vadd.f32 %v5596_v37, %v5516_v21  ;;  %v5687_v35 = vadd.f32 %v5679_v54, %v5599_v30 }
 0x830   : > { %v5663_v34 = vpop.permute.xlu1 %5662  ;;  %v5651_v19 = vpop.permute.xlu0 %5650 }
 0x831   : > { %v5681_v39 = vmul.f32 %v5663_v34, %v4988_v45  ;;  %v5678_v12 = vmul.f32 %v5651_v19, %v4988_v45 }
 0x833   : > { %v5689_v16 = vadd.f32 %v5681_v39, %v5601_v42  ;;  %v5686_v55 = vadd.f32 %v5678_v12, %v5598_v4 }
 0x834   : > { %v5671_v53 = vpop.permute.xlu1 %5670  ;;  %v5659_v13 = vpop.permute.xlu0 %5658 }
 0x835   : > { %v5683_v36 = vmul.f32 %v5671_v53, %v4988_v45  ;;  %v5680_v7 = vmul.f32 %v5659_v13, %v4988_v45 }
 0x837   : > { %v5691_v1 = vadd.f32 %v5683_v36, %v5603_v18  ;;  %v5688_v31 = vadd.f32 %v5680_v7, %v5600_v33 }
 0x838   : > { %v5735_v24 = vpop.permute.xlu1 %5734  ;;  %v5667_v63 = vpop.permute.xlu0 %5666 }
 0x839   : > { %v5682_v60 = vmul.f32 %v5667_v63, %v4988_v45  ;;  %v5765_v22 = vmul.f32 %v5735_v24, %v5685_v25 }
 0x83b   : > { %v5690_v58 = vadd.f32 %v5682_v60, %v5602_v9 }
 0x83c   : > { %v5743_v17 = vpop.permute.xlu1 %5742  ;;  %v5675_v59 = vpop.permute.xlu0 %5674 }
 0x83d   : > { %v5684_v43 = vmul.f32 %v5675_v59, %v4988_v45  ;;  %v5767_v23 = vmul.f32 %v5743_v17, %v5687_v35 }
 0x83f   : > { %v5692_v56 = vadd.f32 %v5684_v43, %v5604_v51 }
 0x840   : > { %v5751_v2 = vpop.permute.xlu1 %5750  ;;  %v5739_v62 = vpop.permute.xlu0 %5738 }
 0x841   : > { %v5769_v28 = vmul.f32 %v5751_v2, %v5689_v16  ;;  %v5766_v40 = vmul.f32 %v5739_v62, %v5686_v55 }
 0x844   : > { %v5759_v48 = vpop.permute.xlu1 %5758  ;;  %v5747_v46 = vpop.permute.xlu0 %5746 }
 0x845   : > { %v5771_v15 = vmul.f32 %v5759_v48, %v5691_v1  ;;  %v5768_v26 = vmul.f32 %v5747_v46, %v5688_v31 }
 0x848   : > { %v5815_v38 = vpop.permute.xlu1 %5814  ;;  %v5755_v61 = vpop.permute.xlu0 %5754 }
 0x849   : > { %v5845_v32 = vadd.f32 %v5815_v38, %v5765_v22  ;;  %v5770_v14 = vmul.f32 %v5755_v61, %v5690_v58 }
 0x84b   : > { %v5853_v57 = vmax.f32 %v5845_v32, 0.0 }
 0x84c   : > { %v5823_v3 = vpop.permute.xlu1 %5822  ;;  %v5763_v44 = vpop.permute.xlu0 %5762 }
 0x84d   : > { %5862 = vst.msk [vmem:[%s8719_s15] sm:$0xff] %vm5861_vm11, %v5853_v57  ;;  %v5847_v50 = vadd.f32 %v5823_v3, %v5767_v23  ;;  %v5772_v47 = vmul.f32 %v5763_v44, %v5692_v56 }
 0x84f   : > { %v5855_v20 = vmax.f32 %v5847_v50, 0.0 }
 0x850   : > { %v5831_v41 = vpop.permute.xlu1 %5830  ;;  %v5819_v30 = vpop.permute.xlu0 %5818 }
 0x851   : > { %5864 = vst.msk [vmem:[%s8719_s15 + $0x10] sm:$0xff] %vm5861_vm11, %v5855_v20  ;;  %v5849_v21 = vadd.f32 %v5831_v41, %v5769_v28  ;;  %v5846_v0 = vadd.f32 %v5819_v30, %v5766_v40 }
 0x853   : > { %v5857_v27 = vmax.f32 %v5849_v21, 0.0  ;;  %v5854_v42 = vmax.f32 %v5846_v0, 0.0 }
 0x854   : > { %v5839_v4 = vpop.permute.xlu1 %5838  ;;  %v5827_v10 = vpop.permute.xlu0 %5826 }
 0x855   : > { %5866 = vst.msk [vmem:[%s8719_s15 + $0x20] sm:$0xff] %vm5861_vm11, %v5857_v27  ;;  %5863 = vst.msk [vmem:[%s8719_s15 + $0x8] sm:$0xff] %vm5861_vm11, %v5854_v42  ;;  %v5851_v8 = vadd.f32 %v5839_v4, %v5771_v15  ;;  %v5848_v6 = vadd.f32 %v5827_v10, %v5768_v26 }
 0x857   : > { %v5859_v45 = vmax.f32 %v5851_v8, 0.0  ;;  %v5856_v18 = vmax.f32 %v5848_v6, 0.0 }
 0x858   : > { %v5835_v33 = vpop.permute.xlu0 %5834 }
 0x859   : > { %5868 = vst.msk [vmem:[%s8719_s15 + $0x30] sm:$0xff] %vm5861_vm11, %v5859_v45  ;;  %5865 = vst.msk [vmem:[%s8719_s15 + $0x18] sm:$0xff] %vm5861_vm11, %v5856_v18  ;;  %v5850_v52 = vadd.f32 %v5835_v33, %v5770_v14 }
 0x85b   : > { %v5858_v11 = vmax.f32 %v5850_v52, 0.0 }
 0x85c   : > { %v5843_v5 = vpop.permute.xlu0 %5842 }
 0x85d   : > { %5867 = vst.msk [vmem:[%s8719_s15 + $0x28] sm:$0xff] %vm5861_vm11, %v5858_v11  ;;  %v5852_v9 = vadd.f32 %v5843_v5, %v5772_v47 }
 0x85f   : > { %v5860_v25 = vmax.f32 %v5852_v9, 0.0 }
 0x861   : > { %5869 = vst.msk [vmem:[%s8719_s15 + $0x38] sm:$0xff] %vm5861_vm11, %v5860_v25 }
 0x862   : > { %6289 = shalt.err (!%p6286_p3)
}
 0x863   : > { %s6290_s21 = scalar_lea.hbm %s8740_s20, 1024  ;;  %s6294_s16 = scalar_lea.hbm %s8801_s13, 2048 }
 0x864   : > { %p6291_p4 = scmp.ne.s32.totalorder %s8740_s20, %s6290_s21  ;;  %p6295_p9 = scmp.lt.s32.totalorder %s8740_s20, %s8801_s13 }
 0x865   : > { %p6296_p10 = scmp.lt.s32.totalorder %s6294_s16, %s6290_s21 }
 0x866   : > { %p6292_p7 = pnand %p6291_p4, %p6462_p5 }
 0x867   : > { %p6297_p11 = por %p6296_p10, %p6295_p9 }
 0x868   : > { %p6293_p8 = pneg %p6292_p7 }
 0x86a   : > { %p6298_p12 = pnand %p6297_p11, %p6293_p8 }
 0x86c   : > { %6301 = shalt.err (!%p6298_p12)
}
 0x86d   : > { %s6352_s0 = smov 128   ;;  %s6353_s30 = smov 8  }
 0x86e   : > { %6220 = dma.vmem_to_hbm [thread:$0]  (%p6462_p5), %s8742_s17, 1024, %s8740_s20, %s8748_s29, %s6352_s0, %s6352_s0, %s6353_s30  }
 0x86f PF: > { %p6226_p13 = scmp.ge.s32.totalorder %s6336_s28, 2  ;;  %s5899_s1 = sand.u32 1, %s6324_s25  }
 0x870   : > { %s5900_s24 = scalar_lea.sflag [#allocation5], %s5899_s1 }
 0x871   : > { %p6223_p0 = pnand %p6226_p13, %p6466_p6 }
 0x873   : > { %p6224_p1 = pneg %p6223_p0 }
 0x875   : > { %6319 = dma.done.wait (%p6224_p1), %s5900_s24, 1024  }
 0x876   : > { %6321 = vsyncadd (%p6224_p1), %s5900_s24, 4294966272  ;;  %s8986_s21 = sld [smem:[#allocation7_spill]]  ;;  %p23_p2 = scmp.ge.s32.totalorder %s6449_s14, 4  }
 0x877   : > { %s8987_s27 = sld [smem:[#allocation8_spill]]  ;;  %s8988_s25 = smov %s6328_s26 }
 0x878   : > { %s8990_s28 = smov %s6449_s14  ;;  %25 = sbr.rel (!%p23_p2) target bundleno = 6 (0x6), region = 107 }
 0x87c   : > { %s8989_s26 = smov %s8986_s21 }
 0x87d   :  { %5905 = vsyncpa [#allocation5], 1 }
 0x87e   :  { %5907 = vsyncpa [#allocation5 + $0x1], 1 }

</bundles_post_ra>
